<compile_context>
chip_gen: v7x
topology: tpu7x:2x2x1
jax: 0.10.0
libtpu: 0.0.40
codegen_flags: <defaults>
</compile_context>

<pallas_src>
import jax
import jax.numpy as jnp
import numpy as np
from jax import lax
from jax.experimental import pallas as pl
from jax.experimental.pallas import tpu as pltpu

# ----------------------------------------------------------------------------
# env params (consistent with the module: obs = robot + N*(obj + goal))
# ----------------------------------------------------------------------------
ENV = dict(obs=46, action=4, action_max=1.0,
           goal_size=3, obj_obs_size=15, robot_obs_size=10)
NUM_OBJ = (ENV['obs'] - ENV['robot_obs_size']) // (ENV['obj_obs_size'] + ENV['goal_size'])  # = 2
SG_IN = ENV['robot_obs_size'] + ENV['obj_obs_size'] + ENV['goal_size']                      # 28
SA_IN = ENV['obs'] + ENV['action']                                                          # 50
EMBED = 64
F_HID = 176
F_OUT = 16
DEFAULT_TB = 512   # batch tile: fills MXU rows, amortizes ~0.35us per-step overhead


def _round_up(x, m):
    return ((x + m - 1) // m) * m


def _choose_tile(B, tb):
    """Pick the batch tile: multiple of 16 (bf16 sublane packing), <= padded B,
    and small enough that B >= 64 yields >= 2 grid tiles (v7x has 2 TensorCores)."""
    tb = max(16, _round_up(int(tb), 16))
    if B >= 64:
        tb = min(tb, _round_up((B + 1) // 2, 16))
    tb = min(tb, _round_up(B, 16))
    return max(16, _round_up(tb, 16))


# ----------------------------------------------------------------------------
# Pallas kernel: entire critic forward for one batch tile (TB rows)
# ----------------------------------------------------------------------------
def critic_kernel(sa_ref,
                  fw1, fw2, fw3, fw4,
                  pw1, wpqkv, wf, ow2,
                  bias_ref,
                  out_ref):
    f32 = jnp.float32
    bf16 = jnp.bfloat16
    tb = sa_ref.shape[0]
    E = EMBED
    n_obj = NUM_OBJ

    def mm(x, w_ref):
        # bf16 MXU matmul with f32 accumulation
        return jnp.dot(x.astype(bf16), w_ref[...], preferred_element_type=f32)

    sa = sa_ref[...]                                  # (tb, 50) f32; 1/action_max folded into fw1

    # ---- f network on sa: 50 -> 176 -> 176 -> 176 -> 16 ----
    h = jnp.maximum(mm(sa, fw1) + bias_ref[0:1, 0:F_HID], 0.0)
    h = jnp.maximum(mm(h, fw2) + bias_ref[1:2, 0:F_HID], 0.0)
    h = jnp.maximum(mm(h, fw3) + bias_ref[2:3, 0:F_HID], 0.0)
    f = mm(h, fw4) + bias_ref[3:4, 0:F_OUT]           # (tb, 16)

    # ---- phi_in layer 1, both objects at once via zero-padded (50, 128) weight ----
    # lanes 0:64 = relu(sg_obj0 @ pw1 + pb1), lanes 64:128 = same for obj1.
    p1 = jnp.maximum(mm(sa, pw1) + bias_ref[4:5, 0:n_obj * E], 0.0)     # (tb, 128)

    # ---- stack objects along sublanes, then fused (phi_in layer2 @ QKV) projection ----
    p1s = jnp.concatenate([p1[:, n * E:(n + 1) * E] for n in range(n_obj)], axis=0)  # (2tb, 64)
    qkv = mm(p1s, wpqkv) + bias_ref[5:6, 0:3 * E]                       # (2tb, 192); q pre-scaled

    q = [qkv[n * tb:(n + 1) * tb, 0:E] for n in range(n_obj)]
    k = [qkv[n * tb:(n + 1) * tb, E:2 * E] for n in range(n_obj)]
    v = [qkv[n * tb:(n + 1) * tb, 2 * E:3 * E] for n in range(n_obj)]

    # ---- single-head self-attention over the object (seq) dim ----
    ctxs = []
    for i in range(n_obj):
        s = [jnp.sum(q[i] * k[j], axis=-1, keepdims=True) for j in range(n_obj)]
        m = s[0]
        for j in range(1, n_obj):
            m = jnp.maximum(m, s[j])
        e = [jnp.exp(sj - m) for sj in s]
        den = e[0]
        for j in range(1, n_obj):
            den = den + e[j]
        inv = pl.reciprocal(den, approx=True)          # EUP reciprocal (free slot)
        ctx = (e[0] * inv) * v[0]
        for j in range(1, n_obj):
            ctx = ctx + (e[j] * inv) * v[j]
        ctxs.append(ctx)                               # (tb, 64) each

    # ---- fused (attn out-proj @ phi_out layer1): lane-concat ctx -> one K=128 matmul ----
    ctx_flat = jnp.concatenate(ctxs, axis=1)                            # (tb, 128)
    ph = jnp.maximum(mm(ctx_flat, wf) + bias_ref[6:7, 0:E], 0.0)        # (tb, 64)
    phi = mm(ph, ow2) + bias_ref[7:8, 0:F_OUT]                          # (tb, 16)

    # ---- q_value[b] = f[b,:] . phi[b,:], emitted lane-dense as a (1, tb) row ----
    prod = f * phi                                                      # (tb, 16) f32
    ones = jnp.ones((1, prod.shape[1]), f32)
    qrow = lax.dot_general(ones, prod, (((1,), (1,)), ((), ())),
                           preferred_element_type=f32)                  # (1, tb)
    out_ref[0] = qrow


# ----------------------------------------------------------------------------
# weight packing: offline algebraic fusions (f32 products, single bf16 cast)
# ----------------------------------------------------------------------------
def _pack_weights(params):
    f32, bf16 = jnp.float32, jnp.bfloat16
    R, OBJ, G = ENV['robot_obs_size'], ENV['obj_obs_size'], ENV['goal_size']
    E = EMBED
    p = {k: jnp.asarray(v, f32) for k, v in params.items()}

    # fw1 with 1/action_max folded into the action rows (sa is [x | actions] unscaled)
    fw1 = jnp.concatenate(
        [p['fw1'][:ENV['obs']], p['fw1'][ENV['obs']:] * (1.0 / ENV['action_max'])], axis=0)

    # phi_in layer 1: zero-padded per-object weights (robot rows shared), lane-concat
    pw1 = p['pw1']                                                     # (28, 64)
    cols = []
    for n in range(NUM_OBJ):
        w = jnp.zeros((SA_IN, E), f32)
        w = w.at[0:R].set(pw1[0:R])
        w = w.at[R + OBJ * n: R + OBJ * (n + 1)].set(pw1[R:R + OBJ])
        w = w.at[R + OBJ * NUM_OBJ + G * n: R + OBJ * NUM_OBJ + G * (n + 1)].set(pw1[R + OBJ:])
        cols.append(w)                                                  # action rows stay zero
    pw1_fused = jnp.concatenate(cols, axis=1)                           # (50, 128)
    pb1_dup = jnp.concatenate([p['pb1']] * NUM_OBJ, axis=1)             # (1, 128)

    # phi_in layer 2 folded into the fused QKV projection; softmax scale into q cols
    scale = 1.0 / float(np.sqrt(E))
    wqkv = jnp.concatenate([p['wq'] * scale, p['wk'], p['wv']], axis=1)   # (64, 192)
    bqkv = jnp.concatenate([p['bq'] * scale, p['bk'], p['bv']], axis=1)   # (1, 192)
    w_pqkv = p['pw2'] @ wqkv                                              # (64, 192)
    b_pqkv = p['pb2'] @ wqkv + bqkv                                       # (1, 192)

    # attention out-proj folded into phi_out layer 1
    ow1 = p['ow1']                                                        # (128, 64)
    wf = jnp.concatenate([p['wo'] @ ow1[:E], p['wo'] @ ow1[E:]], axis=0)  # (128, 64)
    bf = p['bo'] @ (ow1[:E] + ow1[E:]) + p['ob1']                         # (1, 64)

    # all f32 biases packed into one (8, 256) array (one operand / DMA / VMEM buffer)
    bias = jnp.zeros((8, 256), f32)
    bias = bias.at[0, :F_HID].set(p['fb1'][0])
    bias = bias.at[1, :F_HID].set(p['fb2'][0])
    bias = bias.at[2, :F_HID].set(p['fb3'][0])
    bias = bias.at[3, :F_OUT].set(p['fb4'][0])
    bias = bias.at[4, :NUM_OBJ * E].set(pb1_dup[0])
    bias = bias.at[5, :3 * E].set(b_pqkv[0])
    bias = bias.at[6, :E].set(bf[0])
    bias = bias.at[7, :F_OUT].set(p['ob2'][0])

    weights = [fw1.astype(bf16), p['fw2'].astype(bf16), p['fw3'].astype(bf16),
               p['fw4'].astype(bf16), pw1_fused.astype(bf16), w_pqkv.astype(bf16),
               wf.astype(bf16), p['ow2'].astype(bf16)]
    return weights, bias


# ----------------------------------------------------------------------------
# Wrapper (sa assembly, padding, pallas_call)
# ----------------------------------------------------------------------------
def critic_biselfattn_forward(x, actions, params, *, tb=DEFAULT_TB):
    B, obs_size = x.shape
    R, OBJ, G = ENV['robot_obs_size'], ENV['obj_obs_size'], ENV['goal_size']
    assert obs_size == ENV['obs'], "kernel compiled for obs=46"
    assert actions.shape[1] == ENV['action']
    assert (obs_size - R) % (OBJ + G) == 0
    assert (obs_size - R) // (OBJ + G) == NUM_OBJ      # phi_out Linear(128, 64) fixes N=2

    # merge x | actions (unscaled; 1/action_max folded into fw1) -> (B, 50)
    sa = jnp.concatenate([x.astype(jnp.float32), actions.astype(jnp.float32)], axis=1)

    tb_eff = _choose_tile(B, tb)
    Bp = _round_up(B, tb_eff)
    if Bp != B:
        sa = jnp.pad(sa, ((0, Bp - B), (0, 0)))
    num_tiles = Bp // tb_eff

    weights, bias = _pack_weights(params)

    def build_and_run(buffered):
        if buffered:
            def wspec(shp):
                # constant index_map -> single-buffer the resident weights/biases
                return pl.BlockSpec(shp, lambda i: (0, 0), pipeline_mode=pl.Buffered(1))
        else:
            def wspec(shp):
                return pl.BlockSpec(shp, lambda i: (0, 0))
        in_specs = ([pl.BlockSpec((tb_eff, SA_IN), lambda i: (i, 0))]
                    + [wspec(w.shape) for w in weights]
                    + [wspec(bias.shape)])
        # lane-dense output: one (1, tb_eff) row per grid step
        out_specs = pl.BlockSpec((1, 1, tb_eff), lambda i: (i, 0, 0))
        return pl.pallas_call(
            critic_kernel,
            out_shape=jax.ShapeDtypeStruct((num_tiles, 1, tb_eff), jnp.float32),
            grid=(num_tiles,),
            in_specs=in_specs,
            out_specs=out_specs,
            compiler_params=pltpu.CompilerParams(dimension_semantics=("parallel",)),
        )(sa, *weights, bias)

    try:
        out = build_and_run(True)
    except Exception:
        # Buffered(1) is a pure VMEM/bookkeeping optimization; fall back to the
        # default double-buffered weight specs if the installed jax rejects it.
        out = build_and_run(False)

    return out.reshape(Bp, 1)[:B]


# ----------------------------------------------------------------------------
# Deterministic parameter init (PyTorch-Linear-style uniform, stored as (in, out))
# ----------------------------------------------------------------------------
def init_params(key):
    def lin_init(k, fan_in, fan_out):
        k1, k2 = jax.random.split(k)
        bound = 1.0 / np.sqrt(fan_in)
        w = jax.random.uniform(k1, (fan_in, fan_out), jnp.float32, -bound, bound)
        b = jax.random.uniform(k2, (1, fan_out), jnp.float32, -bound, bound)
        return w, b

    keys = jax.random.split(key, 12)
    p = {}
    p['fw1'], p['fb1'] = lin_init(keys[0], SA_IN, F_HID)
    p['fw2'], p['fb2'] = lin_init(keys[1], F_HID, F_HID)
    p['fw3'], p['fb3'] = lin_init(keys[2], F_HID, F_HID)
    p['fw4'], p['fb4'] = lin_init(keys[3], F_HID, F_OUT)
    p['pw1'], p['pb1'] = lin_init(keys[4], SG_IN, EMBED)
    p['pw2'], p['pb2'] = lin_init(keys[5], EMBED, EMBED)
    p['wq'], p['bq'] = lin_init(keys[6], EMBED, EMBED)
    p['wk'], p['bk'] = lin_init(keys[7], EMBED, EMBED)
    p['wv'], p['bv'] = lin_init(keys[8], EMBED, EMBED)
    p['wo'], p['bo'] = lin_init(keys[9], EMBED, EMBED)
    p['ow1'], p['ob1'] = lin_init(keys[10], NUM_OBJ * EMBED, EMBED)   # flat (128, 64)
    p['ow2'], p['ob2'] = lin_init(keys[11], EMBED, F_OUT)
    return p


# ----------------------------------------------------------------------------
# Pure-JAX f32 reference (mirrors the PyTorch forward) for the correctness check
# ----------------------------------------------------------------------------
def reference_forward(x, actions, params):
    B = x.shape[0]
    R, OBJ, G = ENV['robot_obs_size'], ENV['obj_obs_size'], ENV['goal_size']
    num_obj = (x.shape[1] - R) // (OBJ + G)
    x = x.astype(jnp.float32)
    actions = actions.astype(jnp.float32)

    sa = jnp.concatenate([x[:, :ENV['obs']], actions / ENV['action_max']], axis=1)
    h = jax.nn.relu(sa @ params['fw1'] + params['fb1'])
    h = jax.nn.relu(h @ params['fw2'] + params['fb2'])
    h = jax.nn.relu(h @ params['fw3'] + params['fb3'])
    f = h @ params['fw4'] + params['fb4']

    robot = jnp.broadcast_to(x[:, None, :R], (B, num_obj, R))
    obj = x[:, R:R + OBJ * num_obj].reshape(B, num_obj, OBJ)
    goal = x[:, R + OBJ * num_obj:].reshape(B, num_obj, G)
    sg = jnp.concatenate([robot, obj, goal], axis=-1)

    p1 = jax.nn.relu(sg @ params['pw1'] + params['pb1'])
    pin = p1 @ params['pw2'] + params['pb2']                     # (B, N, 64)

    q = pin @ params['wq'] + params['bq']
    k = pin @ params['wk'] + params['bk']
    v = pin @ params['wv'] + params['bv']
    scores = jnp.einsum('bnd,bmd->bnm', q, k) / jnp.sqrt(jnp.float32(EMBED))
    w = jax.nn.softmax(scores, axis=-1)
    att = jnp.einsum('bnm,bmd->bnd', w, v)
    att = att @ params['wo'] + params['bo']
    att_flat = att.reshape(B, num_obj * EMBED)

    ph = jax.nn.relu(att_flat @ params['ow1'] + params['ob1'])
    phi = ph @ params['ow2'] + params['ob2']
    return jnp.sum(f * phi, axis=-1, keepdims=True)


if __name__ == "__main__":
    key = jax.random.PRNGKey(0)
    kp, kx, ka = jax.random.split(key, 3)

    params = init_params(kp)
    B = 100
    x = jax.random.normal(kx, (B, ENV['obs']), jnp.float32)
    actions = jax.random.uniform(ka, (B, ENV['action']), jnp.float32, -1.0, 1.0)

    # small explicit tile -> multi-tile grid + batch-padding path
    q1 = jax.block_until_ready(critic_biselfattn_forward(x, actions, params, tb=32))
    # default tile (>=2 tiles since B >= 64, so v7x's two TensorCores both get work)
    q2 = jax.block_until_ready(critic_biselfattn_forward(x, actions, params))

    q_ref = jax.block_until_ready(reference_forward(x, actions, params))
    # bf16 matmuls (with fused weights) vs f32 reference -> loosened tolerance
    np.testing.assert_allclose(np.asarray(q1), np.asarray(q_ref), rtol=5e-2, atol=5e-2)
    np.testing.assert_allclose(np.asarray(q2), np.asarray(q_ref), rtol=5e-2, atol=5e-2)
    assert q1.shape == (B, 1) and q2.shape == (B, 1)
    print("KERNEL_OK")
</pallas_src>

<mosaic_0001>
module attributes {stable_mosaic.version = 11 : i64} {
  func.func @critic_kernel(%arg0: i32, %arg1: memref<32x50xf32, #tpu.memory_space<vmem>>, %arg2: memref<50x176xbf16, #tpu.memory_space<vmem>>, %arg3: memref<176x176xbf16, #tpu.memory_space<vmem>>, %arg4: memref<176x176xbf16, #tpu.memory_space<vmem>>, %arg5: memref<176x16xbf16, #tpu.memory_space<vmem>>, %arg6: memref<50x128xbf16, #tpu.memory_space<vmem>>, %arg7: memref<64x192xbf16, #tpu.memory_space<vmem>>, %arg8: memref<128x64xbf16, #tpu.memory_space<vmem>>, %arg9: memref<64x16xbf16, #tpu.memory_space<vmem>>, %arg10: memref<8x256xf32, #tpu.memory_space<vmem>>, %arg11: memref<1x1x32xf32, #tpu.memory_space<vmem>>) attributes {dimension_semantics = [#tpu.dimension_semantics<parallel>], iteration_bounds = array<i64: 4>, scalar_prefetch = 0 : i64, scratch_operands = 0 : i64, tpu.core_type = #tpu.core_type<tc>, window_params = [{transform_indices = @transform_0, window_bounds = array<i64: 32, 50>}, {pipeline_mode = #tpu.pipeline_mode<synchronous>, transform_indices = @transform_1, window_bounds = array<i64: 50, 176>}, {pipeline_mode = #tpu.pipeline_mode<synchronous>, transform_indices = @transform_2, window_bounds = array<i64: 176, 176>}, {pipeline_mode = #tpu.pipeline_mode<synchronous>, transform_indices = @transform_3, window_bounds = array<i64: 176, 176>}, {pipeline_mode = #tpu.pipeline_mode<synchronous>, transform_indices = @transform_4, window_bounds = array<i64: 176, 16>}, {pipeline_mode = #tpu.pipeline_mode<synchronous>, transform_indices = @transform_5, window_bounds = array<i64: 50, 128>}, {pipeline_mode = #tpu.pipeline_mode<synchronous>, transform_indices = @transform_6, window_bounds = array<i64: 64, 192>}, {pipeline_mode = #tpu.pipeline_mode<synchronous>, transform_indices = @transform_7, window_bounds = array<i64: 128, 64>}, {pipeline_mode = #tpu.pipeline_mode<synchronous>, transform_indices = @transform_8, window_bounds = array<i64: 64, 16>}, {pipeline_mode = #tpu.pipeline_mode<synchronous>, transform_indices = @transform_9, window_bounds = array<i64: 8, 256>}, {transform_indices = @transform_10, window_bounds = array<i64: 1, 1, 32>}]} {
    %c0 = arith.constant 0 : index
    %c0_0 = arith.constant 0 : index
    %0 = vector.load %arg1[%c0, %c0_0] : memref<32x50xf32, #tpu.memory_space<vmem>>, vector<32x50xf32>
    %1 = arith.truncf %0 : vector<32x50xf32> to vector<32x50xbf16>
    %c0_1 = arith.constant 0 : index
    %c0_2 = arith.constant 0 : index
    %2 = vector.load %arg2[%c0_1, %c0_2] : memref<50x176xbf16, #tpu.memory_space<vmem>>, vector<50x176xbf16>
    %cst = arith.constant dense<0.000000e+00> : vector<32x176xf32>
    %3 = tpu.matmul %1, %2, %cst {dimension_numbers = #tpu.dot_dimension_numbers<[1], [0], [0], [1], [0, 0, 1, 1], [], []>} : vector<32x50xbf16>, vector<50x176xbf16>, vector<32x176xf32> -> vector<32x176xf32>
    %c0_3 = arith.constant 0 : index
    %c0_4 = arith.constant 0 : index
    %4 = vector.load %arg10[%c0_3, %c0_4] : memref<8x256xf32, #tpu.memory_space<vmem>>, vector<1x176xf32>
    %5 = vector.broadcast %4 : vector<1x176xf32> to vector<32x176xf32>
    %6 = arith.addf %3, %5 : vector<32x176xf32>
    %cst_5 = arith.constant 0.000000e+00 : f32
    %7 = vector.broadcast %cst_5 : f32 to vector<32x176xf32>
    %8 = arith.maximumf %6, %7 : vector<32x176xf32>
    %9 = arith.truncf %8 : vector<32x176xf32> to vector<32x176xbf16>
    %c0_6 = arith.constant 0 : index
    %c0_7 = arith.constant 0 : index
    %10 = vector.load %arg3[%c0_6, %c0_7] : memref<176x176xbf16, #tpu.memory_space<vmem>>, vector<176x176xbf16>
    %cst_8 = arith.constant dense<0.000000e+00> : vector<32x176xf32>
    %11 = tpu.matmul %9, %10, %cst_8 {dimension_numbers = #tpu.dot_dimension_numbers<[1], [0], [0], [1], [0, 0, 1, 1], [], []>} : vector<32x176xbf16>, vector<176x176xbf16>, vector<32x176xf32> -> vector<32x176xf32>
    %c1 = arith.constant 1 : index
    %c0_9 = arith.constant 0 : index
    %12 = vector.load %arg10[%c1, %c0_9] : memref<8x256xf32, #tpu.memory_space<vmem>>, vector<1x176xf32>
    %13 = vector.broadcast %12 : vector<1x176xf32> to vector<32x176xf32>
    %14 = arith.addf %11, %13 : vector<32x176xf32>
    %cst_10 = arith.constant 0.000000e+00 : f32
    %15 = vector.broadcast %cst_10 : f32 to vector<32x176xf32>
    %16 = arith.maximumf %14, %15 : vector<32x176xf32>
    %17 = arith.truncf %16 : vector<32x176xf32> to vector<32x176xbf16>
    %c0_11 = arith.constant 0 : index
    %c0_12 = arith.constant 0 : index
    %18 = vector.load %arg4[%c0_11, %c0_12] : memref<176x176xbf16, #tpu.memory_space<vmem>>, vector<176x176xbf16>
    %cst_13 = arith.constant dense<0.000000e+00> : vector<32x176xf32>
    %19 = tpu.matmul %17, %18, %cst_13 {dimension_numbers = #tpu.dot_dimension_numbers<[1], [0], [0], [1], [0, 0, 1, 1], [], []>} : vector<32x176xbf16>, vector<176x176xbf16>, vector<32x176xf32> -> vector<32x176xf32>
    %c2 = arith.constant 2 : index
    %c0_14 = arith.constant 0 : index
    %20 = vector.load %arg10[%c2, %c0_14] : memref<8x256xf32, #tpu.memory_space<vmem>>, vector<1x176xf32>
    %21 = vector.broadcast %20 : vector<1x176xf32> to vector<32x176xf32>
    %22 = arith.addf %19, %21 : vector<32x176xf32>
    %cst_15 = arith.constant 0.000000e+00 : f32
    %23 = vector.broadcast %cst_15 : f32 to vector<32x176xf32>
    %24 = arith.maximumf %22, %23 : vector<32x176xf32>
    %25 = arith.truncf %24 : vector<32x176xf32> to vector<32x176xbf16>
    %c0_16 = arith.constant 0 : index
    %c0_17 = arith.constant 0 : index
    %26 = vector.load %arg5[%c0_16, %c0_17] : memref<176x16xbf16, #tpu.memory_space<vmem>>, vector<176x16xbf16>
    %cst_18 = arith.constant dense<0.000000e+00> : vector<32x16xf32>
    %27 = tpu.matmul %25, %26, %cst_18 {dimension_numbers = #tpu.dot_dimension_numbers<[1], [0], [0], [1], [0, 0, 1, 1], [], []>} : vector<32x176xbf16>, vector<176x16xbf16>, vector<32x16xf32> -> vector<32x16xf32>
    %c3 = arith.constant 3 : index
    %c0_19 = arith.constant 0 : index
    %28 = vector.load %arg10[%c3, %c0_19] : memref<8x256xf32, #tpu.memory_space<vmem>>, vector<1x16xf32>
    %29 = vector.broadcast %28 : vector<1x16xf32> to vector<32x16xf32>
    %30 = arith.addf %27, %29 : vector<32x16xf32>
    %31 = arith.truncf %0 : vector<32x50xf32> to vector<32x50xbf16>
    %c0_20 = arith.constant 0 : index
    %c0_21 = arith.constant 0 : index
    %32 = vector.load %arg6[%c0_20, %c0_21] : memref<50x128xbf16, #tpu.memory_space<vmem>>, vector<50x128xbf16>
    %cst_22 = arith.constant dense<0.000000e+00> : vector<32x128xf32>
    %33 = tpu.matmul %31, %32, %cst_22 {dimension_numbers = #tpu.dot_dimension_numbers<[1], [0], [0], [1], [0, 0, 1, 1], [], []>} : vector<32x50xbf16>, vector<50x128xbf16>, vector<32x128xf32> -> vector<32x128xf32>
    %c4 = arith.constant 4 : index
    %c0_23 = arith.constant 0 : index
    %34 = vector.load %arg10[%c4, %c0_23] : memref<8x256xf32, #tpu.memory_space<vmem>>, vector<1x128xf32>
    %35 = vector.broadcast %34 : vector<1x128xf32> to vector<32x128xf32>
    %36 = arith.addf %33, %35 : vector<32x128xf32>
    %cst_24 = arith.constant 0.000000e+00 : f32
    %37 = vector.broadcast %cst_24 : f32 to vector<32x128xf32>
    %38 = arith.maximumf %36, %37 : vector<32x128xf32>
    %39 = vector.extract_strided_slice %38 {offsets = [0, 0], sizes = [32, 64], strides = [1, 1]} : vector<32x128xf32> to vector<32x64xf32>
    %40 = vector.extract_strided_slice %38 {offsets = [0, 64], sizes = [32, 64], strides = [1, 1]} : vector<32x128xf32> to vector<32x64xf32>
    %41 = tpu.concatenate %39, %40 in 0 : vector<32x64xf32>, vector<32x64xf32> -> vector<64x64xf32>
    %42 = arith.truncf %41 : vector<64x64xf32> to vector<64x64xbf16>
    %c0_25 = arith.constant 0 : index
    %c0_26 = arith.constant 0 : index
    %43 = vector.load %arg7[%c0_25, %c0_26] : memref<64x192xbf16, #tpu.memory_space<vmem>>, vector<64x192xbf16>
    %cst_27 = arith.constant dense<0.000000e+00> : vector<64x192xf32>
    %44 = tpu.matmul %42, %43, %cst_27 {dimension_numbers = #tpu.dot_dimension_numbers<[1], [0], [0], [1], [0, 0, 1, 1], [], []>} : vector<64x64xbf16>, vector<64x192xbf16>, vector<64x192xf32> -> vector<64x192xf32>
    %c5 = arith.constant 5 : index
    %c0_28 = arith.constant 0 : index
    %45 = vector.load %arg10[%c5, %c0_28] : memref<8x256xf32, #tpu.memory_space<vmem>>, vector<1x192xf32>
    %46 = vector.broadcast %45 : vector<1x192xf32> to vector<64x192xf32>
    %47 = arith.addf %44, %46 : vector<64x192xf32>
    %48 = vector.extract_strided_slice %47 {offsets = [0, 0], sizes = [32, 64], strides = [1, 1]} : vector<64x192xf32> to vector<32x64xf32>
    %49 = vector.extract_strided_slice %47 {offsets = [32, 0], sizes = [32, 64], strides = [1, 1]} : vector<64x192xf32> to vector<32x64xf32>
    %50 = vector.extract_strided_slice %47 {offsets = [0, 64], sizes = [32, 64], strides = [1, 1]} : vector<64x192xf32> to vector<32x64xf32>
    %51 = vector.extract_strided_slice %47 {offsets = [32, 64], sizes = [32, 64], strides = [1, 1]} : vector<64x192xf32> to vector<32x64xf32>
    %52 = vector.extract_strided_slice %47 {offsets = [0, 128], sizes = [32, 64], strides = [1, 1]} : vector<64x192xf32> to vector<32x64xf32>
    %53 = vector.extract_strided_slice %47 {offsets = [32, 128], sizes = [32, 64], strides = [1, 1]} : vector<64x192xf32> to vector<32x64xf32>
    %54 = arith.mulf %48, %50 : vector<32x64xf32>
    %cst_29 = arith.constant dense<0.000000e+00> : vector<32xf32>
    %55 = vector.multi_reduction <add>, %54, %cst_29 [1] : vector<32x64xf32> to vector<32xf32>
    %56 = vector.shape_cast %55 : vector<32xf32> to vector<32x1xf32>
    %57 = arith.mulf %48, %51 : vector<32x64xf32>
    %cst_30 = arith.constant dense<0.000000e+00> : vector<32xf32>
    %58 = vector.multi_reduction <add>, %57, %cst_30 [1] : vector<32x64xf32> to vector<32xf32>
    %59 = vector.shape_cast %58 : vector<32xf32> to vector<32x1xf32>
    %60 = arith.maximumf %56, %59 : vector<32x1xf32>
    %61 = arith.subf %56, %60 : vector<32x1xf32>
    %62 = math.exp %61 : vector<32x1xf32>
    %63 = arith.subf %59, %60 : vector<32x1xf32>
    %64 = math.exp %63 : vector<32x1xf32>
    %65 = arith.addf %62, %64 : vector<32x1xf32>
    %66 = tpu.reciprocal %65 {approx = true} : vector<32x1xf32> -> vector<32x1xf32>
    %67 = arith.mulf %62, %66 : vector<32x1xf32>
    %68 = vector.broadcast %67 : vector<32x1xf32> to vector<32x64xf32>
    %69 = arith.mulf %68, %52 : vector<32x64xf32>
    %70 = arith.mulf %64, %66 : vector<32x1xf32>
    %71 = vector.broadcast %70 : vector<32x1xf32> to vector<32x64xf32>
    %72 = arith.mulf %71, %53 : vector<32x64xf32>
    %73 = arith.addf %69, %72 : vector<32x64xf32>
    %74 = arith.mulf %49, %50 : vector<32x64xf32>
    %cst_31 = arith.constant dense<0.000000e+00> : vector<32xf32>
    %75 = vector.multi_reduction <add>, %74, %cst_31 [1] : vector<32x64xf32> to vector<32xf32>
    %76 = vector.shape_cast %75 : vector<32xf32> to vector<32x1xf32>
    %77 = arith.mulf %49, %51 : vector<32x64xf32>
    %cst_32 = arith.constant dense<0.000000e+00> : vector<32xf32>
    %78 = vector.multi_reduction <add>, %77, %cst_32 [1] : vector<32x64xf32> to vector<32xf32>
    %79 = vector.shape_cast %78 : vector<32xf32> to vector<32x1xf32>
    %80 = arith.maximumf %76, %79 : vector<32x1xf32>
    %81 = arith.subf %76, %80 : vector<32x1xf32>
    %82 = math.exp %81 : vector<32x1xf32>
    %83 = arith.subf %79, %80 : vector<32x1xf32>
    %84 = math.exp %83 : vector<32x1xf32>
    %85 = arith.addf %82, %84 : vector<32x1xf32>
    %86 = tpu.reciprocal %85 {approx = true} : vector<32x1xf32> -> vector<32x1xf32>
    %87 = arith.mulf %82, %86 : vector<32x1xf32>
    %88 = vector.broadcast %87 : vector<32x1xf32> to vector<32x64xf32>
    %89 = arith.mulf %88, %52 : vector<32x64xf32>
    %90 = arith.mulf %84, %86 : vector<32x1xf32>
    %91 = vector.broadcast %90 : vector<32x1xf32> to vector<32x64xf32>
    %92 = arith.mulf %91, %53 : vector<32x64xf32>
    %93 = arith.addf %89, %92 : vector<32x64xf32>
    %94 = tpu.concatenate %73, %93 in 1 : vector<32x64xf32>, vector<32x64xf32> -> vector<32x128xf32>
    %95 = arith.truncf %94 : vector<32x128xf32> to vector<32x128xbf16>
    %c0_33 = arith.constant 0 : index
    %c0_34 = arith.constant 0 : index
    %96 = vector.load %arg8[%c0_33, %c0_34] : memref<128x64xbf16, #tpu.memory_space<vmem>>, vector<128x64xbf16>
    %cst_35 = arith.constant dense<0.000000e+00> : vector<32x64xf32>
    %97 = tpu.matmul %95, %96, %cst_35 {dimension_numbers = #tpu.dot_dimension_numbers<[1], [0], [0], [1], [0, 0, 1, 1], [], []>} : vector<32x128xbf16>, vector<128x64xbf16>, vector<32x64xf32> -> vector<32x64xf32>
    %c6 = arith.constant 6 : index
    %c0_36 = arith.constant 0 : index
    %98 = vector.load %arg10[%c6, %c0_36] : memref<8x256xf32, #tpu.memory_space<vmem>>, vector<1x64xf32>
    %99 = vector.broadcast %98 : vector<1x64xf32> to vector<32x64xf32>
    %100 = arith.addf %97, %99 : vector<32x64xf32>
    %cst_37 = arith.constant 0.000000e+00 : f32
    %101 = vector.broadcast %cst_37 : f32 to vector<32x64xf32>
    %102 = arith.maximumf %100, %101 : vector<32x64xf32>
    %103 = arith.truncf %102 : vector<32x64xf32> to vector<32x64xbf16>
    %c0_38 = arith.constant 0 : index
    %c0_39 = arith.constant 0 : index
    %104 = vector.load %arg9[%c0_38, %c0_39] : memref<64x16xbf16, #tpu.memory_space<vmem>>, vector<64x16xbf16>
    %cst_40 = arith.constant dense<0.000000e+00> : vector<32x16xf32>
    %105 = tpu.matmul %103, %104, %cst_40 {dimension_numbers = #tpu.dot_dimension_numbers<[1], [0], [0], [1], [0, 0, 1, 1], [], []>} : vector<32x64xbf16>, vector<64x16xbf16>, vector<32x16xf32> -> vector<32x16xf32>
    %c7 = arith.constant 7 : index
    %c0_41 = arith.constant 0 : index
    %106 = vector.load %arg10[%c7, %c0_41] : memref<8x256xf32, #tpu.memory_space<vmem>>, vector<1x16xf32>
    %107 = vector.broadcast %106 : vector<1x16xf32> to vector<32x16xf32>
    %108 = arith.addf %105, %107 : vector<32x16xf32>
    %109 = arith.mulf %30, %108 : vector<32x16xf32>
    %cst_42 = arith.constant 1.000000e+00 : f32
    %110 = vector.broadcast %cst_42 : f32 to vector<1x16xf32>
    %cst_43 = arith.constant dense<0.000000e+00> : vector<1x32xf32>
    %111 = tpu.matmul %110, %109, %cst_43 {dimension_numbers = #tpu.dot_dimension_numbers<[1], [1], [0], [0], [0, 0, 1, 0], [], []>} : vector<1x16xf32>, vector<32x16xf32>, vector<1x32xf32> -> vector<1x32xf32>
    %c0_44 = arith.constant 0 : index
    %c0_45 = arith.constant 0 : index
    %c0_46 = arith.constant 0 : index
    %112 = vector.load %arg11[%c0_44, %c0_45, %c0_46] : memref<1x1x32xf32, #tpu.memory_space<vmem>>, vector<1x1x32xf32>
    %113 = vector.shape_cast %112 : vector<1x1x32xf32> to vector<1x32xf32>
    %114 = vector.shape_cast %111 : vector<1x32xf32> to vector<1x1x32xf32>
    tpu.vector_store %arg11[%c0_44, %c0_45, %c0_46], %114 {strides = array<i32>} : memref<1x1x32xf32, #tpu.memory_space<vmem>>, vector<1x1x32xf32>,
    return
  }
  func.func @transform_0(%arg0: i32) -> (i32, i32) {
    %c0_i32 = arith.constant 0 : i32
    %c0_i32_0 = arith.constant 0 : i32
    return %arg0, %c0_i32 : i32, i32
  }
  func.func @transform_1(%arg0: i32) -> (i32, i32) {
    %c0_i32 = arith.constant 0 : i32
    %c0_i32_0 = arith.constant 0 : i32
    %c0_i32_1 = arith.constant 0 : i32
    return %c0_i32, %c0_i32_0 : i32, i32
  }
  func.func @transform_2(%arg0: i32) -> (i32, i32) {
    %c0_i32 = arith.constant 0 : i32
    %c0_i32_0 = arith.constant 0 : i32
    %c0_i32_1 = arith.constant 0 : i32
    return %c0_i32, %c0_i32_0 : i32, i32
  }
  func.func @transform_3(%arg0: i32) -> (i32, i32) {
    %c0_i32 = arith.constant 0 : i32
    %c0_i32_0 = arith.constant 0 : i32
    %c0_i32_1 = arith.constant 0 : i32
    return %c0_i32, %c0_i32_0 : i32, i32
  }
  func.func @transform_4(%arg0: i32) -> (i32, i32) {
    %c0_i32 = arith.constant 0 : i32
    %c0_i32_0 = arith.constant 0 : i32
    %c0_i32_1 = arith.constant 0 : i32
    return %c0_i32, %c0_i32_0 : i32, i32
  }
  func.func @transform_5(%arg0: i32) -> (i32, i32) {
    %c0_i32 = arith.constant 0 : i32
    %c0_i32_0 = arith.constant 0 : i32
    %c0_i32_1 = arith.constant 0 : i32
    return %c0_i32, %c0_i32_0 : i32, i32
  }
  func.func @transform_6(%arg0: i32) -> (i32, i32) {
    %c0_i32 = arith.constant 0 : i32
    %c0_i32_0 = arith.constant 0 : i32
    %c0_i32_1 = arith.constant 0 : i32
    return %c0_i32, %c0_i32_0 : i32, i32
  }
  func.func @transform_7(%arg0: i32) -> (i32, i32) {
    %c0_i32 = arith.constant 0 : i32
    %c0_i32_0 = arith.constant 0 : i32
    %c0_i32_1 = arith.constant 0 : i32
    return %c0_i32, %c0_i32_0 : i32, i32
  }
  func.func @transform_8(%arg0: i32) -> (i32, i32) {
    %c0_i32 = arith.constant 0 : i32
    %c0_i32_0 = arith.constant 0 : i32
    %c0_i32_1 = arith.constant 0 : i32
    return %c0_i32, %c0_i32_0 : i32, i32
  }
  func.func @transform_9(%arg0: i32) -> (i32, i32) {
    %c0_i32 = arith.constant 0 : i32
    %c0_i32_0 = arith.constant 0 : i32
    %c0_i32_1 = arith.constant 0 : i32
    return %c0_i32, %c0_i32_0 : i32, i32
  }
  func.func @transform_10(%arg0: i32) -> (i32, i32, i32) {
    %c0_i32 = arith.constant 0 : i32
    %c0_i32_0 = arith.constant 0 : i32
    %c0_i32_1 = arith.constant 0 : i32
    return %arg0, %c0_i32, %c0_i32_0 : i32, i32, i32
  }
}

module attributes {stable_mosaic.version = 11 : i64} {
  func.func @critic_kernel(%arg0: i32, %arg1: memref<32x50xf32, #tpu.memory_space<vmem>>, %arg2: memref<50x176xbf16, #tpu.memory_space<vmem>>, %arg3: memref<176x176xbf16, #tpu.memory_space<vmem>>, %arg4: memref<176x176xbf16, #tpu.memory_space<vmem>>, %arg5: memref<176x16xbf16, #tpu.memory_space<vmem>>, %arg6: memref<50x128xbf16, #tpu.memory_space<vmem>>, %arg7: memref<64x192xbf16, #tpu.memory_space<vmem>>, %arg8: memref<128x64xbf16, #tpu.memory_space<vmem>>, %arg9: memref<64x16xbf16, #tpu.memory_space<vmem>>, %arg10: memref<8x256xf32, #tpu.memory_space<vmem>>, %arg11: memref<1x1x32xf32, #tpu.memory_space<vmem>>) attributes {dimension_semantics = [#tpu.dimension_semantics<parallel>], iteration_bounds = array<i64: 4>, scalar_prefetch = 0 : i64, scratch_operands = 0 : i64, tpu.core_type = #tpu.core_type<tc>, window_params = [{transform_indices = @transform_0, window_bounds = array<i64: 32, 50>}, {pipeline_mode = #tpu.pipeline_mode<synchronous>, transform_indices = @transform_1, window_bounds = array<i64: 50, 176>}, {pipeline_mode = #tpu.pipeline_mode<synchronous>, transform_indices = @transform_2, window_bounds = array<i64: 176, 176>}, {pipeline_mode = #tpu.pipeline_mode<synchronous>, transform_indices = @transform_3, window_bounds = array<i64: 176, 176>}, {pipeline_mode = #tpu.pipeline_mode<synchronous>, transform_indices = @transform_4, window_bounds = array<i64: 176, 16>}, {pipeline_mode = #tpu.pipeline_mode<synchronous>, transform_indices = @transform_5, window_bounds = array<i64: 50, 128>}, {pipeline_mode = #tpu.pipeline_mode<synchronous>, transform_indices = @transform_6, window_bounds = array<i64: 64, 192>}, {pipeline_mode = #tpu.pipeline_mode<synchronous>, transform_indices = @transform_7, window_bounds = array<i64: 128, 64>}, {pipeline_mode = #tpu.pipeline_mode<synchronous>, transform_indices = @transform_8, window_bounds = array<i64: 64, 16>}, {pipeline_mode = #tpu.pipeline_mode<synchronous>, transform_indices = @transform_9, window_bounds = array<i64: 8, 256>}, {transform_indices = @transform_10, window_bounds = array<i64: 1, 1, 32>}]} {
    %c0 = arith.constant 0 : index
    %c0_0 = arith.constant 0 : index
    %0 = vector.load %arg1[%c0, %c0_0] : memref<32x50xf32, #tpu.memory_space<vmem>>, vector<32x50xf32>
    %1 = arith.truncf %0 : vector<32x50xf32> to vector<32x50xbf16>
    %c0_1 = arith.constant 0 : index
    %c0_2 = arith.constant 0 : index
    %2 = vector.load %arg2[%c0_1, %c0_2] : memref<50x176xbf16, #tpu.memory_space<vmem>>, vector<50x176xbf16>
    %cst = arith.constant dense<0.000000e+00> : vector<32x176xf32>
    %3 = tpu.matmul %1, %2, %cst {dimension_numbers = #tpu.dot_dimension_numbers<[1], [0], [0], [1], [0, 0, 1, 1], [], []>} : vector<32x50xbf16>, vector<50x176xbf16>, vector<32x176xf32> -> vector<32x176xf32>
    %c0_3 = arith.constant 0 : index
    %c0_4 = arith.constant 0 : index
    %4 = vector.load %arg10[%c0_3, %c0_4] : memref<8x256xf32, #tpu.memory_space<vmem>>, vector<1x176xf32>
    %5 = vector.broadcast %4 : vector<1x176xf32> to vector<32x176xf32>
    %6 = arith.addf %3, %5 : vector<32x176xf32>
    %cst_5 = arith.constant 0.000000e+00 : f32
    %7 = vector.broadcast %cst_5 : f32 to vector<32x176xf32>
    %8 = arith.maximumf %6, %7 : vector<32x176xf32>
    %9 = arith.truncf %8 : vector<32x176xf32> to vector<32x176xbf16>
    %c0_6 = arith.constant 0 : index
    %c0_7 = arith.constant 0 : index
    %10 = vector.load %arg3[%c0_6, %c0_7] : memref<176x176xbf16, #tpu.memory_space<vmem>>, vector<176x176xbf16>
    %cst_8 = arith.constant dense<0.000000e+00> : vector<32x176xf32>
    %11 = tpu.matmul %9, %10, %cst_8 {dimension_numbers = #tpu.dot_dimension_numbers<[1], [0], [0], [1], [0, 0, 1, 1], [], []>} : vector<32x176xbf16>, vector<176x176xbf16>, vector<32x176xf32> -> vector<32x176xf32>
    %c1 = arith.constant 1 : index
    %c0_9 = arith.constant 0 : index
    %12 = vector.load %arg10[%c1, %c0_9] : memref<8x256xf32, #tpu.memory_space<vmem>>, vector<1x176xf32>
    %13 = vector.broadcast %12 : vector<1x176xf32> to vector<32x176xf32>
    %14 = arith.addf %11, %13 : vector<32x176xf32>
    %cst_10 = arith.constant 0.000000e+00 : f32
    %15 = vector.broadcast %cst_10 : f32 to vector<32x176xf32>
    %16 = arith.maximumf %14, %15 : vector<32x176xf32>
    %17 = arith.truncf %16 : vector<32x176xf32> to vector<32x176xbf16>
    %c0_11 = arith.constant 0 : index
    %c0_12 = arith.constant 0 : index
    %18 = vector.load %arg4[%c0_11, %c0_12] : memref<176x176xbf16, #tpu.memory_space<vmem>>, vector<176x176xbf16>
    %cst_13 = arith.constant dense<0.000000e+00> : vector<32x176xf32>
    %19 = tpu.matmul %17, %18, %cst_13 {dimension_numbers = #tpu.dot_dimension_numbers<[1], [0], [0], [1], [0, 0, 1, 1], [], []>} : vector<32x176xbf16>, vector<176x176xbf16>, vector<32x176xf32> -> vector<32x176xf32>
    %c2 = arith.constant 2 : index
    %c0_14 = arith.constant 0 : index
    %20 = vector.load %arg10[%c2, %c0_14] : memref<8x256xf32, #tpu.memory_space<vmem>>, vector<1x176xf32>
    %21 = vector.broadcast %20 : vector<1x176xf32> to vector<32x176xf32>
    %22 = arith.addf %19, %21 : vector<32x176xf32>
    %cst_15 = arith.constant 0.000000e+00 : f32
    %23 = vector.broadcast %cst_15 : f32 to vector<32x176xf32>
    %24 = arith.maximumf %22, %23 : vector<32x176xf32>
    %25 = arith.truncf %24 : vector<32x176xf32> to vector<32x176xbf16>
    %c0_16 = arith.constant 0 : index
    %c0_17 = arith.constant 0 : index
    %26 = vector.load %arg5[%c0_16, %c0_17] : memref<176x16xbf16, #tpu.memory_space<vmem>>, vector<176x16xbf16>
    %cst_18 = arith.constant dense<0.000000e+00> : vector<32x16xf32>
    %27 = tpu.matmul %25, %26, %cst_18 {dimension_numbers = #tpu.dot_dimension_numbers<[1], [0], [0], [1], [0, 0, 1, 1], [], []>} : vector<32x176xbf16>, vector<176x16xbf16>, vector<32x16xf32> -> vector<32x16xf32>
    %c3 = arith.constant 3 : index
    %c0_19 = arith.constant 0 : index
    %28 = vector.load %arg10[%c3, %c0_19] : memref<8x256xf32, #tpu.memory_space<vmem>>, vector<1x16xf32>
    %29 = vector.broadcast %28 : vector<1x16xf32> to vector<32x16xf32>
    %30 = arith.addf %27, %29 : vector<32x16xf32>
    %31 = arith.truncf %0 : vector<32x50xf32> to vector<32x50xbf16>
    %c0_20 = arith.constant 0 : index
    %c0_21 = arith.constant 0 : index
    %32 = vector.load %arg6[%c0_20, %c0_21] : memref<50x128xbf16, #tpu.memory_space<vmem>>, vector<50x128xbf16>
    %cst_22 = arith.constant dense<0.000000e+00> : vector<32x128xf32>
    %33 = tpu.matmul %31, %32, %cst_22 {dimension_numbers = #tpu.dot_dimension_numbers<[1], [0], [0], [1], [0, 0, 1, 1], [], []>} : vector<32x50xbf16>, vector<50x128xbf16>, vector<32x128xf32> -> vector<32x128xf32>
    %c4 = arith.constant 4 : index
    %c0_23 = arith.constant 0 : index
    %34 = vector.load %arg10[%c4, %c0_23] : memref<8x256xf32, #tpu.memory_space<vmem>>, vector<1x128xf32>
    %35 = vector.broadcast %34 : vector<1x128xf32> to vector<32x128xf32>
    %36 = arith.addf %33, %35 : vector<32x128xf32>
    %cst_24 = arith.constant 0.000000e+00 : f32
    %37 = vector.broadcast %cst_24 : f32 to vector<32x128xf32>
    %38 = arith.maximumf %36, %37 : vector<32x128xf32>
    %39 = vector.extract_strided_slice %38 {offsets = [0, 0], sizes = [32, 64], strides = [1, 1]} : vector<32x128xf32> to vector<32x64xf32>
    %40 = vector.extract_strided_slice %38 {offsets = [0, 64], sizes = [32, 64], strides = [1, 1]} : vector<32x128xf32> to vector<32x64xf32>
    %41 = tpu.concatenate %39, %40 in 0 : vector<32x64xf32>, vector<32x64xf32> -> vector<64x64xf32>
    %42 = arith.truncf %41 : vector<64x64xf32> to vector<64x64xbf16>
    %c0_25 = arith.constant 0 : index
    %c0_26 = arith.constant 0 : index
    %43 = vector.load %arg7[%c0_25, %c0_26] : memref<64x192xbf16, #tpu.memory_space<vmem>>, vector<64x192xbf16>
    %cst_27 = arith.constant dense<0.000000e+00> : vector<64x192xf32>
    %44 = tpu.matmul %42, %43, %cst_27 {dimension_numbers = #tpu.dot_dimension_numbers<[1], [0], [0], [1], [0, 0, 1, 1], [], []>} : vector<64x64xbf16>, vector<64x192xbf16>, vector<64x192xf32> -> vector<64x192xf32>
    %c5 = arith.constant 5 : index
    %c0_28 = arith.constant 0 : index
    %45 = vector.load %arg10[%c5, %c0_28] : memref<8x256xf32, #tpu.memory_space<vmem>>, vector<1x192xf32>
    %46 = vector.broadcast %45 : vector<1x192xf32> to vector<64x192xf32>
    %47 = arith.addf %44, %46 : vector<64x192xf32>
    %48 = vector.extract_strided_slice %47 {offsets = [0, 0], sizes = [32, 64], strides = [1, 1]} : vector<64x192xf32> to vector<32x64xf32>
    %49 = vector.extract_strided_slice %47 {offsets = [32, 0], sizes = [32, 64], strides = [1, 1]} : vector<64x192xf32> to vector<32x64xf32>
    %50 = vector.extract_strided_slice %47 {offsets = [0, 64], sizes = [32, 64], strides = [1, 1]} : vector<64x192xf32> to vector<32x64xf32>
    %51 = vector.extract_strided_slice %47 {offsets = [32, 64], sizes = [32, 64], strides = [1, 1]} : vector<64x192xf32> to vector<32x64xf32>
    %52 = vector.extract_strided_slice %47 {offsets = [0, 128], sizes = [32, 64], strides = [1, 1]} : vector<64x192xf32> to vector<32x64xf32>
    %53 = vector.extract_strided_slice %47 {offsets = [32, 128], sizes = [32, 64], strides = [1, 1]} : vector<64x192xf32> to vector<32x64xf32>
    %54 = arith.mulf %48, %50 : vector<32x64xf32>
    %cst_29 = arith.constant dense<0.000000e+00> : vector<32xf32>
    %55 = vector.multi_reduction <add>, %54, %cst_29 [1] : vector<32x64xf32> to vector<32xf32>
    %56 = vector.shape_cast %55 : vector<32xf32> to vector<32x1xf32>
    %57 = arith.mulf %48, %51 : vector<32x64xf32>
    %cst_30 = arith.constant dense<0.000000e+00> : vector<32xf32>
    %58 = vector.multi_reduction <add>, %57, %cst_30 [1] : vector<32x64xf32> to vector<32xf32>
    %59 = vector.shape_cast %58 : vector<32xf32> to vector<32x1xf32>
    %60 = arith.maximumf %56, %59 : vector<32x1xf32>
    %61 = arith.subf %56, %60 : vector<32x1xf32>
    %62 = math.exp %61 : vector<32x1xf32>
    %63 = arith.subf %59, %60 : vector<32x1xf32>
    %64 = math.exp %63 : vector<32x1xf32>
    %65 = arith.addf %62, %64 : vector<32x1xf32>
    %66 = tpu.reciprocal %65 {approx = true} : vector<32x1xf32> -> vector<32x1xf32>
    %67 = arith.mulf %62, %66 : vector<32x1xf32>
    %68 = vector.broadcast %67 : vector<32x1xf32> to vector<32x64xf32>
    %69 = arith.mulf %68, %52 : vector<32x64xf32>
    %70 = arith.mulf %64, %66 : vector<32x1xf32>
    %71 = vector.broadcast %70 : vector<32x1xf32> to vector<32x64xf32>
    %72 = arith.mulf %71, %53 : vector<32x64xf32>
    %73 = arith.addf %69, %72 : vector<32x64xf32>
    %74 = arith.mulf %49, %50 : vector<32x64xf32>
    %cst_31 = arith.constant dense<0.000000e+00> : vector<32xf32>
    %75 = vector.multi_reduction <add>, %74, %cst_31 [1] : vector<32x64xf32> to vector<32xf32>
    %76 = vector.shape_cast %75 : vector<32xf32> to vector<32x1xf32>
    %77 = arith.mulf %49, %51 : vector<32x64xf32>
    %cst_32 = arith.constant dense<0.000000e+00> : vector<32xf32>
    %78 = vector.multi_reduction <add>, %77, %cst_32 [1] : vector<32x64xf32> to vector<32xf32>
    %79 = vector.shape_cast %78 : vector<32xf32> to vector<32x1xf32>
    %80 = arith.maximumf %76, %79 : vector<32x1xf32>
    %81 = arith.subf %76, %80 : vector<32x1xf32>
    %82 = math.exp %81 : vector<32x1xf32>
    %83 = arith.subf %79, %80 : vector<32x1xf32>
    %84 = math.exp %83 : vector<32x1xf32>
    %85 = arith.addf %82, %84 : vector<32x1xf32>
    %86 = tpu.reciprocal %85 {approx = true} : vector<32x1xf32> -> vector<32x1xf32>
    %87 = arith.mulf %82, %86 : vector<32x1xf32>
    %88 = vector.broadcast %87 : vector<32x1xf32> to vector<32x64xf32>
    %89 = arith.mulf %88, %52 : vector<32x64xf32>
    %90 = arith.mulf %84, %86 : vector<32x1xf32>
    %91 = vector.broadcast %90 : vector<32x1xf32> to vector<32x64xf32>
    %92 = arith.mulf %91, %53 : vector<32x64xf32>
    %93 = arith.addf %89, %92 : vector<32x64xf32>
    %94 = tpu.concatenate %73, %93 in 1 : vector<32x64xf32>, vector<32x64xf32> -> vector<32x128xf32>
    %95 = arith.truncf %94 : vector<32x128xf32> to vector<32x128xbf16>
    %c0_33 = arith.constant 0 : index
    %c0_34 = arith.constant 0 : index
    %96 = vector.load %arg8[%c0_33, %c0_34] : memref<128x64xbf16, #tpu.memory_space<vmem>>, vector<128x64xbf16>
    %cst_35 = arith.constant dense<0.000000e+00> : vector<32x64xf32>
    %97 = tpu.matmul %95, %96, %cst_35 {dimension_numbers = #tpu.dot_dimension_numbers<[1], [0], [0], [1], [0, 0, 1, 1], [], []>} : vector<32x128xbf16>, vector<128x64xbf16>, vector<32x64xf32> -> vector<32x64xf32>
    %c6 = arith.constant 6 : index
    %c0_36 = arith.constant 0 : index
    %98 = vector.load %arg10[%c6, %c0_36] : memref<8x256xf32, #tpu.memory_space<vmem>>, vector<1x64xf32>
    %99 = vector.broadcast %98 : vector<1x64xf32> to vector<32x64xf32>
    %100 = arith.addf %97, %99 : vector<32x64xf32>
    %cst_37 = arith.constant 0.000000e+00 : f32
    %101 = vector.broadcast %cst_37 : f32 to vector<32x64xf32>
    %102 = arith.maximumf %100, %101 : vector<32x64xf32>
    %103 = arith.truncf %102 : vector<32x64xf32> to vector<32x64xbf16>
    %c0_38 = arith.constant 0 : index
    %c0_39 = arith.constant 0 : index
    %104 = vector.load %arg9[%c0_38, %c0_39] : memref<64x16xbf16, #tpu.memory_space<vmem>>, vector<64x16xbf16>
    %cst_40 = arith.constant dense<0.000000e+00> : vector<32x16xf32>
    %105 = tpu.matmul %103, %104, %cst_40 {dimension_numbers = #tpu.dot_dimension_numbers<[1], [0], [0], [1], [0, 0, 1, 1], [], []>} : vector<32x64xbf16>, vector<64x16xbf16>, vector<32x16xf32> -> vector<32x16xf32>
    %c7 = arith.constant 7 : index
    %c0_41 = arith.constant 0 : index
    %106 = vector.load %arg10[%c7, %c0_41] : memref<8x256xf32, #tpu.memory_space<vmem>>, vector<1x16xf32>
    %107 = vector.broadcast %106 : vector<1x16xf32> to vector<32x16xf32>
    %108 = arith.addf %105, %107 : vector<32x16xf32>
    %109 = arith.mulf %30, %108 : vector<32x16xf32>
    %cst_42 = arith.constant 1.000000e+00 : f32
    %110 = vector.broadcast %cst_42 : f32 to vector<1x16xf32>
    %cst_43 = arith.constant dense<0.000000e+00> : vector<1x32xf32>
    %111 = tpu.matmul %110, %109, %cst_43 {dimension_numbers = #tpu.dot_dimension_numbers<[1], [1], [0], [0], [0, 0, 1, 0], [], []>} : vector<1x16xf32>, vector<32x16xf32>, vector<1x32xf32> -> vector<1x32xf32>
    %c0_44 = arith.constant 0 : index
    %c0_45 = arith.constant 0 : index
    %c0_46 = arith.constant 0 : index
    %112 = vector.load %arg11[%c0_44, %c0_45, %c0_46] : memref<1x1x32xf32, #tpu.memory_space<vmem>>, vector<1x1x32xf32>
    %113 = vector.shape_cast %112 : vector<1x1x32xf32> to vector<1x32xf32>
    %114 = vector.shape_cast %111 : vector<1x32xf32> to vector<1x1x32xf32>
    tpu.vector_store %arg11[%c0_44, %c0_45, %c0_46], %114 {strides = array<i32>} : memref<1x1x32xf32, #tpu.memory_space<vmem>>, vector<1x1x32xf32>,
    return
  }
  func.func @transform_0(%arg0: i32) -> (i32, i32) {
    %c0_i32 = arith.constant 0 : i32
    %c0_i32_0 = arith.constant 0 : i32
    return %arg0, %c0_i32 : i32, i32
  }
  func.func @transform_1(%arg0: i32) -> (i32, i32) {
    %c0_i32 = arith.constant 0 : i32
    %c0_i32_0 = arith.constant 0 : i32
    %c0_i32_1 = arith.constant 0 : i32
    return %c0_i32, %c0_i32_0 : i32, i32
  }
  func.func @transform_2(%arg0: i32) -> (i32, i32) {
    %c0_i32 = arith.constant 0 : i32
    %c0_i32_0 = arith.constant 0 : i32
    %c0_i32_1 = arith.constant 0 : i32
    return %c0_i32, %c0_i32_0 : i32, i32
  }
  func.func @transform_3(%arg0: i32) -> (i32, i32) {
    %c0_i32 = arith.constant 0 : i32
    %c0_i32_0 = arith.constant 0 : i32
    %c0_i32_1 = arith.constant 0 : i32
    return %c0_i32, %c0_i32_0 : i32, i32
  }
  func.func @transform_4(%arg0: i32) -> (i32, i32) {
    %c0_i32 = arith.constant 0 : i32
    %c0_i32_0 = arith.constant 0 : i32
    %c0_i32_1 = arith.constant 0 : i32
    return %c0_i32, %c0_i32_0 : i32, i32
  }
  func.func @transform_5(%arg0: i32) -> (i32, i32) {
    %c0_i32 = arith.constant 0 : i32
    %c0_i32_0 = arith.constant 0 : i32
    %c0_i32_1 = arith.constant 0 : i32
    return %c0_i32, %c0_i32_0 : i32, i32
  }
  func.func @transform_6(%arg0: i32) -> (i32, i32) {
    %c0_i32 = arith.constant 0 : i32
    %c0_i32_0 = arith.constant 0 : i32
    %c0_i32_1 = arith.constant 0 : i32
    return %c0_i32, %c0_i32_0 : i32, i32
  }
  func.func @transform_7(%arg0: i32) -> (i32, i32) {
    %c0_i32 = arith.constant 0 : i32
    %c0_i32_0 = arith.constant 0 : i32
    %c0_i32_1 = arith.constant 0 : i32
    return %c0_i32, %c0_i32_0 : i32, i32
  }
  func.func @transform_8(%arg0: i32) -> (i32, i32) {
    %c0_i32 = arith.constant 0 : i32
    %c0_i32_0 = arith.constant 0 : i32
    %c0_i32_1 = arith.constant 0 : i32
    return %c0_i32, %c0_i32_0 : i32, i32
  }
  func.func @transform_9(%arg0: i32) -> (i32, i32) {
    %c0_i32 = arith.constant 0 : i32
    %c0_i32_0 = arith.constant 0 : i32
    %c0_i32_1 = arith.constant 0 : i32
    return %c0_i32, %c0_i32_0 : i32, i32
  }
  func.func @transform_10(%arg0: i32) -> (i32, i32, i32) {
    %c0_i32 = arith.constant 0 : i32
    %c0_i32_0 = arith.constant 0 : i32
    %c0_i32_1 = arith.constant 0 : i32
    return %arg0, %c0_i32, %c0_i32_0 : i32, i32, i32
  }
}

</mosaic_0001>

<bundles_post_ra>
// kernel: tpu_custom_call.1
= control target key start
LH: loop header
LB: loop body
LE: loop exit
PB: predicated region body
PF: predicated region fallthrough
CT: control target
= control target key end

     0   :  { %s3270_s0 = inlined_call_operand.vmem [shape: f32[128,50], index: 0, kind: input, shape index: {}]   ;;  %s3271_s1 = inlined_call_operand.hbm [shape: bf16[50,176], index: 1, kind: input, shape index: {}]   ;;  %s3272_s2 = inlined_call_operand.vmem [shape: bf16[176,176], index: 2, kind: input, shape index: {}]   ;;  %s3273_s3 = inlined_call_operand.vmem [shape: bf16[176,176], index: 3, kind: input, shape index: {}]   ;;  %s3274_s4 = inlined_call_operand.vmem [shape: bf16[176,16], index: 4, kind: input, shape index: {}]   ;;  %s3275_s5 = inlined_call_operand.hbm [shape: bf16[50,128], index: 5, kind: input, shape index: {}]   ;;  %s3276_s6 = inlined_call_operand.vmem [shape: bf16[64,192], index: 6, kind: input, shape index: {}]   ;;  %s3277_s7 = inlined_call_operand.vmem [shape: bf16[128,64], index: 7, kind: input, shape index: {}]   ;;  %s3278_s8 = inlined_call_operand.vmem [shape: bf16[64,16], index: 8, kind: input, shape index: {}]   ;;  %s3279_s9 = inlined_call_operand.hbm [shape: f32[8,256], index: 9, kind: input, shape index: {}]   ;;  %s3280_s10 = inlined_call_operand.hbm [shape: f32[4,1,32], index: 10, kind: output, shape index: {}]  }
   0x1   :  { %3289 = sst [smem:[#allocation17_spill]] %s3275_s5 }
   0x2   :  { %15 = vsyncpa [#allocation3], 0 }
   0x3   :  { %16 = vsyncpa [#allocation6], 0 }
   0x4   :  { %17 = vsyncpa [#allocation4], 0 }
   0x5   :  { %19 = vsyncpa [#allocation4 + $0x1], 0  ;;  %s2703_s13 = smov 0   ;;  %s2705_s14 = smov 0  }
   0x6   :  { %s2707_s15 = smov 0   ;;  %s2709_s16 = smov 0  }
   0x7 LB: > { %3290 = sst [smem:[#allocation12_spill]] %s2620_s13  ;;  %s2724_s17 = sadd.s32 4294967295, %s2632_s16   ;;  %s2632_s16 = sphi %s2709_s16, %s3310_s16   ;;  %s2628_s15 = sphi %s2707_s15, %s3312_s15   ;;  %s2624_s14 = sphi %s2705_s14, %s3314_s14   ;;  %s2620_s13 = sphi %s2703_s13, %s3313_s13  }
   0x8   : > { %3291 = sst [smem:[#allocation13_spill]] %s2628_s15  ;;  %s1999_s18 = sadd.s32 4294967294, %s2632_s16  }
   0x9   : > { %s2728_s19 = sadd.s32 1, %s2632_s16   ;;  %s247_s20 = sadd.s32 1, %s2628_s15 }
   0xa   : > { %3292 = sst [smem:[#allocation14_spill]] %s2728_s19  ;;  %s244_s21 = ssub.s32 %s2632_s16, %s2728_s19 }
   0xb   : > { %p257_p0 = scmp.ne.s32.totalorder %s2628_s15, %s2624_s14  ;;  %p245_p1 = scmp.eq.s32.totalorder %s244_s21, 0 }
   0xc   : > { %p258_p2 = scmp.eq.s32.totalorder %s2724_s17, 3  ;;  %p263_p3 = scmp.ne.s32.totalorder %s2624_s14, %s2620_s13 }
   0xd   : > { %p264_p4 = scmp.eq.s32.totalorder %s1999_s18, 3  ;;  %p2000_p7 = scmp.ge.s32.totalorder %s2632_s16, 1 }
   0xe   : > { %s2739_s22 = scalar_select %p245_p1, %s2628_s15, %s247_s20  }
   0xf   : > { %p2741_p5 = por %p258_p2, %p257_p0  ;;  %p2745_p6 = por %p264_p4, %p263_p3 }
  0x10   : > { %3293 = sst [smem:[#allocation15_spill]] %s2739_s22  ;;  %p271_p8 = scmp.lt.s32.totalorder %s2632_s16, 5 }
  0x11   : > { %s3294_s23 = scalar_select %p2741_p5, 1, 0 }
  0x12   : > { %s3295_s24 = scalar_select %p2745_p6, 1, 0 }
  0x13   : > { %p3281_p9 = scmp.eq.s32.totalorder %s2724_s17, 0  ;;  %p2752_p10 = pnand %p2000_p7, %p271_p8 }
  0x14   : > { %3296 = sst [smem:[#allocation16_spill]] %s3295_s24  ;;  %s2634_s26 = smov [#allocation5]  }
  0x15   : > { %s3297_s25 = scalar_select %p2752_p10, 1, 0 }
  0x16   : > { %s305_s27 = sshll.u32 %s2634_s26, 4  ;;  %p2228_p11 = pneg %p2752_p10  ;;  %s306_s27 = int_to_ptr.vmem [resolvable:$true] %s305_s27 }
  0x17   : > { %s2635_s29 = smov [#allocation2]   ;;  %s3299_s5 = sld [smem:[#allocation17_spill]] }
  0x18   : > { %p2760_p12 = pnand %p3281_p9, %p2228_p11  ;;  %s283_s30 = sshll.u32 %s2635_s29, 4  ;;  %s2764_s30 = int_to_ptr.vmem [resolvable:$true] %s283_s30 }
  0x1a   : > { %p2774_p0 = pneg %p2760_p12 }
  0x1d   : > { %s2478_s18 = scalar_lea.hbm %s3299_s5, 448 }
  0x1e   : > { %p2479_p13 = scmp.ne.s32.totalorder %s3299_s5, %s2478_s18  ;;  %p2485_p3 = scmp.lt.u32.totalorder %s2478_s18, %s3299_s5 }
  0x20   : > { %p2481_p1 = pnand %p2774_p0, %p2479_p13 }
  0x22   : > { %p2482_p2 = pneg %p2481_p1 }
  0x24   : > { %p2487_p4 = pnand %p2485_p3, %p2482_p2 }
  0x26   : > { %2490 = shalt.err (!%p2487_p4)
}
  0x27   : > { %s2491_s11 = scalar_lea.vmem %s306_s27, 448  ;;  %p2499_p9 = scmp.lt.s32.totalorder %s306_s27, %s306_s27 }
  0x28   : > { %p2492_p7 = scmp.ne.s32.totalorder %s306_s27, %s2491_s11  ;;  %p2500_p6 = scmp.lt.s32.totalorder %s2491_s11, %s2491_s11 }
  0x2a   : > { %p2494_p8 = pnand %p2492_p7, %p2774_p0  ;;  %p2501_p5 = por %p2500_p6, %p2499_p9 }
  0x2c   : > { %p2495_p11 = pneg %p2494_p8 }
  0x2e   : > { %p2502_p10 = pnand %p2501_p5, %p2495_p11 }
  0x30   : > { %2505 = shalt.err (!%p2502_p10)
}
  0x31   : > { %s2636_s12 = smov 64   ;;  %s2637_s20 = smov 4  }
  0x32   : > { %2234 = dma.hbm_to_vmem [thread:$0]  (!%p2760_p12), %s3299_s5, 448, %s306_s27, [#allocation6], %s2636_s12, %s2636_s12, %s2637_s20  }
  0x33   : > { %s2506_s15 = scalar_lea.hbm %s3271_s1, 896 }
  0x34   : > { %p2507_p13 = scmp.ne.s32.totalorder %s3271_s1, %s2506_s15  ;;  %p2513_p9 = scmp.lt.u32.totalorder %s2506_s15, %s3271_s1 }
  0x36   : > { %p2509_p5 = pnand %p2507_p13, %p2774_p0 }
  0x38   : > { %p2510_p6 = pneg %p2509_p5 }
  0x3a   : > { %p2515_p10 = pnand %p2513_p9, %p2510_p6 }
  0x3c   : > { %2518 = shalt.err (!%p2515_p10)
}
  0x3d   : > { %s2519_s27 = scalar_lea.vmem %s2764_s30, 896  ;;  %p2527_p4 = scmp.lt.s32.totalorder %s2764_s30, %s2764_s30 }
  0x3e   : > { %p2520_p1 = scmp.ne.s32.totalorder %s2764_s30, %s2519_s27  ;;  %p2528_p7 = scmp.lt.s32.totalorder %s2519_s27, %s2519_s27 }
  0x40   : > { %p2522_p2 = pnand %p2520_p1, %p2774_p0  ;;  %p2529_p8 = por %p2528_p7, %p2527_p4 }
  0x42   : > { %p2523_p3 = pneg %p2522_p2 }
  0x44   : > { %p2530_p11 = pnand %p2529_p8, %p2523_p3 }
  0x46   : > { %2533 = shalt.err (!%p2530_p11)
}
  0x47   : > { %s2638_s19 = smov 128   ;;  %s2639_s13 = smov 8  }
  0x48   : > { %2231 = dma.hbm_to_vmem [thread:$0]  (!%p2760_p12), %s3271_s1, 896, %s2764_s30, [#allocation3], %s2638_s19, %s2638_s19, %s2639_s13  }
  0x49   : > { %s2640_s12 = smov [#allocation7]   ;;  %s2534_s21 = scalar_lea.hbm %s3279_s9, 256 }
  0x4a   : > { %s328_s20 = sshll.u32 %s2640_s12, 4  ;;  %p2535_p13 = scmp.ne.s32.totalorder %s3279_s9, %s2534_s21  ;;  %s329_s20 = int_to_ptr.vmem [resolvable:$true] %s328_s20 }
  0x4b   : > { %p2541_p9 = scmp.lt.u32.totalorder %s2534_s21, %s3279_s9 }
  0x4c   : > { %p2537_p5 = pnand %p2535_p13, %p2774_p0 }
  0x4e   : > { %p2538_p6 = pneg %p2537_p5 }
  0x50   : > { %p2543_p10 = pnand %p2541_p9, %p2538_p6 }
  0x52   : > { %2546 = shalt.err (!%p2543_p10)
}
  0x53   : > { %s2547_s30 = scalar_lea.vmem %s329_s20, 256  ;;  %p2555_p4 = scmp.lt.s32.totalorder %s329_s20, %s329_s20 }
  0x54   : > { %p2548_p1 = scmp.ne.s32.totalorder %s329_s20, %s2547_s30  ;;  %p2556_p7 = scmp.lt.s32.totalorder %s2547_s30, %s2547_s30 }
  0x56   : > { %p2550_p2 = pnand %p2548_p1, %p2774_p0  ;;  %p2557_p8 = por %p2556_p7, %p2555_p4 }
  0x58   : > { %p2551_p3 = pneg %p2550_p2 }
  0x5a   : > { %p2558_p11 = pnand %p2557_p8, %p2551_p3 }
  0x5c   : > { %2561 = shalt.err (!%p2558_p11)
}
  0x5d   : > { %2237 = dma.hbm_to_vmem [thread:$0]  (!%p2760_p12), %s3279_s9, 256, %s329_s20, [#allocation6]  }
  0x5e   : > { %p3301_p13 = scmp.ne.s32.totalorder %s3297_s25, 0 }
  0x5f   : > { %p3302_p5 = scmp.eq.s32.totalorder (!%p3301_p13), %s2724_s17, 0 }
  0x60   : > { %350 = sbr.rel (%p3301_p13) target bundleno = 2252 (0x8cc), region = 60 }
  0x67   : > { %2607 = dma.done.wait (%p3302_p5), [#allocation3], 896   ;;  %p3303_p0 = pmov %p3302_p5 }
  0x69   : > { %2609 = vsyncadd (%p3303_p0), [#allocation3], 4294966400  ;;  %p3304_p6 = pmov %p3303_p0 }
  0x6a   : > { %p3305_p9 = pmov %p3303_p0 }
  0x6b   : > { %2611 = dma.done.wait (%p3304_p6), [#allocation6], 704  }
  0x6c   : > { %2613 = vsyncadd (%p3305_p9), [#allocation6], 4294966592  ;;  %s2009_s5 = sshll.u32 %s2724_s17, 2  ;;  %v2641_v0 = vmov 0   ;;  %v2314_v1 = vld [vmem:[#allocation2 + $0x4] ss:$8 sps:$4 sm:$0xff]   ;;  %v417_v57 = vlaneseq }
  0x6d   : > { %508 = vmatprep.mubr.bf16.mxu0 %v2641_v0  ;;  %p396_p12 = scmp.lt.s32.totalorder %s2009_s5, 15  ;;  %v2316_v2 = vld [vmem:[#allocation2] ss:$8 sps:$4 sm:$0xff]   ;;  %476 = vmatprep.subr.bf16.mxu0 %v2314_v1  ;;  %v2317_v3 = vld [vmem:[#allocation2 + $0x14] ss:$8 sps:$4 sm:$0xff]   ;;  %vm469_vm0 = vcmask 1040384  }
  0x6e   : > { %477 = vmatpush1.bf16.msra.mxu0 %v2316_v2  ;;  %v2319_v4 = vld [vmem:[#allocation2 + $0x10] ss:$8 sps:$4 sm:$0xff]   ;;  %v2320_v5 = vld [vmem:[#allocation2 + $0x24] ss:$8 sps:$4 sm:$0xff]   ;;  %v2322_v6 = vld [vmem:[#allocation2 + $0x20] ss:$8 sps:$4 sm:$0xff]  }
  0x6f   : > { %s3316_s5 = smov (!%p396_p12, %s2009_s5), 15  ;;  %478 = vmatprep.subr.bf16.mxu0 %v2317_v3  ;;  %v414_v7 = vld [vmem:[#allocation2 + $0x30] sm:$0x11]  ;;  %v2325_v8 = vld [vmem:[%s3272_s2 + $0x4] ss:$8 sps:$4 sm:$0xff]   ;;  %vm462_vm1 = vcmask 408576  }
  0x70   : > { %s2010_s25 = sshll.u32 %s3316_s5, 3  ;;  %v2327_v9 = vld [vmem:[%s3272_s2] ss:$8 sps:$4 sm:$0xff]   ;;  %v2328_v10 = vld [vmem:[%s3272_s2 + $0x14] ss:$8 sps:$4 sm:$0xff]   ;;  %v2018_v11 = vcombine.high %v414_v7, %v414_v7  ;;  %v2017_v12 = vcombine.low %v414_v7, %v414_v7  ;;  %693 = vmatprep.subr.bf16.mxu1 %v2325_v8  ;;  %v418_v58 = vshrl.u32 %v417_v57, 7 }
  0x71   : > { %s399_s22 = scalar_lea.vmem %s3270_s0, %s2010_s25  ;;  %694 = vmatpush1.bf16.msra.mxu1 %v2327_v9  ;;  %v2330_v13 = vld [vmem:[%s3272_s2 + $0x10] ss:$8 sps:$4 sm:$0xff]   ;;  %v2331_v15 = vld [vmem:[%s3272_s2 + $0x24] ss:$8 sps:$4 sm:$0xff]   ;;  %v2333_v18 = vld [vmem:[%s3272_s2 + $0x20] ss:$8 sps:$4 sm:$0xff]  }
  0x72   : > { %479 = vmatpush1.bf16.msra.mxu0 %v2319_v4  ;;  %v402_v14 = vld [vmem:[%s399_s22] sm:$0xff]  ;;  %695 = vmatprep.subr.bf16.mxu1 %v2328_v10  ;;  %v403_v16 = vld [vmem:[%s399_s22 + $0x8] sm:$0xff]  ;;  %v471_v17 = vsel %vm469_vm0, %v2017_v12, 0  ;;  %v2334_v20 = vld [vmem:[%s3272_s2 + $0x34] ss:$8 sps:$4 sm:$0xff]   ;;  %v2978_v59 = vsub.s32 0, %v418_v58 }
  0x73   : > { %480 = vmatprep.subr.bf16.mxu0 %v2320_v5  ;;  %v2866_v19 = vpack.c.bf16 %v403_v16, %v402_v14  ;;  %v404_v21 = vld [vmem:[%s399_s22 + $0x10] sm:$0xff]  ;;  %v405_v22 = vld [vmem:[%s399_s22 + $0x18] sm:$0xff]  ;;  %v2337_v24 = vld [vmem:[%s3272_s2 + $0x44] ss:$8 sps:$4 sm:$0xff]   ;;  %v2980_v61 = vsub.s32 1, %v418_v58  ;;  %vm686_vm2 = vcmask 392192  }
  0x74   : > { %v2336_v23 = vld [vmem:[%s3272_s2 + $0x30] ss:$8 sps:$4 sm:$0xff]   ;;  %v2339_v25 = vld [vmem:[%s3272_s2 + $0x40] ss:$8 sps:$4 sm:$0xff]   ;;  %v2340_v26 = vld [vmem:[%s3272_s2 + $0x54] ss:$8 sps:$4 sm:$0xff]   ;;  %v2886_v27 = vpack.c.bf16 %v405_v22, %v404_v21 }
  0x75   : > { %696 = vmatpush1.bf16.msra.mxu1 %v2330_v13  ;;  %v2342_v28 = vld [vmem:[%s3272_s2 + $0x50] ss:$8 sps:$4 sm:$0xff]   ;;  %v2343_v29 = vld [vmem:[%s3272_s2 + $0x64] ss:$8 sps:$4 sm:$0xff]   ;;  %v2345_v30 = vld [vmem:[%s3272_s2 + $0x60] ss:$8 sps:$4 sm:$0xff]  }
  0x76   : > { %481 = vmatpush1.bf16.msra.mxu0 %v2322_v6  ;;  %697 = vmatprep.subr.bf16.mxu1 %v2331_v15  ;;  %v2346_v31 = vld [vmem:[%s3272_s2 + $0x74] ss:$8 sps:$4 sm:$0xff]   ;;  %v2348_v32 = vld [vmem:[%s3272_s2 + $0x70] ss:$8 sps:$4 sm:$0xff]   ;;  %v2349_v33 = vld [vmem:[%s3272_s2 + $0x84] ss:$8 sps:$4 sm:$0xff]  }
  0x77   : > { %2019 = vmatprep.subr.msk.bf16.mxu0 %vm469_vm0, %v2018_v11  ;;  %v2351_v34 = vld [vmem:[%s3272_s2 + $0x80] ss:$8 sps:$4 sm:$0xff]   ;;  %v2352_v35 = vld [vmem:[%s3272_s2 + $0x94] ss:$8 sps:$4 sm:$0xff]   ;;  %v2354_v36 = vld [vmem:[%s3272_s2 + $0x90] ss:$8 sps:$4 sm:$0xff]  }
  0x78   : > { %v2355_v37 = vld [vmem:[%s3272_s2 + $0xa4] ss:$8 sps:$4 sm:$0xff]   ;;  %v2357_v38 = vld [vmem:[%s3272_s2 + $0xa0] ss:$8 sps:$4 sm:$0xff]   ;;  %v2363_v41 = vld [vmem:[%s3273_s3 + $0x14] ss:$8 sps:$4 sm:$0xff]  }
  0x79   : > { %698 = vmatpush1.bf16.msra.mxu1 %v2333_v18  ;;  %v2358_v39 = vld [vmem:[%s3273_s3] ss:$8 sps:$4 sm:$0xff]   ;;  %v2360_v40 = vld [vmem:[%s3273_s3 + $0x4] ss:$8 sps:$4 sm:$0xff]   ;;  %v2361_v42 = vld [vmem:[%s3273_s3 + $0x10] ss:$8 sps:$4 sm:$0xff]  }
  0x7a   : > { %483 = vmatpush1.bf16.msra.mxu0 %v471_v17  ;;  %699 = vmatprep.subr.bf16.mxu1 %v2334_v20  ;;  %v2366_v43 = vld [vmem:[%s3273_s3 + $0x24] ss:$8 sps:$4 sm:$0xff]   ;;  %v2364_v44 = vld [vmem:[%s3273_s3 + $0x20] ss:$8 sps:$4 sm:$0xff]   ;;  %v2369_v45 = vld [vmem:[%s3273_s3 + $0x34] ss:$8 sps:$4 sm:$0xff]  }
  0x7b   : > { %909 = vmatprep.subr.bf16.mxu0 %v2360_v40  ;;  %v2367_v46 = vld [vmem:[%s3273_s3 + $0x30] ss:$8 sps:$4 sm:$0xff]   ;;  %v2372_v47 = vld [vmem:[%s3273_s3 + $0x44] ss:$8 sps:$4 sm:$0xff]   ;;  %v2370_v48 = vld [vmem:[%s3273_s3 + $0x40] ss:$8 sps:$4 sm:$0xff]  }
  0x7c   : > { %v2375_v49 = vld [vmem:[%s3273_s3 + $0x54] ss:$8 sps:$4 sm:$0xff]   ;;  %v2373_v50 = vld [vmem:[%s3273_s3 + $0x50] ss:$8 sps:$4 sm:$0xff]   ;;  %v2378_v51 = vld [vmem:[%s3273_s3 + $0x64] ss:$8 sps:$4 sm:$0xff]  }
  0x7d   : > { %2020 = vmatmul.mubr.msk.bf16.vlgmr.msra.gmra.mrb[0].mxu0 %vm462_vm1, %v2866_v19  ;;  %700 = vmatpush1.bf16.msra.mxu1 %v2336_v23  ;;  %v2376_v52 = vld [vmem:[%s3273_s3 + $0x60] ss:$8 sps:$4 sm:$0xff]   ;;  %v2381_v53 = vld [vmem:[%s3273_s3 + $0x74] ss:$8 sps:$4 sm:$0xff]   ;;  %v2379_v54 = vld [vmem:[%s3273_s3 + $0x70] ss:$8 sps:$4 sm:$0xff]  }
  0x7e   : > { %518 = vmatprep.mubr.bf16.mxu0 %v2641_v0  ;;  %701 = vmatprep.subr.bf16.mxu1 %v2337_v24  ;;  %v2384_v55 = vld [vmem:[%s3273_s3 + $0x84] ss:$8 sps:$4 sm:$0xff]   ;;  %v2382_v56 = vld [vmem:[%s3273_s3 + $0x80] ss:$8 sps:$4 sm:$0xff]   ;;  %vm1284_vm3 = vcmask 523264   ;;  %s2642_s11 = smov 64  }
  0x7f   : > { %910 = vmatpush1.bf16.msra.mxu0 %v2358_v39  ;;  %v415_v60 = vld [vmem:[#allocation7] ss:$8 sm:$0x3]  ;;  %v2399_v40 = vld [vmem:[%s3274_s4 + $0x20] sm:$0xff]   ;;  %vm2644_vm4 = vmmov 0   ;;  %vm1812_vm5 = vcmask 130048  }
  0x80   : > { %911 = vmatprep.subr.bf16.mxu0 %v2363_v41  ;;  %v420_v62 = vrot.slane %v415_v60, %v2978_v59  ;;  %v424_v63 = vrot.slane %v415_v60, %v2980_v61  ;;  %v2398_v39 = vld [vmem:[%s3274_s4 + $0x18] sm:$0xff]   ;;  %v2400_v41 = vld [vmem:[%s3274_s4 + $0x28] sm:$0xff]   ;;  %vm2207_vm6 = vmpackc.low %vm1812_vm5, %vm1812_vm5  ;;  %s393_s26 = sand.u32 1, %s2624_s14   ;;  %s2120_s15 = sshll.u32 %s2724_s17, 4  ;;  %vm1898_vm7 = vcmask 253952  }
  0x81   : > { %702 = vmatpush1.bf16.msra.mxu1 %v2339_v25  ;;  %s394_s24 = scalar_lea.vmem [#allocation8], %s393_s26  ;;  %s3228_s18 = scalar_lea.hbm %s3280_s10, %s2120_s15 }
  0x82   : > { %703 = vmatprep.subr.bf16.mxu1 %v2340_v26  ;;  %s1913_s12 = sshll.u32 %s394_s24, 4  ;;  %s1901_s21 = scalar_lea.sflag [#allocation4], %s393_s26  ;;  %s3230_s12 = int_to_ptr.vmem [resolvable:$true] %s1913_s12 }
  0x83   : > { %912 = vmatpush1.bf16.msra.mxu0 %v2361_v42  ;;  %v2401_v42 = vld [vmem:[%s3274_s4 + $0x30] sm:$0xff]   ;;  %s2562_s29 = scalar_lea.vmem %s3230_s12, 16  ;;  %p3306_p1 = scmp.ne.s32.totalorder %s3294_s23, 0 }
  0x84   : > { %913 = vmatprep.subr.bf16.mxu0 %v2366_v43  ;;  %v2402_v43 = vld [vmem:[%s3274_s4 + $0x38] sm:$0xff]   ;;  %p2563_p10 = scmp.ne.s32.totalorder %s3230_s12, %s2562_s29  ;;  %s2647_s17 = smov [#allocation8]  }
  0x85   : > { %2021 = vmatmul.mubr.msk.bf16.gmra.mrb[4].mxu0 %vm462_vm1, %v2886_v27  ;;  %704 = vmatpush1.bf16.msra.mxu1 %v2342_v28  ;;  %s2566_s27 = sshll.u32 %s2647_s17, 4  ;;  %s2567_s27 = int_to_ptr.vmem [resolvable:$false] %s2566_s27 }
  0x86   : > { %705 = vmatprep.subr.bf16.mxu1 %v2343_v29  ;;  %p2564_p2 = pnand %p2563_p10, %p3306_p1  ;;  %s2568_s30 = scalar_lea.vmem %s2567_s27, 32 }
  0x87   : > { %914 = vmatpush1.bf16.msra.mxu0 %v2364_v44  ;;  %v564_v44 = vld [vmem:[#allocation7 + $0x1] ss:$8 sm:$0x3]  ;;  %p2569_p4 = scmp.lt.s32.totalorder %s3230_s12, %s2567_s27  ;;  %p2570_p7 = scmp.lt.s32.totalorder %s2568_s30, %s2562_s29 }
  0x88   : > { %915 = vmatprep.subr.bf16.mxu0 %v2369_v45  ;;  %v569_v45 = vrot.slane %v564_v44, %v2978_v59  ;;  %p2565_p3 = pneg %p2564_p2 }
  0x89   : > { %706 = vmatpush1.bf16.msra.mxu1 %v2345_v30  ;;  %p2571_p8 = por %p2570_p7, %p2569_p4 }
  0x8a   : > { %707 = vmatprep.subr.bf16.mxu1 %v2346_v31  ;;  %v2387_v31 = vld [vmem:[%s3273_s3 + $0x94] ss:$8 sps:$4 sm:$0xff]  }
  0x8b   : > { %916 = vmatpush1.bf16.msra.mxu0 %v2367_v46  ;;  %v573_v46 = vrot.slane %v564_v44, %v2980_v61  ;;  %p2572_p11 = pnand %p2571_p8, %p2565_p3 }
  0x8c   : > { %917 = vmatprep.subr.bf16.mxu0 %v2372_v47 }
  0x8d   : > { %708 = vmatpush1.bf16.msra.mxu1 %v2348_v32  ;;  %v2385_v32 = vld [vmem:[%s3273_s3 + $0x90] ss:$8 sps:$4 sm:$0xff]  }
  0x8e   : > { %709 = vmatprep.subr.bf16.mxu1 %v2349_v33  ;;  %v2390_v33 = vld [vmem:[%s3273_s3 + $0xa4] ss:$8 sps:$4 sm:$0xff]  }
  0x8f   : > { %918 = vmatpush1.bf16.msra.mxu0 %v2370_v48 }
  0x90   : > { %919 = vmatprep.subr.bf16.mxu0 %v2375_v49 }
  0x91   : > { %710 = vmatpush1.bf16.msra.mxu1 %v2351_v34  ;;  %v2388_v34 = vld [vmem:[%s3273_s3 + $0xa0] ss:$8 sps:$4 sm:$0xff]  }
  0x92   : > { %711 = vmatprep.subr.bf16.mxu1 %v2352_v35  ;;  %v2391_v35 = vld [vmem:[#allocation5] sm:$0xff]  }
  0x93   : > { %920 = vmatpush1.bf16.msra.mxu0 %v2373_v50 }
  0x94   : > { %921 = vmatprep.subr.bf16.mxu0 %v2378_v51 }
  0x95   : > { %712 = vmatpush1.bf16.msra.mxu1 %v2354_v36  ;;  %v2395_v36 = vld [vmem:[%s3274_s4] sm:$0xff]  }
  0x96   : > { %713 = vmatprep.subr.bf16.mxu1 %v2355_v37  ;;  %v2396_v37 = vld [vmem:[%s3274_s4 + $0x8] sm:$0xff]  }
  0x97   : > { %922 = vmatpush1.bf16.msra.mxu0 %v2376_v52 }
  0x98   : > { %923 = vmatprep.subr.bf16.mxu0 %v2381_v53 }
  0x99   : > { %714 = vmatpush1.bf16.msra.mxu1 %v2357_v38  ;;  %v2397_v38 = vld [vmem:[%s3274_s4 + $0x10] sm:$0xff]  }
  0x9a   : > { %1069 = vmatprep.subr.bf16.mxu1 %v2641_v0 }
  0x9b   : > { %924 = vmatpush1.bf16.msra.mxu0 %v2379_v54 }
  0x9c   : > { %925 = vmatprep.subr.bf16.mxu0 %v2384_v55 }
  0x9f   : > { %926 = vmatpush1.bf16.msra.mxu0 %v2382_v56 }
  0xa0   : > { %927 = vmatprep.subr.bf16.mxu0 %v2387_v31 }
  0xa3   : > { %928 = vmatpush1.bf16.msra.mxu0 %v2385_v32 }
  0xa4   : > { %929 = vmatprep.subr.bf16.mxu0 %v2390_v33 }
  0xa7   : > { %930 = vmatpush1.bf16.msra.mxu0 %v2388_v34 }
  0xa8   : > { %2150 = vmatprep.subr.bf16.mxu0 %v2391_v35 }
 0x150   : > { %v510_v1 = vpop.f32.mrb[0].mxu0 }
 0x151   : > { %v511_v2 = vadd.f32 %v510_v1, %v420_v62  ;;  %v512_v3 = vpop.f32.mrb[1].mxu0 }
 0x152   : > { %v513_v4 = vadd.f32 %v512_v3, %v424_v63  ;;  %v514_v5 = vpop.f32.mrb[2].mxu0  ;;  %v2392_v3 = vld [vmem:[#allocation5 + $0x8] sm:$0xff]  }
 0x153   : > { %v515_v6 = vadd.f32 %v514_v5, %v420_v62  ;;  %v516_v7 = vpop.f32.mrb[3].mxu0  ;;  %v529_v9 = vmax.f32 %v511_v2, 0.0 }
 0x154   : > { %v517_v8 = vadd.f32 %v516_v7, %v424_v63  ;;  %v530_v11 = vmax.f32 %v513_v4, 0.0 }
 0x155   : > { %v531_v10 = vmax.f32 %v515_v6, 0.0 }
 0x156   : > { %v532_v12 = vmax.f32 %v517_v8, 0.0 }
 0x157   : > { %v537_v13 = vpack.c.bf16 %v531_v10, %v529_v9 }
 0x158   : > { %v520_v14 = vpop.f32.mrb[4].mxu0  ;;  %v538_v15 = vpack.c.bf16 %v532_v12, %v530_v11  ;;  %v2393_v11 = vld [vmem:[#allocation5 + $0x10] sm:$0xff]  }
 0x159   : > { %v521_v16 = vadd.f32 %v520_v14, %v420_v62  ;;  %v522_v17 = vpop.f32.mrb[5].mxu0 }
 0x15a   : > { %v523_v18 = vadd.f32 %v522_v17, %v424_v63  ;;  %v524_v20 = vpop.f32.mrb[6].mxu0  ;;  %2044 = vmatprep.mubr.msk.bf16.mxu1 %vm686_vm2, %v538_v15 }
 0x15b   : > { %v525_v21 = vadd.f32 %v524_v20, %v420_v62  ;;  %v526_v22 = vpop.f32.mrb[7].mxu0  ;;  %726 = vmatmul.mubr.bf16.vlgmr.msra.gmra.mrb[0].mxu1 %v537_v13  ;;  %v533_v24 = vmax.f32 %v521_v16, 0.0  ;;  %v2394_v16 = vld [vmem:[#allocation5 + $0x18] ss:$0 sps:$4 sm:$0x11]  }
 0x15c   : > { %v527_v23 = vadd.f32 %v526_v22, %v424_v63  ;;  %v534_v26 = vmax.f32 %v523_v18, 0.0  ;;  %1070 = vmatpush1.bf16.msra.mxu1 %v2395_v36  ;;  %v1148_v17 = vsel %vm469_vm0, %v2394_v16, 0  ;;  %v2403_v18 = vld [vmem:[%s3274_s4 + $0x40] sm:$0xff]   ;;  %v2411_v22 = vld [vmem:[%s3276_s6 + $0x14] ss:$8 sps:$4 sm:$0xff]  }
 0x15d   : > { %v535_v25 = vmax.f32 %v525_v21, 0.0  ;;  %1071 = vmatprep.subr.bf16.mxu1 %v2641_v0  ;;  %v2408_v20 = vld [vmem:[%s3276_s6 + $0x4] ss:$8 sps:$4 sm:$0xff]   ;;  %v2406_v21 = vld [vmem:[%s3276_s6] ss:$8 sps:$4 sm:$0xff]  }
 0x15e   : > { %v536_v28 = vmax.f32 %v527_v23, 0.0  ;;  %v2409_v23 = vld [vmem:[%s3276_s6 + $0x10] ss:$8 sps:$4 sm:$0xff]  }
 0x15f   : > { %v539_v29 = vpack.c.bf16 %v535_v25, %v533_v24  ;;  %v2414_v24 = vld [vmem:[%s3276_s6 + $0x24] ss:$8 sps:$4 sm:$0xff]   ;;  %v2412_v25 = vld [vmem:[%s3276_s6 + $0x20] ss:$8 sps:$4 sm:$0xff]  }
 0x160   : > { %v540_v30 = vpack.c.bf16 %v536_v28, %v534_v26  ;;  %1072 = vmatpush1.bf16.msra.mxu1 %v2396_v37  ;;  %v2417_v26 = vld [vmem:[%s3276_s6 + $0x34] ss:$8 sps:$4 sm:$0xff]   ;;  %v2415_v28 = vld [vmem:[%s3276_s6 + $0x30] ss:$8 sps:$4 sm:$0xff]  }
 0x161   : > { %1073 = vmatprep.subr.bf16.mxu1 %v2641_v0 }
 0x162   : > { %2045 = vmatprep.mubr.msk.bf16.mxu1 %vm686_vm2, %v540_v30 }
 0x163   : > { %736 = vmatmul.mubr.bf16.gmra.mrb[4].mxu1 %v539_v29  ;;  %v781_v29 = vld [vmem:[#allocation7 + $0x2] ss:$8 sm:$0x3] }
 0x164   : > { %1074 = vmatpush1.bf16.msra.mxu1 %v2397_v38  ;;  %v786_v30 = vrot.slane %v781_v29, %v2978_v59  ;;  %v790_v31 = vrot.slane %v781_v29, %v2980_v61  ;;  %v1232_v29 = vld [vmem:[#allocation7 + $0x5] ss:$8 sm:$0x3] }
 0x165   : > { %1075 = vmatprep.subr.bf16.mxu1 %v2641_v0 }
 0x168   : > { %1076 = vmatpush1.bf16.msra.mxu1 %v2398_v39 }
 0x169   : > { %1077 = vmatprep.subr.bf16.mxu1 %v2641_v0 }
 0x16c   : > { %1078 = vmatpush1.bf16.msra.mxu1 %v2399_v40 }
 0x16d   : > { %1079 = vmatprep.subr.bf16.mxu1 %v2641_v0 }
 0x170   : > { %1080 = vmatpush1.bf16.msra.mxu1 %v2400_v41 }
 0x171   : > { %1081 = vmatprep.subr.bf16.mxu1 %v2641_v0 }
 0x174   : > { %1082 = vmatpush1.bf16.msra.mxu1 %v2401_v42 }
 0x175   : > { %1083 = vmatprep.subr.bf16.mxu1 %v2641_v0 }
 0x178   : > { %1084 = vmatpush1.bf16.msra.mxu1 %v2402_v43 }
 0x179   : > { %1085 = vmatprep.subr.bf16.mxu1 %v2641_v0 }
 0x17c   : > { %1086 = vmatpush1.bf16.msra.mxu1 %v2403_v18 }
 0x17d   : > { %1087 = vmatprep.subr.bf16.mxu1 %v2641_v0 }
 0x22e   : > { %v727_v47 = vpop.f32.mrb[0].mxu1 }
 0x22f   : > { %v728_v48 = vadd.f32 %v727_v47, %v569_v45  ;;  %v729_v49 = vpop.f32.mrb[1].mxu1 }
 0x230   : > { %v730_v50 = vadd.f32 %v729_v49, %v573_v46  ;;  %v731_v51 = vpop.f32.mrb[2].mxu1 }
 0x231   : > { %v732_v52 = vadd.f32 %v731_v51, %v569_v45  ;;  %v733_v53 = vpop.f32.mrb[3].mxu1  ;;  %v746_v55 = vmax.f32 %v728_v48, 0.0 }
 0x232   : > { %v734_v54 = vadd.f32 %v733_v53, %v573_v46  ;;  %v747_v57 = vmax.f32 %v730_v50, 0.0 }
 0x233   : > { %v748_v56 = vmax.f32 %v732_v52, 0.0 }
 0x234   : > { %v749_v58 = vmax.f32 %v734_v54, 0.0 }
 0x235   : > { %v754_v60 = vpack.c.bf16 %v748_v56, %v746_v55 }
 0x236   : > { %v755_v62 = vpack.c.bf16 %v749_v58, %v747_v57  ;;  %v737_v63 = vpop.f32.mrb[4].mxu1  ;;  %v1125_v58 = vld [vmem:[#allocation7 + $0x4] ss:$0 sm:$0xff] }
 0x237   : > { %v738_v1 = vadd.f32 %v737_v63, %v569_v45  ;;  %v739_v2 = vpop.f32.mrb[5].mxu1 }
 0x238   : > { %v740_v4 = vadd.f32 %v739_v2, %v573_v46  ;;  %v741_v5 = vpop.f32.mrb[6].mxu1  ;;  %2068 = vmatprep.mubr.msk.bf16.mxu0 %vm686_vm2, %v755_v62 }
 0x239   : > { %v742_v6 = vadd.f32 %v741_v5, %v569_v45  ;;  %v743_v7 = vpop.f32.mrb[7].mxu1  ;;  %942 = vmatmul.mubr.bf16.vlgmr.msra.gmra.mrb[8].mxu0 %v754_v60  ;;  %v750_v9 = vmax.f32 %v738_v1, 0.0 }
 0x23a   : > { %v744_v8 = vadd.f32 %v743_v7, %v573_v46  ;;  %2151 = vmatpush3.bf16.msra.mxu0 %v2391_v35  ;;  %v751_v12 = vmax.f32 %v740_v4, 0.0 }
 0x23b   : > { %v752_v10 = vmax.f32 %v742_v6, 0.0  ;;  %2152 = vmatprep.subr.bf16.mxu0 %v2392_v3 }
 0x23c   : > { %v753_v13 = vmax.f32 %v744_v8, 0.0 }
 0x23d   : > { %v756_v14 = vpack.c.bf16 %v752_v10, %v750_v9 }
 0x23e   : > { %v757_v15 = vpack.c.bf16 %v753_v13, %v751_v12  ;;  %2153 = vmatpush3.bf16.msra.mxu0 %v2392_v3 }
 0x23f   : > { %2154 = vmatprep.subr.bf16.mxu0 %v2393_v11 }
 0x240   : > { %2069 = vmatprep.mubr.msk.bf16.mxu0 %vm686_vm2, %v757_v15 }
 0x241   : > { %952 = vmatmul.mubr.bf16.gmra.mrb[12].mxu0 %v756_v14 }
 0x242   : > { %2155 = vmatpush3.bf16.msra.mxu0 %v2393_v11  ;;  %2158 = vmatprep.mubr.msk.bf16.mxu0 %vm462_vm1, %v2866_v19  ;;  %v2404_v19 = vld [vmem:[%s3274_s4 + $0x48] sm:$0xff]  }
 0x243   : > { %2213 = vmatprep.subr.msk.bf16.mxu0 %vm469_vm0, %v2394_v16  ;;  %1088 = vmatpush1.bf16.msra.mxu1 %v2404_v19 }
 0x244   : > { %1089 = vmatprep.subr.bf16.mxu1 %v2641_v0 }
 0x246   : > { %2157 = vmatpush3.bf16.msra.mxu0 %v1148_v17 }
 0x247   : > { %1297 = vmatprep.subr.bf16.mxu0 %v2408_v20 }
 0x249   : > { %2159 = vmatmul.mubr.msk.bf16.vlgmr.msra.gmra.mrb[16].mxu0 %vm462_vm1, %v2886_v27  ;;  %v2405_v27 = vld [vmem:[%s3274_s4 + $0x50] sm:$0xff]  }
 0x24a   : > { %1329 = vmatprep.mubr.bf16.mxu0 %v2641_v0  ;;  %1090 = vmatpush1.bf16.msra.mxu1 %v2405_v27 }
 0x24b   : > { %1298 = vmatpush1.bf16.msra.mxu0 %v2406_v21 }
 0x24c   : > { %1299 = vmatprep.subr.bf16.mxu0 %v2411_v22 }
 0x24f   : > { %1300 = vmatpush1.bf16.msra.mxu0 %v2409_v23 }
 0x250   : > { %1301 = vmatprep.subr.bf16.mxu0 %v2414_v24 }
 0x253   : > { %1302 = vmatpush1.bf16.msra.mxu0 %v2412_v25 }
 0x254   : > { %1303 = vmatprep.subr.bf16.mxu0 %v2417_v26 }
 0x257   : > { %1304 = vmatpush1.bf16.msra.mxu0 %v2415_v28 }
 0x30c   : > { %v943_v32 = vpop.f32.mrb[8].mxu0 }
 0x30d   : > { %v944_v33 = vadd.f32 %v943_v32, %v786_v30  ;;  %v945_v34 = vpop.f32.mrb[9].mxu0 }
 0x30e   : > { %v946_v35 = vadd.f32 %v945_v34, %v790_v31  ;;  %v947_v36 = vpop.f32.mrb[10].mxu0 }
 0x30f   : > { %v948_v37 = vadd.f32 %v947_v36, %v786_v30  ;;  %v949_v38 = vpop.f32.mrb[11].mxu0  ;;  %v962_v40 = vmax.f32 %v944_v33, 0.0  ;;  %v1241_v33 = vrot.slane %v1232_v29, %v2980_v61 }
 0x310   : > { %v950_v39 = vadd.f32 %v949_v38, %v790_v31  ;;  %v963_v42 = vmax.f32 %v946_v35, 0.0 }
 0x311   : > { %v964_v41 = vmax.f32 %v948_v37, 0.0 }
 0x312   : > { %v965_v43 = vmax.f32 %v950_v39, 0.0 }
 0x313   : > { %v970_v44 = vpack.c.bf16 %v964_v41, %v962_v40 }
 0x314   : > { %v971_v45 = vpack.c.bf16 %v965_v43, %v963_v42  ;;  %v953_v46 = vpop.f32.mrb[12].mxu0 }
 0x315   : > { %v954_v47 = vadd.f32 %v953_v46, %v786_v30  ;;  %v955_v48 = vpop.f32.mrb[13].mxu0 }
 0x316   : > { %v956_v49 = vadd.f32 %v955_v48, %v790_v31  ;;  %v957_v50 = vpop.f32.mrb[14].mxu0  ;;  %2081 = vmatprep.mubr.msk.bf16.mxu1 %vm686_vm2, %v971_v45 }
 0x317   : > { %v958_v51 = vadd.f32 %v957_v50, %v786_v30  ;;  %v959_v52 = vpop.f32.mrb[15].mxu0  ;;  %1102 = vmatmul.mubr.bf16.vlgmr.msra.gmra.mrb[8].mxu1 %v970_v44  ;;  %v966_v54 = vmax.f32 %v954_v47, 0.0 }
 0x318   : > { %v960_v53 = vadd.f32 %v959_v52, %v790_v31  ;;  %v967_v56 = vmax.f32 %v956_v49, 0.0 }
 0x319   : > { %v968_v55 = vmax.f32 %v958_v51, 0.0 }
 0x31a   : > { %v969_v57 = vmax.f32 %v960_v53, 0.0 }
 0x31b   : > { %v972_v60 = vpack.c.bf16 %v968_v55, %v966_v54 }
 0x31c   : > { %v973_v62 = vpack.c.bf16 %v969_v57, %v967_v56  ;;  %v2160_v63 = vpop.f32.mrb[16].mxu0 }
 0x31d   : > { %v1193_v1 = vadd.f32 %v2160_v63, %v1125_v58  ;;  %v1184_v2 = vpop.f32.mrb[17].mxu0 }
 0x31e   : > { %v1185_v3 = vadd.f32 %v1184_v2, %v1125_v58  ;;  %2082 = vmatprep.mubr.msk.bf16.mxu1 %vm686_vm2, %v973_v62  ;;  %v2161_v4 = vpop.f32.mrb[18].mxu0 }
 0x31f   : > { %v1196_v5 = vadd.f32 %v2161_v4, %v1125_v58  ;;  %1110 = vmatmul.mubr.bf16.gmra.mrb[12].mxu1 %v972_v60  ;;  %v1187_v6 = vpop.f32.mrb[19].mxu0  ;;  %v1201_v8 = vmax.f32 %v1193_v1, 0.0 }
 0x320   : > { %v1188_v7 = vadd.f32 %v1187_v6, %v1125_v58  ;;  %v1199_v10 = vmax.f32 %v1185_v3, 0.0 }
 0x321   : > { %v1202_v9 = vmax.f32 %v1196_v5, 0.0 }
 0x322   : > { %v1200_v11 = vmax.f32 %v1188_v7, 0.0 }
 0x323   : > { %v2299_v12 = vpack.i.bf16 %v1202_v9, %v1201_v8  ;;  %v1220_v13 = vpack.c.bf16 %v1202_v9, %v1201_v8 }
 0x324   : > { %v1219_v14 = vpack.c.bf16 %v1200_v11, %v1199_v10  ;;  %v2294_v15 = vpack.i.bf16 %v1200_v11, %v1199_v10 }
 0x326   : > { %2295 = vrot.lane.b32.xlu0 %v2294_v15, %s2642_s11  ;;  %2097 = vmatmul.mubr.msk.bf16.vlgmr.msra.gmra.mrb[20].mxu0 %vm1284_vm3, %v1219_v14 }
 0x327   : > { %1339 = vmatprep.mubr.bf16.mxu0 %v2641_v0 }
 0x32a   : > { %2300 = vrot.lane.b32.xlu0 %v2299_v12, %s2642_s11 }
 0x32e   : > { %2098 = vmatmul.mubr.msk.bf16.gmra.mrb[24].mxu0 %vm1284_vm3, %v1220_v13 }
 0x32f   : > { %1349 = vmatprep.mubr.bf16.mxu0 %v2641_v0 }
 0x398   : > { %v2296_v16 = vpop.permute.xlu0 %2295 }
 0x399   : > { %v2298_v17 = vunpack.i.h.bf16 %v2296_v16  ;;  %v2297_v18 = vunpack.i.l.bf16 %v2296_v16 }
 0x39b   : > { %v1221_v19 = vpack.c.bf16 %v2298_v17, %v2297_v18 }
 0x39c   : > { %v2301_v27 = vpop.permute.xlu0 %2300 }
 0x39d   : > { %2099 = vmatmul.mubr.msk.bf16.gmra.mrb[28].mxu0 %vm1284_vm3, %v1221_v19  ;;  %v2303_v20 = vunpack.i.h.bf16 %v2301_v27  ;;  %v2302_v21 = vunpack.i.l.bf16 %v2301_v27 }
 0x39e   : > { %1359 = vmatprep.mubr.bf16.mxu0 %v2641_v0  ;;  %v1237_v0 = vrot.slane %v1232_v29, %v2978_v59 }
 0x39f   : > { %v1222_v22 = vpack.c.bf16 %v2303_v20, %v2302_v21 }
 0x3a5   : > { %2100 = vmatmul.mubr.msk.bf16.gmra.mrb[32].mxu0 %vm1284_vm3, %v1222_v22 }
 0x3ea   : > { %v3089_v23 = vpop.f32.mrb[8].mxu1 }
 0x3eb   : > { %v1105_v24 = vpop.f32.mrb[9].mxu1 }
 0x3ec   : > { %v3091_v25 = vpop.f32.mrb[10].mxu1 }
 0x3ed   : > { %v1108_v26 = vpop.f32.mrb[11].mxu1 }
 0x3f2   : > { %v3093_v28 = vpop.f32.mrb[12].mxu1 }
 0x3f3   : > { %v1113_v30 = vpop.f32.mrb[13].mxu1 }
 0x3f4   : > { %v3095_v31 = vpop.f32.mrb[14].mxu1 }
 0x3f5   : > { %v1116_v32 = vpop.f32.mrb[15].mxu1 }
 0x3f9   : > { %v1331_v34 = vpop.f32.mrb[20].mxu0 }
 0x3fa   : > { %v3099_v35 = vadd.f32 %v1331_v34, %v1237_v0  ;;  %v1333_v36 = vpop.f32.mrb[21].mxu0 }
 0x3fb   : > { %v3101_v37 = vadd.f32 %v1333_v36, %v1241_v33  ;;  %v1335_v38 = vpop.f32.mrb[22].mxu0 }
 0x3fc   : > { %v1337_v39 = vpop.f32.mrb[23].mxu0  ;;  %1374 = vrot.lane.b32.xlu1 %v3099_v35, %s2642_s11  ;;  %v3107_v41 = vadd.f32 %v1335_v38, %v1237_v0 }
 0x3fd   : > { %v3105_v40 = vadd.f32 %v1337_v39, %v1241_v33 }
 0x400   : > { %1376 = vrot.lane.b32.xlu1 %v3107_v41, %s2642_s11 }
 0x401   : > { %v1341_v59 = vpop.f32.mrb[24].mxu0 }
 0x402   : > { %v3111_v61 = vadd.f32 %v1341_v59, %v1237_v0  ;;  %v1343_v42 = vpop.f32.mrb[25].mxu0 }
 0x403   : > { %v3113_v43 = vadd.f32 %v1343_v42, %v1241_v33  ;;  %v1345_v44 = vpop.f32.mrb[26].mxu0 }
 0x404   : > { %v3115_v45 = vadd.f32 %v1345_v44, %v1237_v0  ;;  %v1347_v46 = vpop.f32.mrb[27].mxu0  ;;  %1378 = vrot.lane.b32.xlu0 %v3111_v61, %s2642_s11 }
 0x405   : > { %v3119_v47 = vadd.f32 %v1347_v46, %v1241_v33 }
 0x406   : > { %1380 = vrot.lane.b32.xlu1 %v3115_v45, %s2642_s11 }
 0x46e   : > { %v1375_v3 = vpop.permute.xlu1 %1374 }
 0x46f   : > { %v1386_v24 = vmul.f32 %v1375_v3, %v3099_v35 }
 0x470   : > { %v1351_v48 = vpop.f32.mrb[28].mxu0 }
 0x471   : > { %v1352_v49 = vadd.f32 %v1351_v48, %v1237_v0  ;;  %v1353_v50 = vpop.f32.mrb[29].mxu0 }
 0x472   : > { %v3123_v51 = vadd.f32 %v1353_v50, %v1241_v33  ;;  %v1355_v52 = vpop.f32.mrb[30].mxu0  ;;  %v1377_v4 = vpop.permute.xlu1 %1376  ;;  %v2418_v50 = vld [vmem:[%s3277_s7] sm:$0xff]  }
 0x473   : > { %v1356_v53 = vadd.f32 %v1355_v52, %v1237_v0  ;;  %v1357_v54 = vpop.f32.mrb[31].mxu0  ;;  %1406 = vrot.lane.b32.xlu0 %v1352_v49, %s2642_s11  ;;  %v1490_v5 = vmul.f32 %v1375_v3, %v1352_v49  ;;  %v1387_v30 = vmul.f32 %v1377_v4, %v3107_v41  ;;  %2162 = vmatprep.subr.bf16.mxu1 %v2418_v50  ;;  %v2421_v52 = vld [vmem:[%s3277_s7 + $0x18] sm:$0xff]  }
 0x474   : > { %v3126_v55 = vadd.f32 %v1357_v54, %v1241_v33  ;;  %2163 = vmatpush3.bf16.msra.mxu1 %v2418_v50 }
 0x475   : > { %1408 = vrot.lane.b32.xlu1 %v1356_v53, %s2642_s11  ;;  %v1494_v7 = vsel %vm1284_vm3, %v1490_v5, 0.0  ;;  %v1491_v9 = vmul.f32 %v1377_v4, %v1356_v53  ;;  %v1393_v36 = vsel %vm1284_vm3, %v1387_v30, 0.0 }
 0x476   : > { %v1379_v11 = vpop.permute.xlu0 %1378 }
 0x477   : > { %v1497_v12 = vsel %vm1284_vm3, %v1491_v9, 0.0  ;;  %v1388_v38 = vmul.f32 %v1379_v11, %v3111_v61 }
 0x478   : > { %v1361_v56 = vpop.f32.mrb[32].mxu0  ;;  %v1381_v6 = vpop.permute.xlu1 %1380 }
 0x479   : > { %v1362_v57 = vadd.f32 %v1361_v56, %v1237_v0  ;;  %v1363_v58 = vpop.f32.mrb[33].mxu0  ;;  %v1389_v59 = vmul.f32 %v1381_v6, %v3115_v45  ;;  %v1396_v44 = vsel %vm1284_vm3, %v1388_v38, 0.0 }
 0x47a   : > { %v3129_v60 = vadd.f32 %v1363_v58, %v1241_v33  ;;  %v1365_v62 = vpop.f32.mrb[34].mxu0 }
 0x47b   : > { %v1366_v63 = vadd.f32 %v1365_v62, %v1237_v0  ;;  %v1367_v1 = vpop.f32.mrb[35].mxu0  ;;  %1410 = vrot.lane.b32.xlu0 %v1362_v57, %s2642_s11  ;;  %v1492_v13 = vmul.f32 %v1379_v11, %v1362_v57  ;;  %v1399_v46 = vsel %vm1284_vm3, %v1389_v59, 0.0 }
 0x47c   : > { %v3132_v2 = vadd.f32 %v1367_v1, %v1241_v33  ;;  %v1390_v33 = vsel %vm1284_vm3, %v1386_v24, 0.0 }
 0x47d   : > { %1412 = vrot.lane.b32.xlu1 %v1366_v63, %s2642_s11  ;;  %v1493_v8 = vmul.f32 %v1381_v6, %v1366_v63  ;;  %v1500_v14 = vsel %vm1284_vm3, %v1492_v13, 0.0 }
 0x47f   : > { %v1503_v10 = vsel %vm1284_vm3, %v1493_v8, 0.0 }
 0x49a   : > { %1495 = vadd.xlane.f32.xlu0 %v1494_v7 }
 0x49e   : > { %1504 = vadd.xlane.f32.xlu0 %v1503_v10 }
 0x4a1   : > { %1498 = vadd.xlane.f32.xlu1 %v1497_v12 }
 0x4a5   : > { %1501 = vadd.xlane.f32.xlu1 %v1500_v14 }
 0x4e5   : > { %v1407_v15 = vpop.permute.xlu0 %1406 }
 0x4e6   : > { %v1506_v16 = vmul.f32 %v1407_v15, %v1352_v49  ;;  %v1418_v0 = vmul.f32 %v1407_v15, %v3099_v35 }
 0x4e7   : > { %v1409_v17 = vpop.permute.xlu1 %1408 }
 0x4e8   : > { %v1507_v18 = vmul.f32 %v1409_v17, %v1356_v53  ;;  %v1510_v19 = vsel %vm1284_vm3, %v1506_v16, 0.0  ;;  %v1419_v34 = vmul.f32 %v1409_v17, %v3107_v41  ;;  %v1422_v39 = vsel %vm1284_vm3, %v1418_v0, 0.0  ;;  %v2422_v53 = vld [vmem:[%s3277_s7 + $0x20] sm:$0xff]  }
 0x4e9   : > { %1511 = vadd.xlane.f32.xlu0 %v1510_v19 }
 0x4ea   : > { %v1513_v27 = vsel %vm1284_vm3, %v1507_v18, 0.0  ;;  %v1425_v42 = vsel %vm1284_vm3, %v1419_v34, 0.0 }
 0x4ed   : > { %v1411_v20 = vpop.permute.xlu0 %1410  ;;  %1514 = vadd.xlane.f32.xlu0 %v1513_v27 }
 0x4ee   : > { %v1508_v21 = vmul.f32 %v1411_v20, %v1362_v57  ;;  %v1420_v35 = vmul.f32 %v1411_v20, %v3111_v61  ;;  %v2419_v61 = vld [vmem:[%s3277_s7 + $0x8] sm:$0xff]  }
 0x4ef   : > { %v1413_v22 = vpop.permute.xlu1 %1412  ;;  %2164 = vmatprep.subr.bf16.mxu1 %v2419_v61 }
 0x4f0   : > { %v1509_v26 = vmul.f32 %v1413_v22, %v1366_v63  ;;  %v1516_v29 = vsel %vm1284_vm3, %v1508_v21, 0.0  ;;  %v1421_v41 = vmul.f32 %v1413_v22, %v3115_v45  ;;  %v1428_v48 = vsel %vm1284_vm3, %v1420_v35, 0.0  ;;  %v2420_v45 = vld [vmem:[%s3277_s7 + $0x10] sm:$0xff]   ;;  %2165 = vmatpush3.bf16.msra.mxu1 %v2419_v61 }
 0x4f1   : > { %1517 = vadd.xlane.f32.xlu1 %v1516_v29  ;;  %2166 = vmatprep.subr.bf16.mxu1 %v2420_v45 }
 0x4f2   : > { %v1519_v32 = vsel %vm1284_vm3, %v1509_v26, 0.0  ;;  %v1431_v49 = vsel %vm1284_vm3, %v1421_v41, 0.0 }
 0x4f3   : > { %1520 = vadd.xlane.f32.xlu0 %v1519_v32 }
 0x4f4   : > { %2167 = vmatpush3.bf16.msra.mxu1 %v2420_v45 }
 0x4f5   : > { %1391 = vadd.xlane.f32.xlu1 %v1390_v33  ;;  %2168 = vmatprep.subr.bf16.mxu1 %v2421_v52 }
 0x4f7   : > { %1394 = vadd.xlane.f32.xlu0 %v1393_v36 }
 0x4f8   : > { %2169 = vmatpush3.bf16.msra.mxu1 %v2421_v52 }
 0x4f9   : > { %1423 = vadd.xlane.f32.xlu1 %v1422_v39  ;;  %2170 = vmatprep.subr.bf16.mxu1 %v2422_v53 }
 0x4fb   : > { %1426 = vadd.xlane.f32.xlu0 %v1425_v42 }
 0x4fc   : > { %2171 = vmatpush3.bf16.msra.mxu1 %v2422_v53 }
 0x4fd   : > { %1397 = vadd.xlane.f32.xlu1 %v1396_v44 }
 0x4ff   : > { %1400 = vadd.xlane.f32.xlu0 %v1399_v46 }
 0x501   : > { %1429 = vadd.xlane.f32.xlu1 %v1428_v48 }
 0x503   : > { %1432 = vadd.xlane.f32.xlu0 %v1431_v49 }
 0x527   : > { %v1496_v54 = vpop.xlane.xlu0 %1495 }
 0x52b   : > { %v1505_v56 = vpop.xlane.xlu0 %1504 }
 0x52e   : > { %v1499_v57 = vpop.xlane.xlu1 %1498 }
 0x532   : > { %v1502_v3 = vpop.xlane.xlu1 %1501 }
 0x576   : > { %v1512_v58 = vpop.xlane.xlu0 %1511 }
 0x577   : > { %v1522_v62 = vmax.f32 %v1496_v54, %v1512_v58 }
 0x579   : > { %v1526_v63 = vsub.f32 %v1496_v54, %v1522_v62  ;;  %v1538_v1 = vsub.f32 %v1512_v58, %v1522_v62 }
 0x57a   : > { %v1515_v4 = vpop.xlane.xlu0 %1514 }
 0x57b   : > { %v1530_v5 = vmul.f32 1.442695, %v1526_v63  ;;  %v1542_v6 = vmul.f32 1.442695, %v1538_v1  ;;  %v1523_v7 = vmax.f32 %v1499_v57, %v1515_v4 }
 0x57d   : > { %2430 = vpow2.f32 %v1530_v5  ;;  %v1527_v8 = vsub.f32 %v1499_v57, %v1523_v7  ;;  %v1539_v9 = vsub.f32 %v1515_v4, %v1523_v7 }
 0x57e   : > { %2432 = vpow2.f32 %v1542_v6  ;;  %v1518_v10 = vpop.xlane.xlu1 %1517 }
 0x57f   : > { %v1532_v11 = vmul.f32 1.442695, %v1527_v8  ;;  %v1544_v12 = vmul.f32 1.442695, %v1539_v9  ;;  %v1524_v13 = vmax.f32 %v1502_v3, %v1518_v10  ;;  %v2423_v8 = vld [vmem:[%s3277_s7 + $0x28] sm:$0xff]  }
 0x580   : > { %v1521_v14 = vpop.xlane.xlu0 %1520  ;;  %2172 = vmatprep.subr.bf16.mxu1 %v2423_v8 }
 0x581   : > { %2434 = vpow2.f32 %v1532_v11  ;;  %v1528_v15 = vsub.f32 %v1502_v3, %v1524_v13  ;;  %v1540_v16 = vsub.f32 %v1518_v10, %v1524_v13  ;;  %v1525_v17 = vmax.f32 %v1505_v56, %v1521_v14  ;;  %2173 = vmatpush3.bf16.msra.mxu1 %v2423_v8 }
 0x582   : > { %2436 = vpow2.f32 %v1544_v12  ;;  %v1392_v18 = vpop.xlane.xlu1 %1391  ;;  %v2424_v12 = vld [vmem:[%s3277_s7 + $0x30] sm:$0xff]  }
 0x583   : > { %v1534_v19 = vmul.f32 1.442695, %v1528_v15  ;;  %v1546_v27 = vmul.f32 1.442695, %v1540_v16  ;;  %v1529_v20 = vsub.f32 %v1505_v56, %v1525_v17  ;;  %v1541_v21 = vsub.f32 %v1521_v14, %v1525_v17  ;;  %2174 = vmatprep.subr.bf16.mxu1 %v2424_v12 }
 0x584   : > { %v1395_v22 = vpop.xlane.xlu0 %1394 }
 0x585   : > { %2438 = vpow2.f32 %v1534_v19  ;;  %v1536_v24 = vmul.f32 1.442695, %v1529_v20  ;;  %v1548_v26 = vmul.f32 1.442695, %v1541_v21  ;;  %2175 = vmatpush3.bf16.msra.mxu1 %v2424_v12 }
 0x586   : > { %2440 = vpow2.f32 %v1546_v27  ;;  %v1424_v29 = vpop.xlane.xlu1 %1423 }
 0x587   : > { %v2431_v30 = vpop.eup %2430  ;;  %2442 = vpow2.f32 %v1536_v24  ;;  %v1434_v32 = vmax.f32 %v1392_v18, %v1424_v29 }
 0x588   : > { %v2433_v0 = vpop.eup %2432  ;;  %2444 = vpow2.f32 %v1548_v26  ;;  %v1427_v33 = vpop.xlane.xlu0 %1426 }
 0x589   : > { %v1550_v34 = vadd.f32 %v2433_v0, %v2431_v30  ;;  %v1438_v36 = vsub.f32 %v1392_v18, %v1434_v32  ;;  %v1450_v38 = vsub.f32 %v1424_v29, %v1434_v32  ;;  %v1435_v39 = vmax.f32 %v1395_v22, %v1427_v33  ;;  %v2425_v32 = vld [vmem:[%s3277_s7 + $0x38] sm:$0xff]  }
 0x58a   : > { %v1398_v59 = vpop.xlane.xlu1 %1397  ;;  %2176 = vmatprep.subr.bf16.mxu1 %v2425_v32 }
 0x58b   : > { %v2435_v42 = vpop.eup %2434  ;;  %2446 = vrcp.f32 %v1550_v34  ;;  %v1442_v35 = vmul.f32 1.442695, %v1438_v36  ;;  %v1454_v44 = vmul.f32 1.442695, %v1450_v38  ;;  %v1439_v41 = vsub.f32 %v1395_v22, %v1435_v39  ;;  %2177 = vmatpush3.bf16.msra.mxu1 %v2425_v32 }
 0x58c   : > { %v2437_v46 = vpop.eup %2436  ;;  %v1451_v48 = vsub.f32 %v1427_v33, %v1435_v39  ;;  %v1401_v49 = vpop.xlane.xlu0 %1400 }
 0x58d   : > { %v1551_v50 = vadd.f32 %v2437_v46, %v2435_v42  ;;  %2448 = vpow2.f32 %v1442_v35  ;;  %v1444_v61 = vmul.f32 1.442695, %v1439_v41 }
 0x58e   : > { %2450 = vpow2.f32 %v1454_v44  ;;  %v1456_v45 = vmul.f32 1.442695, %v1451_v48  ;;  %v1430_v52 = vpop.xlane.xlu1 %1429 }
 0x58f   : > { %v2439_v53 = vpop.eup %2438  ;;  %2452 = vrcp.f32 %v1551_v50  ;;  %v1436_v54 = vmax.f32 %v1398_v59, %v1430_v52  ;;  %v2427_v50 = vld [vmem:[%s3278_s8 + $0x8] sm:$0xff]  }
 0x590   : > { %v2441_v56 = vpop.eup %2440  ;;  %2454 = vpow2.f32 %v1444_v61  ;;  %v1433_v57 = vpop.xlane.xlu0 %1432 }
 0x591   : > { %v2443_v58 = vpop.eup %2442  ;;  %v1552_v62 = vadd.f32 %v2441_v56, %v2439_v53  ;;  %2456 = vpow2.f32 %v1456_v45  ;;  %v1440_v63 = vsub.f32 %v1398_v59, %v1436_v54  ;;  %v1452_v1 = vsub.f32 %v1430_v52, %v1436_v54 }
 0x592   : > { %v2445_v3 = vpop.eup %2444  ;;  %v1437_v4 = vmax.f32 %v1401_v49, %v1433_v57 }
 0x593   : > { %2458 = vrcp.f32 %v1552_v62  ;;  %v1553_v5 = vadd.f32 %v2445_v3, %v2443_v58  ;;  %v1446_v6 = vmul.f32 1.442695, %v1440_v63  ;;  %v1458_v7 = vmul.f32 1.442695, %v1452_v1  ;;  %v2428_v1 = vld [vmem:[%s3278_s8 + $0x10] sm:$0xff]  }
 0x594   : > { %v1441_v9 = vsub.f32 %v1401_v49, %v1437_v4  ;;  %v1453_v10 = vsub.f32 %v1433_v57, %v1437_v4  ;;  %v2426_v49 = vld [vmem:[%s3278_s8] sm:$0xff]  }
 0x595   : > { %v2447_v11 = vpop.eup %2446  ;;  %2460 = vrcp.f32 %v1553_v5  ;;  %2182 = vmatprep.subr.bf16.mxu0 %v2426_v49 }
 0x596   : > { %2462 = vpow2.f32 %v1446_v6  ;;  %v1448_v13 = vmul.f32 1.442695, %v1441_v9  ;;  %v1460_v14 = vmul.f32 1.442695, %v1453_v10  ;;  %v1558_v15 = vmul.f32 %v2447_v11, %v2431_v30  ;;  %2183 = vmatpush3.bf16.msra.mxu0 %v2426_v49 }
 0x597   : > { %v2449_v16 = vpop.eup %2448  ;;  %2464 = vpow2.f32 %v1458_v7  ;;  %v1566_v17 = vmul.f32 %v2447_v11, %v2433_v0  ;;  %2184 = vmatprep.subr.bf16.mxu0 %v2427_v50 }
 0x598   : > { %v2451_v18 = vpop.eup %2450  ;;  %2466 = vpow2.f32 %v1448_v13  ;;  %v1562_v19 = vmul.f32 %v1558_v15, %v3101_v37 }
 0x599   : > { %v2453_v27 = vpop.eup %2452  ;;  %v1462_v20 = vadd.f32 %v2451_v18, %v2449_v16  ;;  %2468 = vpow2.f32 %v1460_v14  ;;  %v1570_v21 = vmul.f32 %v1566_v17, %v3123_v51 }
 0x59a   : > { %v2455_v22 = vpop.eup %2454  ;;  %v1559_v24 = vmul.f32 %v2453_v27, %v2435_v42  ;;  %v1567_v26 = vmul.f32 %v2453_v27, %v2437_v46  ;;  %2185 = vmatpush3.bf16.msra.mxu0 %v2427_v50 }
 0x59b   : > { %v2457_v29 = vpop.eup %2456  ;;  %2470 = vrcp.f32 %v1462_v20  ;;  %v1574_v30 = vadd.f32 %v1570_v21, %v1562_v19  ;;  %2186 = vmatprep.subr.bf16.mxu0 %v2428_v1 }
 0x59c   : > { %v1463_v0 = vadd.f32 %v2457_v29, %v2455_v22  ;;  %v1563_v33 = vmul.f32 %v1559_v24, %v3105_v40  ;;  %v1571_v34 = vmul.f32 %v1567_v26, %v3126_v55 }
 0x59d   : > { %v2459_v36 = vpop.eup %2458 }
 0x59e   : > { %2472 = vrcp.f32 %v1463_v0  ;;  %v1575_v38 = vadd.f32 %v1571_v34, %v1563_v33  ;;  %v1560_v39 = vmul.f32 %v2459_v36, %v2439_v53  ;;  %v1568_v59 = vmul.f32 %v2459_v36, %v2441_v56  ;;  %2187 = vmatpush3.bf16.msra.mxu0 %v2428_v1 }
 0x59f   : > { %v2461_v42 = vpop.eup %2460 }
 0x5a0   : > { %v2463_v35 = vpop.eup %2462  ;;  %v2304_v44 = vpack.i.bf16 %v1575_v38, %v1574_v30  ;;  %v1561_v41 = vmul.f32 %v2461_v42, %v2443_v58  ;;  %v1564_v46 = vmul.f32 %v1560_v39, %v3113_v43  ;;  %v1569_v48 = vmul.f32 %v2461_v42, %v2445_v3  ;;  %v1616_v38 = vld [vmem:[#allocation7 + $0x6] ss:$0 sm:$0xff] }
 0x5a1   : > { %v2465_v61 = vpop.eup %2464  ;;  %v1572_v45 = vmul.f32 %v1568_v59, %v3129_v60 }
 0x5a2   : > { %v2467_v52 = vpop.eup %2466  ;;  %v1464_v53 = vadd.f32 %v2465_v61, %v2463_v35  ;;  %2305 = vrot.lane.b32.xlu1 %v2304_v44, %s2642_s11  ;;  %v1565_v54 = vmul.f32 %v1561_v41, %v3119_v47  ;;  %v1573_v56 = vmul.f32 %v1569_v48, %v3132_v2 }
 0x5a3   : > { %v2469_v57 = vpop.eup %2468  ;;  %v1576_v58 = vadd.f32 %v1572_v45, %v1564_v46 }
 0x5a4   : > { %2474 = vrcp.f32 %v1464_v53  ;;  %v1465_v62 = vadd.f32 %v2469_v57, %v2467_v52  ;;  %v1577_v63 = vadd.f32 %v1573_v56, %v1565_v54  ;;  %v2643_v54 = vmov 0.0|0.0  }
 0x5a5   : > { %v2471_v3 = vpop.eup %2470  ;;  %2205 = vmatprep.subr.bf16.mxu1 %v2643_v54  ;;  %v2645_v56 = vmov 0.0  }
 0x5a6   : > { %2476 = vrcp.f32 %v1465_v62  ;;  %v2309_v4 = vpack.i.bf16 %v1577_v63, %v1576_v58  ;;  %v1470_v5 = vmul.f32 %v2471_v3, %v2449_v16  ;;  %v1478_v6 = vmul.f32 %v2471_v3, %v2451_v18  ;;  %v996_v58 = vld [vmem:[#allocation7 + $0x3] ss:$0 sm:$0xff] }
 0x5a7   : > { %v1112_v63 = vadd.f32 %v3093_v28, %v996_v58 }
 0x5a8   : > { %v2473_v7 = vpop.eup %2472  ;;  %2310 = vrot.lane.b32.xlu0 %v2309_v4, %s2642_s11  ;;  %v1474_v8 = vmul.f32 %v1470_v5, %v3101_v37  ;;  %v1482_v9 = vmul.f32 %v1478_v6, %v3123_v51  ;;  %v1104_v4 = vadd.f32 %v3089_v23, %v996_v58  ;;  %v2646_v23 = vmov 1.0  }
 0x5a9   : > { %v1471_v10 = vmul.f32 %v2473_v7, %v2455_v22  ;;  %v1479_v11 = vmul.f32 %v2473_v7, %v2457_v29  ;;  %v1115_v7 = vadd.f32 %v3095_v31, %v996_v58 }
 0x5aa   : > { %v1486_v12 = vadd.f32 %v1482_v9, %v1474_v8 }
 0x5ab   : > { %v1475_v13 = vmul.f32 %v1471_v10, %v3105_v40  ;;  %v1483_v14 = vmul.f32 %v1479_v11, %v3126_v55  ;;  %v1107_v11 = vadd.f32 %v3091_v25, %v996_v58 }
 0x5ad   : > { %v1487_v15 = vadd.f32 %v1483_v14, %v1475_v13 }
 0x5ae   : > { %v2475_v16 = vpop.eup %2474 }
 0x5af   : > { %v1472_v17 = vmul.f32 %v2475_v16, %v2463_v35  ;;  %v1480_v18 = vmul.f32 %v2475_v16, %v2465_v61 }
 0x5b0   : > { %v2477_v19 = vpop.eup %2476 }
 0x5b1   : > { %v1473_v27 = vmul.f32 %v2477_v19, %v2467_v52  ;;  %v1481_v20 = vmul.f32 %v2477_v19, %v2469_v57  ;;  %v1476_v37 = vmul.f32 %v1472_v17, %v3113_v43  ;;  %v1484_v51 = vmul.f32 %v1480_v18, %v3129_v60  ;;  %v1728_v57 = vld [vmem:[#allocation7 + $0x7] ss:$0 sm:$0xff] }
 0x5b3   : > { %v1477_v21 = vmul.f32 %v1473_v27, %v3119_v47  ;;  %v1485_v22 = vmul.f32 %v1481_v20, %v3132_v2  ;;  %v1488_v24 = vadd.f32 %v1484_v51, %v1476_v37  ;;  %v2429_v2 = vld [vmem:[%s3278_s8 + $0x18] sm:$0xff]  }
 0x5b4   : > { %2188 = vmatprep.subr.bf16.mxu0 %v2429_v2 }
 0x5b5   : > { %v1489_v40 = vadd.f32 %v1485_v22, %v1477_v21  ;;  %2189 = vmatpush3.bf16.msra.mxu0 %v2429_v2 }
 0x614   : > { %v2306_v26 = vpop.permute.xlu1 %2305 }
 0x615   : > { %v2308_v55 = vunpack.i.h.bf16 %v2306_v26  ;;  %v2307_v29 = vunpack.i.l.bf16 %v2306_v26 }
 0x617   : > { %v1594_v30 = vsel %vm1284_vm3, %v1486_v12, %v2307_v29  ;;  %v1595_v32 = vsel %vm1284_vm3, %v1487_v15, %v2308_v55 }
 0x618   : > { %v1598_v0 = vpack.c.bf16 %v1595_v32, %v1594_v30 }
 0x61a   : > { %v2311_v33 = vpop.permute.xlu0 %2310  ;;  %2178 = vmatprep.mubr.bf16.mxu1 %v1598_v0 }
 0x61b   : > { %v2313_v34 = vunpack.i.h.bf16 %v2311_v33  ;;  %v2312_v43 = vunpack.i.l.bf16 %v2311_v33 }
 0x61d   : > { %v1597_v60 = vsel %vm1284_vm3, %v1489_v40, %v2313_v34  ;;  %v1596_v47 = vsel %vm1284_vm3, %v1488_v24, %v2312_v43 }
 0x61e   : > { %v1599_v36 = vpack.c.bf16 %v1597_v60, %v1596_v47 }
 0x620   : > { %2179 = vmatmul.mubr.bf16.vlgmr.msra.gmra.mrb[16].mxu1 %v1599_v36 }
 0x621   : > { %2202 = vmatprep.mubr.msk.f32.mxu1 %vm2644_vm4, %v2645_v56 }
 0x6f3   : > { %v2180_v39 = vpop.f32.mrb[16].mxu1 }
 0x6f4   : > { %v1708_v59 = vadd.f32 %v2180_v39, %v1616_v38  ;;  %v1699_v42 = vpop.f32.mrb[17].mxu1 }
 0x6f5   : > { %v1700_v35 = vadd.f32 %v1699_v42, %v1616_v38  ;;  %v2181_v44 = vpop.f32.mrb[18].mxu1 }
 0x6f6   : > { %v1711_v41 = vadd.f32 %v2181_v44, %v1616_v38  ;;  %v1702_v46 = vpop.f32.mrb[19].mxu1  ;;  %v1716_v49 = vmax.f32 %v1708_v59, 0.0 }
 0x6f7   : > { %v1703_v48 = vadd.f32 %v1702_v46, %v1616_v38  ;;  %v1714_v61 = vmax.f32 %v1700_v35, 0.0 }
 0x6f8   : > { %v1717_v50 = vmax.f32 %v1711_v41, 0.0 }
 0x6f9   : > { %v1715_v45 = vmax.f32 %v1703_v48, 0.0 }
 0x6fa   : > { %v1719_v52 = vpack.c.bf16 %v1717_v50, %v1716_v49 }
 0x6fb   : > { %v1718_v53 = vpack.c.bf16 %v1715_v45, %v1714_v61 }
 0x6fd   : > { %2190 = vmatprep.mubr.msk.bf16.mxu0 %vm1284_vm3, %v1718_v53 }
 0x6fe   : > { %2191 = vmatmul.mubr.msk.bf16.vlgmr.msra.gmra.mrb[36].mxu0 %vm1284_vm3, %v1719_v52 }
 0x7d1   : > { %v2192_v62 = vpop.f32.mrb[36].mxu0 }
 0x7d2   : > { %v1802_v1 = vadd.f32 %v2192_v62, %v1728_v57  ;;  %v1793_v3 = vpop.f32.mrb[37].mxu0 }
 0x7d3   : > { %v1794_v5 = vadd.f32 %v1793_v3, %v1728_v57  ;;  %v2193_v6 = vpop.f32.mrb[38].mxu0 }
 0x7d4   : > { %v1810_v8 = vmul.f32 %v1802_v1, %v1112_v63  ;;  %v1805_v9 = vadd.f32 %v2193_v6, %v1728_v57  ;;  %v1796_v10 = vpop.f32.mrb[39].mxu0 }
 0x7d5   : > { %v1808_v12 = vmul.f32 %v1794_v5, %v1104_v4  ;;  %v1797_v13 = vadd.f32 %v1796_v10, %v1728_v57 }
 0x7d6   : > { %v1811_v14 = vmul.f32 %v1805_v9, %v1115_v7 }
 0x7d7   : > { %v1809_v28 = vmul.f32 %v1797_v13, %v1107_v11 }
 0x7d8   : > { %v2210_v15 = vpack.c.bf16 %v1811_v14, %v1810_v8 }
 0x7d9   : > { %v2206_v16 = vpack.c.bf16 %v1809_v28, %v1808_v12 }
 0x7db   : > { %2208 = vmatpush3.bf16.xpose.msk.msra.mxu1 %vm2207_vm6, %v2206_v16 }
 0x7dc   : > { %2209 = vmatprep.subr.bf16.mxu1 %v2643_v54 }
 0x7e3   : > { %2212 = vmatpush3.bf16.xpose.msk.msra.mxu1 %vm2207_vm6, %v2210_v15 }
 0x7ea   : > { %2203 = vmatmul.mubr.msk.f32.vlgmr.msra.gmra.mrb[20].mxu1 %vm1812_vm5, %v2646_v23 }
 0x8bd   : > { %v1894_v25 = vpop.f32.mrb[20].mxu1 }
 0x8be   : > { %1899 = vst.msk [vmem:[%s394_s24] sm:$0x1] %vm1898_vm7, %v1894_v25  ;;  %v2204_v31 = vpop.f32.mrb[21].mxu1 }
 0x8bf   : > { %2575 = shalt.err (!%p2572_p11)
}
 0x8c0   : > { %s2576_s19 = scalar_lea.hbm %s3228_s18, 16  ;;  %s2580_s25 = scalar_lea.hbm %s3280_s10, 64 }
 0x8c1   : > { %p2577_p13 = scmp.ne.s32.totalorder %s3228_s18, %s2576_s19  ;;  %p2581_p6 = scmp.lt.u32.totalorder %s3228_s18, %s3280_s10 }
 0x8c2   : > { %p2582_p9 = scmp.lt.u32.totalorder %s2580_s25, %s2576_s19  ;;  %p2584_p10 = scmp.lt.u32.totalorder %s2576_s19, %s3228_s18 }
 0x8c3   : > { %p2578_p5 = pnand %p2577_p13, %p3306_p1 }
 0x8c4   : > { %p2583_p12 = por %p2582_p9, %p2581_p6 }
 0x8c5   : > { %p2579_p0 = pneg %p2578_p5 }
 0x8c6   : > { %p2585_p2 = por %p2584_p10, %p2583_p12 }
 0x8c8   : > { %p2586_p3 = pnand %p2585_p2, %p2579_p0 }
 0x8ca   : > { %2589 = shalt.err (!%p2586_p3)
}
 0x8cb   : > { %2226 = dma.vmem_to_hbm [thread:$0]  (%p3306_p1), %s3230_s12, 16, %s3228_s18, %s1901_s21  }
 0x8cc PF: > { %s3307_s26 = sld [smem:[#allocation12_spill]]  ;;  %s3308_s15 = sld [smem:[#allocation16_spill]] }
 0x8cd   : > { %p2248_p4 = scmp.ge.s32.totalorder %s2632_s16, 2 }
 0x8d2   : > { %s1925_s24 = sand.u32 1, %s3307_s26   ;;  %p3309_p7 = scmp.ne.s32.totalorder %s3308_s15, 0 }
 0x8d3   : > { %s1926_s20 = scalar_lea.sflag [#allocation4], %s1925_s24 }
 0x8d4   : > { %p2239_p8 = pnand %p2248_p4, %p3309_p7 }
 0x8d6   : > { %2615 = dma.done.wait (!%p2239_p8), %s1926_s20, 16  }
 0x8d7   : > { %2617 = vsyncadd (!%p2239_p8), %s1926_s20, 4294967280  ;;  %s3310_s16 = sld [smem:[#allocation14_spill]]  ;;  %s3311_s22 = sld [smem:[#allocation13_spill]] }
 0x8d8   : > { %s3312_s15 = sld [smem:[#allocation15_spill]]  ;;  %s3313_s13 = smov %s2624_s14 }
 0x8dd   : > { %p22_p11 = scmp.ge.s32.totalorder %s3310_s16, 6   ;;  %s3314_s14 = smov %s3311_s22 }
 0x8df   :  { %24 = sbr.rel (!%p22_p11) target bundleno = 7 (0x7), region = 111 }
 0x8e6   :  { %1930 = vsyncpa [#allocation3], 1 }
 0x8e7   :  { %1932 = vsyncpa [#allocation3 + $0x1], 1 }
 0x8e8   :  { %1933 = vsyncpa [#allocation6], 1 }
 0x8e9   :  { %1934 = vsyncpa [#allocation4], 1 }
 0x8ea   :  { %1936 = vsyncpa [#allocation4 + $0x1], 1 }

// kernel: tpu_custom_call.1
= control target key start
LH: loop header
LB: loop body
LE: loop exit
PB: predicated region body
PF: predicated region fallthrough
CT: control target
= control target key end

     0   :  { %s3270_s0 = inlined_call_operand.vmem [shape: f32[128,50], index: 0, kind: input, shape index: {}]   ;;  %s3271_s1 = inlined_call_operand.hbm [shape: bf16[50,176], index: 1, kind: input, shape index: {}]   ;;  %s3272_s2 = inlined_call_operand.vmem [shape: bf16[176,176], index: 2, kind: input, shape index: {}]   ;;  %s3273_s3 = inlined_call_operand.vmem [shape: bf16[176,176], index: 3, kind: input, shape index: {}]   ;;  %s3274_s4 = inlined_call_operand.vmem [shape: bf16[176,16], index: 4, kind: input, shape index: {}]   ;;  %s3275_s5 = inlined_call_operand.hbm [shape: bf16[50,128], index: 5, kind: input, shape index: {}]   ;;  %s3276_s6 = inlined_call_operand.vmem [shape: bf16[64,192], index: 6, kind: input, shape index: {}]   ;;  %s3277_s7 = inlined_call_operand.vmem [shape: bf16[128,64], index: 7, kind: input, shape index: {}]   ;;  %s3278_s8 = inlined_call_operand.vmem [shape: bf16[64,16], index: 8, kind: input, shape index: {}]   ;;  %s3279_s9 = inlined_call_operand.hbm [shape: f32[8,256], index: 9, kind: input, shape index: {}]   ;;  %s3280_s10 = inlined_call_operand.hbm [shape: f32[4,1,32], index: 10, kind: output, shape index: {}]  }
   0x1   :  { %3289 = sst [smem:[#allocation17_spill]] %s3275_s5 }
   0x2   :  { %15 = vsyncpa [#allocation3], 0 }
   0x3   :  { %16 = vsyncpa [#allocation6], 0 }
   0x4   :  { %17 = vsyncpa [#allocation4], 0 }
   0x5   :  { %19 = vsyncpa [#allocation4 + $0x1], 0  ;;  %s2703_s13 = smov 0   ;;  %s2705_s14 = smov 0  }
   0x6   :  { %s2707_s15 = smov 0   ;;  %s2709_s16 = smov 0  }
   0x7 LB: > { %3290 = sst [smem:[#allocation12_spill]] %s2620_s13  ;;  %s2724_s17 = sadd.s32 4294967295, %s2632_s16   ;;  %s2632_s16 = sphi %s2709_s16, %s3310_s16   ;;  %s2628_s15 = sphi %s2707_s15, %s3312_s15   ;;  %s2624_s14 = sphi %s2705_s14, %s3314_s14   ;;  %s2620_s13 = sphi %s2703_s13, %s3313_s13  }
   0x8   : > { %3291 = sst [smem:[#allocation13_spill]] %s2628_s15  ;;  %s1999_s18 = sadd.s32 4294967294, %s2632_s16  }
   0x9   : > { %s2728_s19 = sadd.s32 1, %s2632_s16   ;;  %s247_s20 = sadd.s32 1, %s2628_s15 }
   0xa   : > { %3292 = sst [smem:[#allocation14_spill]] %s2728_s19  ;;  %s244_s21 = ssub.s32 %s2632_s16, %s2728_s19 }
   0xb   : > { %p257_p0 = scmp.ne.s32.totalorder %s2628_s15, %s2624_s14  ;;  %p245_p1 = scmp.eq.s32.totalorder %s244_s21, 0 }
   0xc   : > { %p258_p2 = scmp.eq.s32.totalorder %s2724_s17, 3  ;;  %p263_p3 = scmp.ne.s32.totalorder %s2624_s14, %s2620_s13 }
   0xd   : > { %p264_p4 = scmp.eq.s32.totalorder %s1999_s18, 3  ;;  %p2000_p7 = scmp.ge.s32.totalorder %s2632_s16, 1 }
   0xe   : > { %s2739_s22 = scalar_select %p245_p1, %s2628_s15, %s247_s20  }
   0xf   : > { %p2741_p5 = por %p258_p2, %p257_p0  ;;  %p2745_p6 = por %p264_p4, %p263_p3 }
  0x10   : > { %3293 = sst [smem:[#allocation15_spill]] %s2739_s22  ;;  %p271_p8 = scmp.lt.s32.totalorder %s2632_s16, 5 }
  0x11   : > { %s3294_s23 = scalar_select %p2741_p5, 1, 0 }
  0x12   : > { %s3295_s24 = scalar_select %p2745_p6, 1, 0 }
  0x13   : > { %p3281_p9 = scmp.eq.s32.totalorder %s2724_s17, 0  ;;  %p2752_p10 = pnand %p2000_p7, %p271_p8 }
  0x14   : > { %3296 = sst [smem:[#allocation16_spill]] %s3295_s24  ;;  %s2634_s26 = smov [#allocation5]  }
  0x15   : > { %s3297_s25 = scalar_select %p2752_p10, 1, 0 }
  0x16   : > { %s305_s27 = sshll.u32 %s2634_s26, 4  ;;  %p2228_p11 = pneg %p2752_p10  ;;  %s306_s27 = int_to_ptr.vmem [resolvable:$true] %s305_s27 }
  0x17   : > { %s2635_s29 = smov [#allocation2]   ;;  %s3299_s5 = sld [smem:[#allocation17_spill]] }
  0x18   : > { %p2760_p12 = pnand %p3281_p9, %p2228_p11  ;;  %s283_s30 = sshll.u32 %s2635_s29, 4  ;;  %s2764_s30 = int_to_ptr.vmem [resolvable:$true] %s283_s30 }
  0x1a   : > { %p2774_p0 = pneg %p2760_p12 }
  0x1d   : > { %s2478_s18 = scalar_lea.hbm %s3299_s5, 448 }
  0x1e   : > { %p2479_p13 = scmp.ne.s32.totalorder %s3299_s5, %s2478_s18  ;;  %p2485_p3 = scmp.lt.u32.totalorder %s2478_s18, %s3299_s5 }
  0x20   : > { %p2481_p1 = pnand %p2774_p0, %p2479_p13 }
  0x22   : > { %p2482_p2 = pneg %p2481_p1 }
  0x24   : > { %p2487_p4 = pnand %p2485_p3, %p2482_p2 }
  0x26   : > { %2490 = shalt.err (!%p2487_p4)
}
  0x27   : > { %s2491_s11 = scalar_lea.vmem %s306_s27, 448  ;;  %p2499_p9 = scmp.lt.s32.totalorder %s306_s27, %s306_s27 }
  0x28   : > { %p2492_p7 = scmp.ne.s32.totalorder %s306_s27, %s2491_s11  ;;  %p2500_p6 = scmp.lt.s32.totalorder %s2491_s11, %s2491_s11 }
  0x2a   : > { %p2494_p8 = pnand %p2492_p7, %p2774_p0  ;;  %p2501_p5 = por %p2500_p6, %p2499_p9 }
  0x2c   : > { %p2495_p11 = pneg %p2494_p8 }
  0x2e   : > { %p2502_p10 = pnand %p2501_p5, %p2495_p11 }
  0x30   : > { %2505 = shalt.err (!%p2502_p10)
}
  0x31   : > { %s2636_s12 = smov 64   ;;  %s2637_s20 = smov 4  }
  0x32   : > { %2234 = dma.hbm_to_vmem [thread:$0]  (!%p2760_p12), %s3299_s5, 448, %s306_s27, [#allocation6], %s2636_s12, %s2636_s12, %s2637_s20  }
  0x33   : > { %s2506_s15 = scalar_lea.hbm %s3271_s1, 896 }
  0x34   : > { %p2507_p13 = scmp.ne.s32.totalorder %s3271_s1, %s2506_s15  ;;  %p2513_p9 = scmp.lt.u32.totalorder %s2506_s15, %s3271_s1 }
  0x36   : > { %p2509_p5 = pnand %p2507_p13, %p2774_p0 }
  0x38   : > { %p2510_p6 = pneg %p2509_p5 }
  0x3a   : > { %p2515_p10 = pnand %p2513_p9, %p2510_p6 }
  0x3c   : > { %2518 = shalt.err (!%p2515_p10)
}
  0x3d   : > { %s2519_s27 = scalar_lea.vmem %s2764_s30, 896  ;;  %p2527_p4 = scmp.lt.s32.totalorder %s2764_s30, %s2764_s30 }
  0x3e   : > { %p2520_p1 = scmp.ne.s32.totalorder %s2764_s30, %s2519_s27  ;;  %p2528_p7 = scmp.lt.s32.totalorder %s2519_s27, %s2519_s27 }
  0x40   : > { %p2522_p2 = pnand %p2520_p1, %p2774_p0  ;;  %p2529_p8 = por %p2528_p7, %p2527_p4 }
  0x42   : > { %p2523_p3 = pneg %p2522_p2 }
  0x44   : > { %p2530_p11 = pnand %p2529_p8, %p2523_p3 }
  0x46   : > { %2533 = shalt.err (!%p2530_p11)
}
  0x47   : > { %s2638_s19 = smov 128   ;;  %s2639_s13 = smov 8  }
  0x48   : > { %2231 = dma.hbm_to_vmem [thread:$0]  (!%p2760_p12), %s3271_s1, 896, %s2764_s30, [#allocation3], %s2638_s19, %s2638_s19, %s2639_s13  }
  0x49   : > { %s2640_s12 = smov [#allocation7]   ;;  %s2534_s21 = scalar_lea.hbm %s3279_s9, 256 }
  0x4a   : > { %s328_s20 = sshll.u32 %s2640_s12, 4  ;;  %p2535_p13 = scmp.ne.s32.totalorder %s3279_s9, %s2534_s21  ;;  %s329_s20 = int_to_ptr.vmem [resolvable:$true] %s328_s20 }
  0x4b   : > { %p2541_p9 = scmp.lt.u32.totalorder %s2534_s21, %s3279_s9 }
  0x4c   : > { %p2537_p5 = pnand %p2535_p13, %p2774_p0 }
  0x4e   : > { %p2538_p6 = pneg %p2537_p5 }
  0x50   : > { %p2543_p10 = pnand %p2541_p9, %p2538_p6 }
  0x52   : > { %2546 = shalt.err (!%p2543_p10)
}
  0x53   : > { %s2547_s30 = scalar_lea.vmem %s329_s20, 256  ;;  %p2555_p4 = scmp.lt.s32.totalorder %s329_s20, %s329_s20 }
  0x54   : > { %p2548_p1 = scmp.ne.s32.totalorder %s329_s20, %s2547_s30  ;;  %p2556_p7 = scmp.lt.s32.totalorder %s2547_s30, %s2547_s30 }
  0x56   : > { %p2550_p2 = pnand %p2548_p1, %p2774_p0  ;;  %p2557_p8 = por %p2556_p7, %p2555_p4 }
  0x58   : > { %p2551_p3 = pneg %p2550_p2 }
  0x5a   : > { %p2558_p11 = pnand %p2557_p8, %p2551_p3 }
  0x5c   : > { %2561 = shalt.err (!%p2558_p11)
}
  0x5d   : > { %2237 = dma.hbm_to_vmem [thread:$0]  (!%p2760_p12), %s3279_s9, 256, %s329_s20, [#allocation6]  }
  0x5e   : > { %p3301_p13 = scmp.ne.s32.totalorder %s3297_s25, 0 }
  0x5f   : > { %p3302_p5 = scmp.eq.s32.totalorder (!%p3301_p13), %s2724_s17, 0 }
  0x60   : > { %350 = sbr.rel (%p3301_p13) target bundleno = 2252 (0x8cc), region = 60 }
  0x67   : > { %2607 = dma.done.wait (%p3302_p5), [#allocation3], 896   ;;  %p3303_p0 = pmov %p3302_p5 }
  0x69   : > { %2609 = vsyncadd (%p3303_p0), [#allocation3], 4294966400  ;;  %p3304_p6 = pmov %p3303_p0 }
  0x6a   : > { %p3305_p9 = pmov %p3303_p0 }
  0x6b   : > { %2611 = dma.done.wait (%p3304_p6), [#allocation6], 704  }
  0x6c   : > { %2613 = vsyncadd (%p3305_p9), [#allocation6], 4294966592  ;;  %s2009_s5 = sshll.u32 %s2724_s17, 2  ;;  %v2641_v0 = vmov 0   ;;  %v2314_v1 = vld [vmem:[#allocation2 + $0x4] ss:$8 sps:$4 sm:$0xff]   ;;  %v417_v57 = vlaneseq }
  0x6d   : > { %508 = vmatprep.mubr.bf16.mxu0 %v2641_v0  ;;  %p396_p12 = scmp.lt.s32.totalorder %s2009_s5, 15  ;;  %v2316_v2 = vld [vmem:[#allocation2] ss:$8 sps:$4 sm:$0xff]   ;;  %476 = vmatprep.subr.bf16.mxu0 %v2314_v1  ;;  %v2317_v3 = vld [vmem:[#allocation2 + $0x14] ss:$8 sps:$4 sm:$0xff]   ;;  %vm469_vm0 = vcmask 1040384  }
  0x6e   : > { %477 = vmatpush1.bf16.msra.mxu0 %v2316_v2  ;;  %v2319_v4 = vld [vmem:[#allocation2 + $0x10] ss:$8 sps:$4 sm:$0xff]   ;;  %v2320_v5 = vld [vmem:[#allocation2 + $0x24] ss:$8 sps:$4 sm:$0xff]   ;;  %v2322_v6 = vld [vmem:[#allocation2 + $0x20] ss:$8 sps:$4 sm:$0xff]  }
  0x6f   : > { %s3316_s5 = smov (!%p396_p12, %s2009_s5), 15  ;;  %478 = vmatprep.subr.bf16.mxu0 %v2317_v3  ;;  %v414_v7 = vld [vmem:[#allocation2 + $0x30] sm:$0x11]  ;;  %v2325_v8 = vld [vmem:[%s3272_s2 + $0x4] ss:$8 sps:$4 sm:$0xff]   ;;  %vm462_vm1 = vcmask 408576  }
  0x70   : > { %s2010_s25 = sshll.u32 %s3316_s5, 3  ;;  %v2327_v9 = vld [vmem:[%s3272_s2] ss:$8 sps:$4 sm:$0xff]   ;;  %v2328_v10 = vld [vmem:[%s3272_s2 + $0x14] ss:$8 sps:$4 sm:$0xff]   ;;  %v2018_v11 = vcombine.high %v414_v7, %v414_v7  ;;  %v2017_v12 = vcombine.low %v414_v7, %v414_v7  ;;  %693 = vmatprep.subr.bf16.mxu1 %v2325_v8  ;;  %v418_v58 = vshrl.u32 %v417_v57, 7 }
  0x71   : > { %s399_s22 = scalar_lea.vmem %s3270_s0, %s2010_s25  ;;  %694 = vmatpush1.bf16.msra.mxu1 %v2327_v9  ;;  %v2330_v13 = vld [vmem:[%s3272_s2 + $0x10] ss:$8 sps:$4 sm:$0xff]   ;;  %v2331_v15 = vld [vmem:[%s3272_s2 + $0x24] ss:$8 sps:$4 sm:$0xff]   ;;  %v2333_v18 = vld [vmem:[%s3272_s2 + $0x20] ss:$8 sps:$4 sm:$0xff]  }
  0x72   : > { %479 = vmatpush1.bf16.msra.mxu0 %v2319_v4  ;;  %v402_v14 = vld [vmem:[%s399_s22] sm:$0xff]  ;;  %695 = vmatprep.subr.bf16.mxu1 %v2328_v10  ;;  %v403_v16 = vld [vmem:[%s399_s22 + $0x8] sm:$0xff]  ;;  %v471_v17 = vsel %vm469_vm0, %v2017_v12, 0  ;;  %v2334_v20 = vld [vmem:[%s3272_s2 + $0x34] ss:$8 sps:$4 sm:$0xff]   ;;  %v2978_v59 = vsub.s32 0, %v418_v58 }
  0x73   : > { %480 = vmatprep.subr.bf16.mxu0 %v2320_v5  ;;  %v2866_v19 = vpack.c.bf16 %v403_v16, %v402_v14  ;;  %v404_v21 = vld [vmem:[%s399_s22 + $0x10] sm:$0xff]  ;;  %v405_v22 = vld [vmem:[%s399_s22 + $0x18] sm:$0xff]  ;;  %v2337_v24 = vld [vmem:[%s3272_s2 + $0x44] ss:$8 sps:$4 sm:$0xff]   ;;  %v2980_v61 = vsub.s32 1, %v418_v58  ;;  %vm686_vm2 = vcmask 392192  }
  0x74   : > { %v2336_v23 = vld [vmem:[%s3272_s2 + $0x30] ss:$8 sps:$4 sm:$0xff]   ;;  %v2339_v25 = vld [vmem:[%s3272_s2 + $0x40] ss:$8 sps:$4 sm:$0xff]   ;;  %v2340_v26 = vld [vmem:[%s3272_s2 + $0x54] ss:$8 sps:$4 sm:$0xff]   ;;  %v2886_v27 = vpack.c.bf16 %v405_v22, %v404_v21 }
  0x75   : > { %696 = vmatpush1.bf16.msra.mxu1 %v2330_v13  ;;  %v2342_v28 = vld [vmem:[%s3272_s2 + $0x50] ss:$8 sps:$4 sm:$0xff]   ;;  %v2343_v29 = vld [vmem:[%s3272_s2 + $0x64] ss:$8 sps:$4 sm:$0xff]   ;;  %v2345_v30 = vld [vmem:[%s3272_s2 + $0x60] ss:$8 sps:$4 sm:$0xff]  }
  0x76   : > { %481 = vmatpush1.bf16.msra.mxu0 %v2322_v6  ;;  %697 = vmatprep.subr.bf16.mxu1 %v2331_v15  ;;  %v2346_v31 = vld [vmem:[%s3272_s2 + $0x74] ss:$8 sps:$4 sm:$0xff]   ;;  %v2348_v32 = vld [vmem:[%s3272_s2 + $0x70] ss:$8 sps:$4 sm:$0xff]   ;;  %v2349_v33 = vld [vmem:[%s3272_s2 + $0x84] ss:$8 sps:$4 sm:$0xff]  }
  0x77   : > { %2019 = vmatprep.subr.msk.bf16.mxu0 %vm469_vm0, %v2018_v11  ;;  %v2351_v34 = vld [vmem:[%s3272_s2 + $0x80] ss:$8 sps:$4 sm:$0xff]   ;;  %v2352_v35 = vld [vmem:[%s3272_s2 + $0x94] ss:$8 sps:$4 sm:$0xff]   ;;  %v2354_v36 = vld [vmem:[%s3272_s2 + $0x90] ss:$8 sps:$4 sm:$0xff]  }
  0x78   : > { %v2355_v37 = vld [vmem:[%s3272_s2 + $0xa4] ss:$8 sps:$4 sm:$0xff]   ;;  %v2357_v38 = vld [vmem:[%s3272_s2 + $0xa0] ss:$8 sps:$4 sm:$0xff]   ;;  %v2363_v41 = vld [vmem:[%s3273_s3 + $0x14] ss:$8 sps:$4 sm:$0xff]  }
  0x79   : > { %698 = vmatpush1.bf16.msra.mxu1 %v2333_v18  ;;  %v2358_v39 = vld [vmem:[%s3273_s3] ss:$8 sps:$4 sm:$0xff]   ;;  %v2360_v40 = vld [vmem:[%s3273_s3 + $0x4] ss:$8 sps:$4 sm:$0xff]   ;;  %v2361_v42 = vld [vmem:[%s3273_s3 + $0x10] ss:$8 sps:$4 sm:$0xff]  }
  0x7a   : > { %483 = vmatpush1.bf16.msra.mxu0 %v471_v17  ;;  %699 = vmatprep.subr.bf16.mxu1 %v2334_v20  ;;  %v2366_v43 = vld [vmem:[%s3273_s3 + $0x24] ss:$8 sps:$4 sm:$0xff]   ;;  %v2364_v44 = vld [vmem:[%s3273_s3 + $0x20] ss:$8 sps:$4 sm:$0xff]   ;;  %v2369_v45 = vld [vmem:[%s3273_s3 + $0x34] ss:$8 sps:$4 sm:$0xff]  }
  0x7b   : > { %909 = vmatprep.subr.bf16.mxu0 %v2360_v40  ;;  %v2367_v46 = vld [vmem:[%s3273_s3 + $0x30] ss:$8 sps:$4 sm:$0xff]   ;;  %v2372_v47 = vld [vmem:[%s3273_s3 + $0x44] ss:$8 sps:$4 sm:$0xff]   ;;  %v2370_v48 = vld [vmem:[%s3273_s3 + $0x40] ss:$8 sps:$4 sm:$0xff]  }
  0x7c   : > { %v2375_v49 = vld [vmem:[%s3273_s3 + $0x54] ss:$8 sps:$4 sm:$0xff]   ;;  %v2373_v50 = vld [vmem:[%s3273_s3 + $0x50] ss:$8 sps:$4 sm:$0xff]   ;;  %v2378_v51 = vld [vmem:[%s3273_s3 + $0x64] ss:$8 sps:$4 sm:$0xff]  }
  0x7d   : > { %2020 = vmatmul.mubr.msk.bf16.vlgmr.msra.gmra.mrb[0].mxu0 %vm462_vm1, %v2866_v19  ;;  %700 = vmatpush1.bf16.msra.mxu1 %v2336_v23  ;;  %v2376_v52 = vld [vmem:[%s3273_s3 + $0x60] ss:$8 sps:$4 sm:$0xff]   ;;  %v2381_v53 = vld [vmem:[%s3273_s3 + $0x74] ss:$8 sps:$4 sm:$0xff]   ;;  %v2379_v54 = vld [vmem:[%s3273_s3 + $0x70] ss:$8 sps:$4 sm:$0xff]  }
  0x7e   : > { %518 = vmatprep.mubr.bf16.mxu0 %v2641_v0  ;;  %701 = vmatprep.subr.bf16.mxu1 %v2337_v24  ;;  %v2384_v55 = vld [vmem:[%s3273_s3 + $0x84] ss:$8 sps:$4 sm:$0xff]   ;;  %v2382_v56 = vld [vmem:[%s3273_s3 + $0x80] ss:$8 sps:$4 sm:$0xff]   ;;  %vm1284_vm3 = vcmask 523264   ;;  %s2642_s11 = smov 64  }
  0x7f   : > { %910 = vmatpush1.bf16.msra.mxu0 %v2358_v39  ;;  %v415_v60 = vld [vmem:[#allocation7] ss:$8 sm:$0x3]  ;;  %v2399_v40 = vld [vmem:[%s3274_s4 + $0x20] sm:$0xff]   ;;  %vm2644_vm4 = vmmov 0   ;;  %vm1812_vm5 = vcmask 130048  }
  0x80   : > { %911 = vmatprep.subr.bf16.mxu0 %v2363_v41  ;;  %v420_v62 = vrot.slane %v415_v60, %v2978_v59  ;;  %v424_v63 = vrot.slane %v415_v60, %v2980_v61  ;;  %v2398_v39 = vld [vmem:[%s3274_s4 + $0x18] sm:$0xff]   ;;  %v2400_v41 = vld [vmem:[%s3274_s4 + $0x28] sm:$0xff]   ;;  %vm2207_vm6 = vmpackc.low %vm1812_vm5, %vm1812_vm5  ;;  %s393_s26 = sand.u32 1, %s2624_s14   ;;  %s2120_s15 = sshll.u32 %s2724_s17, 4  ;;  %vm1898_vm7 = vcmask 253952  }
  0x81   : > { %702 = vmatpush1.bf16.msra.mxu1 %v2339_v25  ;;  %s394_s24 = scalar_lea.vmem [#allocation8], %s393_s26  ;;  %s3228_s18 = scalar_lea.hbm %s3280_s10, %s2120_s15 }
  0x82   : > { %703 = vmatprep.subr.bf16.mxu1 %v2340_v26  ;;  %s1913_s12 = sshll.u32 %s394_s24, 4  ;;  %s1901_s21 = scalar_lea.sflag [#allocation4], %s393_s26  ;;  %s3230_s12 = int_to_ptr.vmem [resolvable:$true] %s1913_s12 }
  0x83   : > { %912 = vmatpush1.bf16.msra.mxu0 %v2361_v42  ;;  %v2401_v42 = vld [vmem:[%s3274_s4 + $0x30] sm:$0xff]   ;;  %s2562_s29 = scalar_lea.vmem %s3230_s12, 16  ;;  %p3306_p1 = scmp.ne.s32.totalorder %s3294_s23, 0 }
  0x84   : > { %913 = vmatprep.subr.bf16.mxu0 %v2366_v43  ;;  %v2402_v43 = vld [vmem:[%s3274_s4 + $0x38] sm:$0xff]   ;;  %p2563_p10 = scmp.ne.s32.totalorder %s3230_s12, %s2562_s29  ;;  %s2647_s17 = smov [#allocation8]  }
  0x85   : > { %2021 = vmatmul.mubr.msk.bf16.gmra.mrb[4].mxu0 %vm462_vm1, %v2886_v27  ;;  %704 = vmatpush1.bf16.msra.mxu1 %v2342_v28  ;;  %s2566_s27 = sshll.u32 %s2647_s17, 4  ;;  %s2567_s27 = int_to_ptr.vmem [resolvable:$false] %s2566_s27 }
  0x86   : > { %705 = vmatprep.subr.bf16.mxu1 %v2343_v29  ;;  %p2564_p2 = pnand %p2563_p10, %p3306_p1  ;;  %s2568_s30 = scalar_lea.vmem %s2567_s27, 32 }
  0x87   : > { %914 = vmatpush1.bf16.msra.mxu0 %v2364_v44  ;;  %v564_v44 = vld [vmem:[#allocation7 + $0x1] ss:$8 sm:$0x3]  ;;  %p2569_p4 = scmp.lt.s32.totalorder %s3230_s12, %s2567_s27  ;;  %p2570_p7 = scmp.lt.s32.totalorder %s2568_s30, %s2562_s29 }
  0x88   : > { %915 = vmatprep.subr.bf16.mxu0 %v2369_v45  ;;  %v569_v45 = vrot.slane %v564_v44, %v2978_v59  ;;  %p2565_p3 = pneg %p2564_p2 }
  0x89   : > { %706 = vmatpush1.bf16.msra.mxu1 %v2345_v30  ;;  %p2571_p8 = por %p2570_p7, %p2569_p4 }
  0x8a   : > { %707 = vmatprep.subr.bf16.mxu1 %v2346_v31  ;;  %v2387_v31 = vld [vmem:[%s3273_s3 + $0x94] ss:$8 sps:$4 sm:$0xff]  }
  0x8b   : > { %916 = vmatpush1.bf16.msra.mxu0 %v2367_v46  ;;  %v573_v46 = vrot.slane %v564_v44, %v2980_v61  ;;  %p2572_p11 = pnand %p2571_p8, %p2565_p3 }
  0x8c   : > { %917 = vmatprep.subr.bf16.mxu0 %v2372_v47 }
  0x8d   : > { %708 = vmatpush1.bf16.msra.mxu1 %v2348_v32  ;;  %v2385_v32 = vld [vmem:[%s3273_s3 + $0x90] ss:$8 sps:$4 sm:$0xff]  }
  0x8e   : > { %709 = vmatprep.subr.bf16.mxu1 %v2349_v33  ;;  %v2390_v33 = vld [vmem:[%s3273_s3 + $0xa4] ss:$8 sps:$4 sm:$0xff]  }
  0x8f   : > { %918 = vmatpush1.bf16.msra.mxu0 %v2370_v48 }
  0x90   : > { %919 = vmatprep.subr.bf16.mxu0 %v2375_v49 }
  0x91   : > { %710 = vmatpush1.bf16.msra.mxu1 %v2351_v34  ;;  %v2388_v34 = vld [vmem:[%s3273_s3 + $0xa0] ss:$8 sps:$4 sm:$0xff]  }
  0x92   : > { %711 = vmatprep.subr.bf16.mxu1 %v2352_v35  ;;  %v2391_v35 = vld [vmem:[#allocation5] sm:$0xff]  }
  0x93   : > { %920 = vmatpush1.bf16.msra.mxu0 %v2373_v50 }
  0x94   : > { %921 = vmatprep.subr.bf16.mxu0 %v2378_v51 }
  0x95   : > { %712 = vmatpush1.bf16.msra.mxu1 %v2354_v36  ;;  %v2395_v36 = vld [vmem:[%s3274_s4] sm:$0xff]  }
  0x96   : > { %713 = vmatprep.subr.bf16.mxu1 %v2355_v37  ;;  %v2396_v37 = vld [vmem:[%s3274_s4 + $0x8] sm:$0xff]  }
  0x97   : > { %922 = vmatpush1.bf16.msra.mxu0 %v2376_v52 }
  0x98   : > { %923 = vmatprep.subr.bf16.mxu0 %v2381_v53 }
  0x99   : > { %714 = vmatpush1.bf16.msra.mxu1 %v2357_v38  ;;  %v2397_v38 = vld [vmem:[%s3274_s4 + $0x10] sm:$0xff]  }
  0x9a   : > { %1069 = vmatprep.subr.bf16.mxu1 %v2641_v0 }
  0x9b   : > { %924 = vmatpush1.bf16.msra.mxu0 %v2379_v54 }
  0x9c   : > { %925 = vmatprep.subr.bf16.mxu0 %v2384_v55 }
  0x9f   : > { %926 = vmatpush1.bf16.msra.mxu0 %v2382_v56 }
  0xa0   : > { %927 = vmatprep.subr.bf16.mxu0 %v2387_v31 }
  0xa3   : > { %928 = vmatpush1.bf16.msra.mxu0 %v2385_v32 }
  0xa4   : > { %929 = vmatprep.subr.bf16.mxu0 %v2390_v33 }
  0xa7   : > { %930 = vmatpush1.bf16.msra.mxu0 %v2388_v34 }
  0xa8   : > { %2150 = vmatprep.subr.bf16.mxu0 %v2391_v35 }
 0x150   : > { %v510_v1 = vpop.f32.mrb[0].mxu0 }
 0x151   : > { %v511_v2 = vadd.f32 %v510_v1, %v420_v62  ;;  %v512_v3 = vpop.f32.mrb[1].mxu0 }
 0x152   : > { %v513_v4 = vadd.f32 %v512_v3, %v424_v63  ;;  %v514_v5 = vpop.f32.mrb[2].mxu0  ;;  %v2392_v3 = vld [vmem:[#allocation5 + $0x8] sm:$0xff]  }
 0x153   : > { %v515_v6 = vadd.f32 %v514_v5, %v420_v62  ;;  %v516_v7 = vpop.f32.mrb[3].mxu0  ;;  %v529_v9 = vmax.f32 %v511_v2, 0.0 }
 0x154   : > { %v517_v8 = vadd.f32 %v516_v7, %v424_v63  ;;  %v530_v11 = vmax.f32 %v513_v4, 0.0 }
 0x155   : > { %v531_v10 = vmax.f32 %v515_v6, 0.0 }
 0x156   : > { %v532_v12 = vmax.f32 %v517_v8, 0.0 }
 0x157   : > { %v537_v13 = vpack.c.bf16 %v531_v10, %v529_v9 }
 0x158   : > { %v520_v14 = vpop.f32.mrb[4].mxu0  ;;  %v538_v15 = vpack.c.bf16 %v532_v12, %v530_v11  ;;  %v2393_v11 = vld [vmem:[#allocation5 + $0x10] sm:$0xff]  }
 0x159   : > { %v521_v16 = vadd.f32 %v520_v14, %v420_v62  ;;  %v522_v17 = vpop.f32.mrb[5].mxu0 }
 0x15a   : > { %v523_v18 = vadd.f32 %v522_v17, %v424_v63  ;;  %v524_v20 = vpop.f32.mrb[6].mxu0  ;;  %2044 = vmatprep.mubr.msk.bf16.mxu1 %vm686_vm2, %v538_v15 }
 0x15b   : > { %v525_v21 = vadd.f32 %v524_v20, %v420_v62  ;;  %v526_v22 = vpop.f32.mrb[7].mxu0  ;;  %726 = vmatmul.mubr.bf16.vlgmr.msra.gmra.mrb[0].mxu1 %v537_v13  ;;  %v533_v24 = vmax.f32 %v521_v16, 0.0  ;;  %v2394_v16 = vld [vmem:[#allocation5 + $0x18] ss:$0 sps:$4 sm:$0x11]  }
 0x15c   : > { %v527_v23 = vadd.f32 %v526_v22, %v424_v63  ;;  %v534_v26 = vmax.f32 %v523_v18, 0.0  ;;  %1070 = vmatpush1.bf16.msra.mxu1 %v2395_v36  ;;  %v1148_v17 = vsel %vm469_vm0, %v2394_v16, 0  ;;  %v2403_v18 = vld [vmem:[%s3274_s4 + $0x40] sm:$0xff]   ;;  %v2411_v22 = vld [vmem:[%s3276_s6 + $0x14] ss:$8 sps:$4 sm:$0xff]  }
 0x15d   : > { %v535_v25 = vmax.f32 %v525_v21, 0.0  ;;  %1071 = vmatprep.subr.bf16.mxu1 %v2641_v0  ;;  %v2408_v20 = vld [vmem:[%s3276_s6 + $0x4] ss:$8 sps:$4 sm:$0xff]   ;;  %v2406_v21 = vld [vmem:[%s3276_s6] ss:$8 sps:$4 sm:$0xff]  }
 0x15e   : > { %v536_v28 = vmax.f32 %v527_v23, 0.0  ;;  %v2409_v23 = vld [vmem:[%s3276_s6 + $0x10] ss:$8 sps:$4 sm:$0xff]  }
 0x15f   : > { %v539_v29 = vpack.c.bf16 %v535_v25, %v533_v24  ;;  %v2414_v24 = vld [vmem:[%s3276_s6 + $0x24] ss:$8 sps:$4 sm:$0xff]   ;;  %v2412_v25 = vld [vmem:[%s3276_s6 + $0x20] ss:$8 sps:$4 sm:$0xff]  }
 0x160   : > { %v540_v30 = vpack.c.bf16 %v536_v28, %v534_v26  ;;  %1072 = vmatpush1.bf16.msra.mxu1 %v2396_v37  ;;  %v2417_v26 = vld [vmem:[%s3276_s6 + $0x34] ss:$8 sps:$4 sm:$0xff]   ;;  %v2415_v28 = vld [vmem:[%s3276_s6 + $0x30] ss:$8 sps:$4 sm:$0xff]  }
 0x161   : > { %1073 = vmatprep.subr.bf16.mxu1 %v2641_v0 }
 0x162   : > { %2045 = vmatprep.mubr.msk.bf16.mxu1 %vm686_vm2, %v540_v30 }
 0x163   : > { %736 = vmatmul.mubr.bf16.gmra.mrb[4].mxu1 %v539_v29  ;;  %v781_v29 = vld [vmem:[#allocation7 + $0x2] ss:$8 sm:$0x3] }
 0x164   : > { %1074 = vmatpush1.bf16.msra.mxu1 %v2397_v38  ;;  %v786_v30 = vrot.slane %v781_v29, %v2978_v59  ;;  %v790_v31 = vrot.slane %v781_v29, %v2980_v61  ;;  %v1232_v29 = vld [vmem:[#allocation7 + $0x5] ss:$8 sm:$0x3] }
 0x165   : > { %1075 = vmatprep.subr.bf16.mxu1 %v2641_v0 }
 0x168   : > { %1076 = vmatpush1.bf16.msra.mxu1 %v2398_v39 }
 0x169   : > { %1077 = vmatprep.subr.bf16.mxu1 %v2641_v0 }
 0x16c   : > { %1078 = vmatpush1.bf16.msra.mxu1 %v2399_v40 }
 0x16d   : > { %1079 = vmatprep.subr.bf16.mxu1 %v2641_v0 }
 0x170   : > { %1080 = vmatpush1.bf16.msra.mxu1 %v2400_v41 }
 0x171   : > { %1081 = vmatprep.subr.bf16.mxu1 %v2641_v0 }
 0x174   : > { %1082 = vmatpush1.bf16.msra.mxu1 %v2401_v42 }
 0x175   : > { %1083 = vmatprep.subr.bf16.mxu1 %v2641_v0 }
 0x178   : > { %1084 = vmatpush1.bf16.msra.mxu1 %v2402_v43 }
 0x179   : > { %1085 = vmatprep.subr.bf16.mxu1 %v2641_v0 }
 0x17c   : > { %1086 = vmatpush1.bf16.msra.mxu1 %v2403_v18 }
 0x17d   : > { %1087 = vmatprep.subr.bf16.mxu1 %v2641_v0 }
 0x22e   : > { %v727_v47 = vpop.f32.mrb[0].mxu1 }
 0x22f   : > { %v728_v48 = vadd.f32 %v727_v47, %v569_v45  ;;  %v729_v49 = vpop.f32.mrb[1].mxu1 }
 0x230   : > { %v730_v50 = vadd.f32 %v729_v49, %v573_v46  ;;  %v731_v51 = vpop.f32.mrb[2].mxu1 }
 0x231   : > { %v732_v52 = vadd.f32 %v731_v51, %v569_v45  ;;  %v733_v53 = vpop.f32.mrb[3].mxu1  ;;  %v746_v55 = vmax.f32 %v728_v48, 0.0 }
 0x232   : > { %v734_v54 = vadd.f32 %v733_v53, %v573_v46  ;;  %v747_v57 = vmax.f32 %v730_v50, 0.0 }
 0x233   : > { %v748_v56 = vmax.f32 %v732_v52, 0.0 }
 0x234   : > { %v749_v58 = vmax.f32 %v734_v54, 0.0 }
 0x235   : > { %v754_v60 = vpack.c.bf16 %v748_v56, %v746_v55 }
 0x236   : > { %v755_v62 = vpack.c.bf16 %v749_v58, %v747_v57  ;;  %v737_v63 = vpop.f32.mrb[4].mxu1  ;;  %v1125_v58 = vld [vmem:[#allocation7 + $0x4] ss:$0 sm:$0xff] }
 0x237   : > { %v738_v1 = vadd.f32 %v737_v63, %v569_v45  ;;  %v739_v2 = vpop.f32.mrb[5].mxu1 }
 0x238   : > { %v740_v4 = vadd.f32 %v739_v2, %v573_v46  ;;  %v741_v5 = vpop.f32.mrb[6].mxu1  ;;  %2068 = vmatprep.mubr.msk.bf16.mxu0 %vm686_vm2, %v755_v62 }
 0x239   : > { %v742_v6 = vadd.f32 %v741_v5, %v569_v45  ;;  %v743_v7 = vpop.f32.mrb[7].mxu1  ;;  %942 = vmatmul.mubr.bf16.vlgmr.msra.gmra.mrb[8].mxu0 %v754_v60  ;;  %v750_v9 = vmax.f32 %v738_v1, 0.0 }
 0x23a   : > { %v744_v8 = vadd.f32 %v743_v7, %v573_v46  ;;  %2151 = vmatpush3.bf16.msra.mxu0 %v2391_v35  ;;  %v751_v12 = vmax.f32 %v740_v4, 0.0 }
 0x23b   : > { %v752_v10 = vmax.f32 %v742_v6, 0.0  ;;  %2152 = vmatprep.subr.bf16.mxu0 %v2392_v3 }
 0x23c   : > { %v753_v13 = vmax.f32 %v744_v8, 0.0 }
 0x23d   : > { %v756_v14 = vpack.c.bf16 %v752_v10, %v750_v9 }
 0x23e   : > { %v757_v15 = vpack.c.bf16 %v753_v13, %v751_v12  ;;  %2153 = vmatpush3.bf16.msra.mxu0 %v2392_v3 }
 0x23f   : > { %2154 = vmatprep.subr.bf16.mxu0 %v2393_v11 }
 0x240   : > { %2069 = vmatprep.mubr.msk.bf16.mxu0 %vm686_vm2, %v757_v15 }
 0x241   : > { %952 = vmatmul.mubr.bf16.gmra.mrb[12].mxu0 %v756_v14 }
 0x242   : > { %2155 = vmatpush3.bf16.msra.mxu0 %v2393_v11  ;;  %2158 = vmatprep.mubr.msk.bf16.mxu0 %vm462_vm1, %v2866_v19  ;;  %v2404_v19 = vld [vmem:[%s3274_s4 + $0x48] sm:$0xff]  }
 0x243   : > { %2213 = vmatprep.subr.msk.bf16.mxu0 %vm469_vm0, %v2394_v16  ;;  %1088 = vmatpush1.bf16.msra.mxu1 %v2404_v19 }
 0x244   : > { %1089 = vmatprep.subr.bf16.mxu1 %v2641_v0 }
 0x246   : > { %2157 = vmatpush3.bf16.msra.mxu0 %v1148_v17 }
 0x247   : > { %1297 = vmatprep.subr.bf16.mxu0 %v2408_v20 }
 0x249   : > { %2159 = vmatmul.mubr.msk.bf16.vlgmr.msra.gmra.mrb[16].mxu0 %vm462_vm1, %v2886_v27  ;;  %v2405_v27 = vld [vmem:[%s3274_s4 + $0x50] sm:$0xff]  }
 0x24a   : > { %1329 = vmatprep.mubr.bf16.mxu0 %v2641_v0  ;;  %1090 = vmatpush1.bf16.msra.mxu1 %v2405_v27 }
 0x24b   : > { %1298 = vmatpush1.bf16.msra.mxu0 %v2406_v21 }
 0x24c   : > { %1299 = vmatprep.subr.bf16.mxu0 %v2411_v22 }
 0x24f   : > { %1300 = vmatpush1.bf16.msra.mxu0 %v2409_v23 }
 0x250   : > { %1301 = vmatprep.subr.bf16.mxu0 %v2414_v24 }
 0x253   : > { %1302 = vmatpush1.bf16.msra.mxu0 %v2412_v25 }
 0x254   : > { %1303 = vmatprep.subr.bf16.mxu0 %v2417_v26 }
 0x257   : > { %1304 = vmatpush1.bf16.msra.mxu0 %v2415_v28 }
 0x30c   : > { %v943_v32 = vpop.f32.mrb[8].mxu0 }
 0x30d   : > { %v944_v33 = vadd.f32 %v943_v32, %v786_v30  ;;  %v945_v34 = vpop.f32.mrb[9].mxu0 }
 0x30e   : > { %v946_v35 = vadd.f32 %v945_v34, %v790_v31  ;;  %v947_v36 = vpop.f32.mrb[10].mxu0 }
 0x30f   : > { %v948_v37 = vadd.f32 %v947_v36, %v786_v30  ;;  %v949_v38 = vpop.f32.mrb[11].mxu0  ;;  %v962_v40 = vmax.f32 %v944_v33, 0.0  ;;  %v1241_v33 = vrot.slane %v1232_v29, %v2980_v61 }
 0x310   : > { %v950_v39 = vadd.f32 %v949_v38, %v790_v31  ;;  %v963_v42 = vmax.f32 %v946_v35, 0.0 }
 0x311   : > { %v964_v41 = vmax.f32 %v948_v37, 0.0 }
 0x312   : > { %v965_v43 = vmax.f32 %v950_v39, 0.0 }
 0x313   : > { %v970_v44 = vpack.c.bf16 %v964_v41, %v962_v40 }
 0x314   : > { %v971_v45 = vpack.c.bf16 %v965_v43, %v963_v42  ;;  %v953_v46 = vpop.f32.mrb[12].mxu0 }
 0x315   : > { %v954_v47 = vadd.f32 %v953_v46, %v786_v30  ;;  %v955_v48 = vpop.f32.mrb[13].mxu0 }
 0x316   : > { %v956_v49 = vadd.f32 %v955_v48, %v790_v31  ;;  %v957_v50 = vpop.f32.mrb[14].mxu0  ;;  %2081 = vmatprep.mubr.msk.bf16.mxu1 %vm686_vm2, %v971_v45 }
 0x317   : > { %v958_v51 = vadd.f32 %v957_v50, %v786_v30  ;;  %v959_v52 = vpop.f32.mrb[15].mxu0  ;;  %1102 = vmatmul.mubr.bf16.vlgmr.msra.gmra.mrb[8].mxu1 %v970_v44  ;;  %v966_v54 = vmax.f32 %v954_v47, 0.0 }
 0x318   : > { %v960_v53 = vadd.f32 %v959_v52, %v790_v31  ;;  %v967_v56 = vmax.f32 %v956_v49, 0.0 }
 0x319   : > { %v968_v55 = vmax.f32 %v958_v51, 0.0 }
 0x31a   : > { %v969_v57 = vmax.f32 %v960_v53, 0.0 }
 0x31b   : > { %v972_v60 = vpack.c.bf16 %v968_v55, %v966_v54 }
 0x31c   : > { %v973_v62 = vpack.c.bf16 %v969_v57, %v967_v56  ;;  %v2160_v63 = vpop.f32.mrb[16].mxu0 }
 0x31d   : > { %v1193_v1 = vadd.f32 %v2160_v63, %v1125_v58  ;;  %v1184_v2 = vpop.f32.mrb[17].mxu0 }
 0x31e   : > { %v1185_v3 = vadd.f32 %v1184_v2, %v1125_v58  ;;  %2082 = vmatprep.mubr.msk.bf16.mxu1 %vm686_vm2, %v973_v62  ;;  %v2161_v4 = vpop.f32.mrb[18].mxu0 }
 0x31f   : > { %v1196_v5 = vadd.f32 %v2161_v4, %v1125_v58  ;;  %1110 = vmatmul.mubr.bf16.gmra.mrb[12].mxu1 %v972_v60  ;;  %v1187_v6 = vpop.f32.mrb[19].mxu0  ;;  %v1201_v8 = vmax.f32 %v1193_v1, 0.0 }
 0x320   : > { %v1188_v7 = vadd.f32 %v1187_v6, %v1125_v58  ;;  %v1199_v10 = vmax.f32 %v1185_v3, 0.0 }
 0x321   : > { %v1202_v9 = vmax.f32 %v1196_v5, 0.0 }
 0x322   : > { %v1200_v11 = vmax.f32 %v1188_v7, 0.0 }
 0x323   : > { %v2299_v12 = vpack.i.bf16 %v1202_v9, %v1201_v8  ;;  %v1220_v13 = vpack.c.bf16 %v1202_v9, %v1201_v8 }
 0x324   : > { %v1219_v14 = vpack.c.bf16 %v1200_v11, %v1199_v10  ;;  %v2294_v15 = vpack.i.bf16 %v1200_v11, %v1199_v10 }
 0x326   : > { %2295 = vrot.lane.b32.xlu0 %v2294_v15, %s2642_s11  ;;  %2097 = vmatmul.mubr.msk.bf16.vlgmr.msra.gmra.mrb[20].mxu0 %vm1284_vm3, %v1219_v14 }
 0x327   : > { %1339 = vmatprep.mubr.bf16.mxu0 %v2641_v0 }
 0x32a   : > { %2300 = vrot.lane.b32.xlu0 %v2299_v12, %s2642_s11 }
 0x32e   : > { %2098 = vmatmul.mubr.msk.bf16.gmra.mrb[24].mxu0 %vm1284_vm3, %v1220_v13 }
 0x32f   : > { %1349 = vmatprep.mubr.bf16.mxu0 %v2641_v0 }
 0x398   : > { %v2296_v16 = vpop.permute.xlu0 %2295 }
 0x399   : > { %v2298_v17 = vunpack.i.h.bf16 %v2296_v16  ;;  %v2297_v18 = vunpack.i.l.bf16 %v2296_v16 }
 0x39b   : > { %v1221_v19 = vpack.c.bf16 %v2298_v17, %v2297_v18 }
 0x39c   : > { %v2301_v27 = vpop.permute.xlu0 %2300 }
 0x39d   : > { %2099 = vmatmul.mubr.msk.bf16.gmra.mrb[28].mxu0 %vm1284_vm3, %v1221_v19  ;;  %v2303_v20 = vunpack.i.h.bf16 %v2301_v27  ;;  %v2302_v21 = vunpack.i.l.bf16 %v2301_v27 }
 0x39e   : > { %1359 = vmatprep.mubr.bf16.mxu0 %v2641_v0  ;;  %v1237_v0 = vrot.slane %v1232_v29, %v2978_v59 }
 0x39f   : > { %v1222_v22 = vpack.c.bf16 %v2303_v20, %v2302_v21 }
 0x3a5   : > { %2100 = vmatmul.mubr.msk.bf16.gmra.mrb[32].mxu0 %vm1284_vm3, %v1222_v22 }
 0x3ea   : > { %v3089_v23 = vpop.f32.mrb[8].mxu1 }
 0x3eb   : > { %v1105_v24 = vpop.f32.mrb[9].mxu1 }
 0x3ec   : > { %v3091_v25 = vpop.f32.mrb[10].mxu1 }
 0x3ed   : > { %v1108_v26 = vpop.f32.mrb[11].mxu1 }
 0x3f2   : > { %v3093_v28 = vpop.f32.mrb[12].mxu1 }
 0x3f3   : > { %v1113_v30 = vpop.f32.mrb[13].mxu1 }
 0x3f4   : > { %v3095_v31 = vpop.f32.mrb[14].mxu1 }
 0x3f5   : > { %v1116_v32 = vpop.f32.mrb[15].mxu1 }
 0x3f9   : > { %v1331_v34 = vpop.f32.mrb[20].mxu0 }
 0x3fa   : > { %v3099_v35 = vadd.f32 %v1331_v34, %v1237_v0  ;;  %v1333_v36 = vpop.f32.mrb[21].mxu0 }
 0x3fb   : > { %v3101_v37 = vadd.f32 %v1333_v36, %v1241_v33  ;;  %v1335_v38 = vpop.f32.mrb[22].mxu0 }
 0x3fc   : > { %v1337_v39 = vpop.f32.mrb[23].mxu0  ;;  %1374 = vrot.lane.b32.xlu1 %v3099_v35, %s2642_s11  ;;  %v3107_v41 = vadd.f32 %v1335_v38, %v1237_v0 }
 0x3fd   : > { %v3105_v40 = vadd.f32 %v1337_v39, %v1241_v33 }
 0x400   : > { %1376 = vrot.lane.b32.xlu1 %v3107_v41, %s2642_s11 }
 0x401   : > { %v1341_v59 = vpop.f32.mrb[24].mxu0 }
 0x402   : > { %v3111_v61 = vadd.f32 %v1341_v59, %v1237_v0  ;;  %v1343_v42 = vpop.f32.mrb[25].mxu0 }
 0x403   : > { %v3113_v43 = vadd.f32 %v1343_v42, %v1241_v33  ;;  %v1345_v44 = vpop.f32.mrb[26].mxu0 }
 0x404   : > { %v3115_v45 = vadd.f32 %v1345_v44, %v1237_v0  ;;  %v1347_v46 = vpop.f32.mrb[27].mxu0  ;;  %1378 = vrot.lane.b32.xlu0 %v3111_v61, %s2642_s11 }
 0x405   : > { %v3119_v47 = vadd.f32 %v1347_v46, %v1241_v33 }
 0x406   : > { %1380 = vrot.lane.b32.xlu1 %v3115_v45, %s2642_s11 }
 0x46e   : > { %v1375_v3 = vpop.permute.xlu1 %1374 }
 0x46f   : > { %v1386_v24 = vmul.f32 %v1375_v3, %v3099_v35 }
 0x470   : > { %v1351_v48 = vpop.f32.mrb[28].mxu0 }
 0x471   : > { %v1352_v49 = vadd.f32 %v1351_v48, %v1237_v0  ;;  %v1353_v50 = vpop.f32.mrb[29].mxu0 }
 0x472   : > { %v3123_v51 = vadd.f32 %v1353_v50, %v1241_v33  ;;  %v1355_v52 = vpop.f32.mrb[30].mxu0  ;;  %v1377_v4 = vpop.permute.xlu1 %1376  ;;  %v2418_v50 = vld [vmem:[%s3277_s7] sm:$0xff]  }
 0x473   : > { %v1356_v53 = vadd.f32 %v1355_v52, %v1237_v0  ;;  %v1357_v54 = vpop.f32.mrb[31].mxu0  ;;  %1406 = vrot.lane.b32.xlu0 %v1352_v49, %s2642_s11  ;;  %v1490_v5 = vmul.f32 %v1375_v3, %v1352_v49  ;;  %v1387_v30 = vmul.f32 %v1377_v4, %v3107_v41  ;;  %2162 = vmatprep.subr.bf16.mxu1 %v2418_v50  ;;  %v2421_v52 = vld [vmem:[%s3277_s7 + $0x18] sm:$0xff]  }
 0x474   : > { %v3126_v55 = vadd.f32 %v1357_v54, %v1241_v33  ;;  %2163 = vmatpush3.bf16.msra.mxu1 %v2418_v50 }
 0x475   : > { %1408 = vrot.lane.b32.xlu1 %v1356_v53, %s2642_s11  ;;  %v1494_v7 = vsel %vm1284_vm3, %v1490_v5, 0.0  ;;  %v1491_v9 = vmul.f32 %v1377_v4, %v1356_v53  ;;  %v1393_v36 = vsel %vm1284_vm3, %v1387_v30, 0.0 }
 0x476   : > { %v1379_v11 = vpop.permute.xlu0 %1378 }
 0x477   : > { %v1497_v12 = vsel %vm1284_vm3, %v1491_v9, 0.0  ;;  %v1388_v38 = vmul.f32 %v1379_v11, %v3111_v61 }
 0x478   : > { %v1361_v56 = vpop.f32.mrb[32].mxu0  ;;  %v1381_v6 = vpop.permute.xlu1 %1380 }
 0x479   : > { %v1362_v57 = vadd.f32 %v1361_v56, %v1237_v0  ;;  %v1363_v58 = vpop.f32.mrb[33].mxu0  ;;  %v1389_v59 = vmul.f32 %v1381_v6, %v3115_v45  ;;  %v1396_v44 = vsel %vm1284_vm3, %v1388_v38, 0.0 }
 0x47a   : > { %v3129_v60 = vadd.f32 %v1363_v58, %v1241_v33  ;;  %v1365_v62 = vpop.f32.mrb[34].mxu0 }
 0x47b   : > { %v1366_v63 = vadd.f32 %v1365_v62, %v1237_v0  ;;  %v1367_v1 = vpop.f32.mrb[35].mxu0  ;;  %1410 = vrot.lane.b32.xlu0 %v1362_v57, %s2642_s11  ;;  %v1492_v13 = vmul.f32 %v1379_v11, %v1362_v57  ;;  %v1399_v46 = vsel %vm1284_vm3, %v1389_v59, 0.0 }
 0x47c   : > { %v3132_v2 = vadd.f32 %v1367_v1, %v1241_v33  ;;  %v1390_v33 = vsel %vm1284_vm3, %v1386_v24, 0.0 }
 0x47d   : > { %1412 = vrot.lane.b32.xlu1 %v1366_v63, %s2642_s11  ;;  %v1493_v8 = vmul.f32 %v1381_v6, %v1366_v63  ;;  %v1500_v14 = vsel %vm1284_vm3, %v1492_v13, 0.0 }
 0x47f   : > { %v1503_v10 = vsel %vm1284_vm3, %v1493_v8, 0.0 }
 0x49a   : > { %1495 = vadd.xlane.f32.xlu0 %v1494_v7 }
 0x49e   : > { %1504 = vadd.xlane.f32.xlu0 %v1503_v10 }
 0x4a1   : > { %1498 = vadd.xlane.f32.xlu1 %v1497_v12 }
 0x4a5   : > { %1501 = vadd.xlane.f32.xlu1 %v1500_v14 }
 0x4e5   : > { %v1407_v15 = vpop.permute.xlu0 %1406 }
 0x4e6   : > { %v1506_v16 = vmul.f32 %v1407_v15, %v1352_v49  ;;  %v1418_v0 = vmul.f32 %v1407_v15, %v3099_v35 }
 0x4e7   : > { %v1409_v17 = vpop.permute.xlu1 %1408 }
 0x4e8   : > { %v1507_v18 = vmul.f32 %v1409_v17, %v1356_v53  ;;  %v1510_v19 = vsel %vm1284_vm3, %v1506_v16, 0.0  ;;  %v1419_v34 = vmul.f32 %v1409_v17, %v3107_v41  ;;  %v1422_v39 = vsel %vm1284_vm3, %v1418_v0, 0.0  ;;  %v2422_v53 = vld [vmem:[%s3277_s7 + $0x20] sm:$0xff]  }
 0x4e9   : > { %1511 = vadd.xlane.f32.xlu0 %v1510_v19 }
 0x4ea   : > { %v1513_v27 = vsel %vm1284_vm3, %v1507_v18, 0.0  ;;  %v1425_v42 = vsel %vm1284_vm3, %v1419_v34, 0.0 }
 0x4ed   : > { %v1411_v20 = vpop.permute.xlu0 %1410  ;;  %1514 = vadd.xlane.f32.xlu0 %v1513_v27 }
 0x4ee   : > { %v1508_v21 = vmul.f32 %v1411_v20, %v1362_v57  ;;  %v1420_v35 = vmul.f32 %v1411_v20, %v3111_v61  ;;  %v2419_v61 = vld [vmem:[%s3277_s7 + $0x8] sm:$0xff]  }
 0x4ef   : > { %v1413_v22 = vpop.permute.xlu1 %1412  ;;  %2164 = vmatprep.subr.bf16.mxu1 %v2419_v61 }
 0x4f0   : > { %v1509_v26 = vmul.f32 %v1413_v22, %v1366_v63  ;;  %v1516_v29 = vsel %vm1284_vm3, %v1508_v21, 0.0  ;;  %v1421_v41 = vmul.f32 %v1413_v22, %v3115_v45  ;;  %v1428_v48 = vsel %vm1284_vm3, %v1420_v35, 0.0  ;;  %v2420_v45 = vld [vmem:[%s3277_s7 + $0x10] sm:$0xff]   ;;  %2165 = vmatpush3.bf16.msra.mxu1 %v2419_v61 }
 0x4f1   : > { %1517 = vadd.xlane.f32.xlu1 %v1516_v29  ;;  %2166 = vmatprep.subr.bf16.mxu1 %v2420_v45 }
 0x4f2   : > { %v1519_v32 = vsel %vm1284_vm3, %v1509_v26, 0.0  ;;  %v1431_v49 = vsel %vm1284_vm3, %v1421_v41, 0.0 }
 0x4f3   : > { %1520 = vadd.xlane.f32.xlu0 %v1519_v32 }
 0x4f4   : > { %2167 = vmatpush3.bf16.msra.mxu1 %v2420_v45 }
 0x4f5   : > { %1391 = vadd.xlane.f32.xlu1 %v1390_v33  ;;  %2168 = vmatprep.subr.bf16.mxu1 %v2421_v52 }
 0x4f7   : > { %1394 = vadd.xlane.f32.xlu0 %v1393_v36 }
 0x4f8   : > { %2169 = vmatpush3.bf16.msra.mxu1 %v2421_v52 }
 0x4f9   : > { %1423 = vadd.xlane.f32.xlu1 %v1422_v39  ;;  %2170 = vmatprep.subr.bf16.mxu1 %v2422_v53 }
 0x4fb   : > { %1426 = vadd.xlane.f32.xlu0 %v1425_v42 }
 0x4fc   : > { %2171 = vmatpush3.bf16.msra.mxu1 %v2422_v53 }
 0x4fd   : > { %1397 = vadd.xlane.f32.xlu1 %v1396_v44 }
 0x4ff   : > { %1400 = vadd.xlane.f32.xlu0 %v1399_v46 }
 0x501   : > { %1429 = vadd.xlane.f32.xlu1 %v1428_v48 }
 0x503   : > { %1432 = vadd.xlane.f32.xlu0 %v1431_v49 }
 0x527   : > { %v1496_v54 = vpop.xlane.xlu0 %1495 }
 0x52b   : > { %v1505_v56 = vpop.xlane.xlu0 %1504 }
 0x52e   : > { %v1499_v57 = vpop.xlane.xlu1 %1498 }
 0x532   : > { %v1502_v3 = vpop.xlane.xlu1 %1501 }
 0x576   : > { %v1512_v58 = vpop.xlane.xlu0 %1511 }
 0x577   : > { %v1522_v62 = vmax.f32 %v1496_v54, %v1512_v58 }
 0x579   : > { %v1526_v63 = vsub.f32 %v1496_v54, %v1522_v62  ;;  %v1538_v1 = vsub.f32 %v1512_v58, %v1522_v62 }
 0x57a   : > { %v1515_v4 = vpop.xlane.xlu0 %1514 }
 0x57b   : > { %v1530_v5 = vmul.f32 1.442695, %v1526_v63  ;;  %v1542_v6 = vmul.f32 1.442695, %v1538_v1  ;;  %v1523_v7 = vmax.f32 %v1499_v57, %v1515_v4 }
 0x57d   : > { %2430 = vpow2.f32 %v1530_v5  ;;  %v1527_v8 = vsub.f32 %v1499_v57, %v1523_v7  ;;  %v1539_v9 = vsub.f32 %v1515_v4, %v1523_v7 }
 0x57e   : > { %2432 = vpow2.f32 %v1542_v6  ;;  %v1518_v10 = vpop.xlane.xlu1 %1517 }
 0x57f   : > { %v1532_v11 = vmul.f32 1.442695, %v1527_v8  ;;  %v1544_v12 = vmul.f32 1.442695, %v1539_v9  ;;  %v1524_v13 = vmax.f32 %v1502_v3, %v1518_v10  ;;  %v2423_v8 = vld [vmem:[%s3277_s7 + $0x28] sm:$0xff]  }
 0x580   : > { %v1521_v14 = vpop.xlane.xlu0 %1520  ;;  %2172 = vmatprep.subr.bf16.mxu1 %v2423_v8 }
 0x581   : > { %2434 = vpow2.f32 %v1532_v11  ;;  %v1528_v15 = vsub.f32 %v1502_v3, %v1524_v13  ;;  %v1540_v16 = vsub.f32 %v1518_v10, %v1524_v13  ;;  %v1525_v17 = vmax.f32 %v1505_v56, %v1521_v14  ;;  %2173 = vmatpush3.bf16.msra.mxu1 %v2423_v8 }
 0x582   : > { %2436 = vpow2.f32 %v1544_v12  ;;  %v1392_v18 = vpop.xlane.xlu1 %1391  ;;  %v2424_v12 = vld [vmem:[%s3277_s7 + $0x30] sm:$0xff]  }
 0x583   : > { %v1534_v19 = vmul.f32 1.442695, %v1528_v15  ;;  %v1546_v27 = vmul.f32 1.442695, %v1540_v16  ;;  %v1529_v20 = vsub.f32 %v1505_v56, %v1525_v17  ;;  %v1541_v21 = vsub.f32 %v1521_v14, %v1525_v17  ;;  %2174 = vmatprep.subr.bf16.mxu1 %v2424_v12 }
 0x584   : > { %v1395_v22 = vpop.xlane.xlu0 %1394 }
 0x585   : > { %2438 = vpow2.f32 %v1534_v19  ;;  %v1536_v24 = vmul.f32 1.442695, %v1529_v20  ;;  %v1548_v26 = vmul.f32 1.442695, %v1541_v21  ;;  %2175 = vmatpush3.bf16.msra.mxu1 %v2424_v12 }
 0x586   : > { %2440 = vpow2.f32 %v1546_v27  ;;  %v1424_v29 = vpop.xlane.xlu1 %1423 }
 0x587   : > { %v2431_v30 = vpop.eup %2430  ;;  %2442 = vpow2.f32 %v1536_v24  ;;  %v1434_v32 = vmax.f32 %v1392_v18, %v1424_v29 }
 0x588   : > { %v2433_v0 = vpop.eup %2432  ;;  %2444 = vpow2.f32 %v1548_v26  ;;  %v1427_v33 = vpop.xlane.xlu0 %1426 }
 0x589   : > { %v1550_v34 = vadd.f32 %v2433_v0, %v2431_v30  ;;  %v1438_v36 = vsub.f32 %v1392_v18, %v1434_v32  ;;  %v1450_v38 = vsub.f32 %v1424_v29, %v1434_v32  ;;  %v1435_v39 = vmax.f32 %v1395_v22, %v1427_v33  ;;  %v2425_v32 = vld [vmem:[%s3277_s7 + $0x38] sm:$0xff]  }
 0x58a   : > { %v1398_v59 = vpop.xlane.xlu1 %1397  ;;  %2176 = vmatprep.subr.bf16.mxu1 %v2425_v32 }
 0x58b   : > { %v2435_v42 = vpop.eup %2434  ;;  %2446 = vrcp.f32 %v1550_v34  ;;  %v1442_v35 = vmul.f32 1.442695, %v1438_v36  ;;  %v1454_v44 = vmul.f32 1.442695, %v1450_v38  ;;  %v1439_v41 = vsub.f32 %v1395_v22, %v1435_v39  ;;  %2177 = vmatpush3.bf16.msra.mxu1 %v2425_v32 }
 0x58c   : > { %v2437_v46 = vpop.eup %2436  ;;  %v1451_v48 = vsub.f32 %v1427_v33, %v1435_v39  ;;  %v1401_v49 = vpop.xlane.xlu0 %1400 }
 0x58d   : > { %v1551_v50 = vadd.f32 %v2437_v46, %v2435_v42  ;;  %2448 = vpow2.f32 %v1442_v35  ;;  %v1444_v61 = vmul.f32 1.442695, %v1439_v41 }
 0x58e   : > { %2450 = vpow2.f32 %v1454_v44  ;;  %v1456_v45 = vmul.f32 1.442695, %v1451_v48  ;;  %v1430_v52 = vpop.xlane.xlu1 %1429 }
 0x58f   : > { %v2439_v53 = vpop.eup %2438  ;;  %2452 = vrcp.f32 %v1551_v50  ;;  %v1436_v54 = vmax.f32 %v1398_v59, %v1430_v52  ;;  %v2427_v50 = vld [vmem:[%s3278_s8 + $0x8] sm:$0xff]  }
 0x590   : > { %v2441_v56 = vpop.eup %2440  ;;  %2454 = vpow2.f32 %v1444_v61  ;;  %v1433_v57 = vpop.xlane.xlu0 %1432 }
 0x591   : > { %v2443_v58 = vpop.eup %2442  ;;  %v1552_v62 = vadd.f32 %v2441_v56, %v2439_v53  ;;  %2456 = vpow2.f32 %v1456_v45  ;;  %v1440_v63 = vsub.f32 %v1398_v59, %v1436_v54  ;;  %v1452_v1 = vsub.f32 %v1430_v52, %v1436_v54 }
 0x592   : > { %v2445_v3 = vpop.eup %2444  ;;  %v1437_v4 = vmax.f32 %v1401_v49, %v1433_v57 }
 0x593   : > { %2458 = vrcp.f32 %v1552_v62  ;;  %v1553_v5 = vadd.f32 %v2445_v3, %v2443_v58  ;;  %v1446_v6 = vmul.f32 1.442695, %v1440_v63  ;;  %v1458_v7 = vmul.f32 1.442695, %v1452_v1  ;;  %v2428_v1 = vld [vmem:[%s3278_s8 + $0x10] sm:$0xff]  }
 0x594   : > { %v1441_v9 = vsub.f32 %v1401_v49, %v1437_v4  ;;  %v1453_v10 = vsub.f32 %v1433_v57, %v1437_v4  ;;  %v2426_v49 = vld [vmem:[%s3278_s8] sm:$0xff]  }
 0x595   : > { %v2447_v11 = vpop.eup %2446  ;;  %2460 = vrcp.f32 %v1553_v5  ;;  %2182 = vmatprep.subr.bf16.mxu0 %v2426_v49 }
 0x596   : > { %2462 = vpow2.f32 %v1446_v6  ;;  %v1448_v13 = vmul.f32 1.442695, %v1441_v9  ;;  %v1460_v14 = vmul.f32 1.442695, %v1453_v10  ;;  %v1558_v15 = vmul.f32 %v2447_v11, %v2431_v30  ;;  %2183 = vmatpush3.bf16.msra.mxu0 %v2426_v49 }
 0x597   : > { %v2449_v16 = vpop.eup %2448  ;;  %2464 = vpow2.f32 %v1458_v7  ;;  %v1566_v17 = vmul.f32 %v2447_v11, %v2433_v0  ;;  %2184 = vmatprep.subr.bf16.mxu0 %v2427_v50 }
 0x598   : > { %v2451_v18 = vpop.eup %2450  ;;  %2466 = vpow2.f32 %v1448_v13  ;;  %v1562_v19 = vmul.f32 %v1558_v15, %v3101_v37 }
 0x599   : > { %v2453_v27 = vpop.eup %2452  ;;  %v1462_v20 = vadd.f32 %v2451_v18, %v2449_v16  ;;  %2468 = vpow2.f32 %v1460_v14  ;;  %v1570_v21 = vmul.f32 %v1566_v17, %v3123_v51 }
 0x59a   : > { %v2455_v22 = vpop.eup %2454  ;;  %v1559_v24 = vmul.f32 %v2453_v27, %v2435_v42  ;;  %v1567_v26 = vmul.f32 %v2453_v27, %v2437_v46  ;;  %2185 = vmatpush3.bf16.msra.mxu0 %v2427_v50 }
 0x59b   : > { %v2457_v29 = vpop.eup %2456  ;;  %2470 = vrcp.f32 %v1462_v20  ;;  %v1574_v30 = vadd.f32 %v1570_v21, %v1562_v19  ;;  %2186 = vmatprep.subr.bf16.mxu0 %v2428_v1 }
 0x59c   : > { %v1463_v0 = vadd.f32 %v2457_v29, %v2455_v22  ;;  %v1563_v33 = vmul.f32 %v1559_v24, %v3105_v40  ;;  %v1571_v34 = vmul.f32 %v1567_v26, %v3126_v55 }
 0x59d   : > { %v2459_v36 = vpop.eup %2458 }
 0x59e   : > { %2472 = vrcp.f32 %v1463_v0  ;;  %v1575_v38 = vadd.f32 %v1571_v34, %v1563_v33  ;;  %v1560_v39 = vmul.f32 %v2459_v36, %v2439_v53  ;;  %v1568_v59 = vmul.f32 %v2459_v36, %v2441_v56  ;;  %2187 = vmatpush3.bf16.msra.mxu0 %v2428_v1 }
 0x59f   : > { %v2461_v42 = vpop.eup %2460 }
 0x5a0   : > { %v2463_v35 = vpop.eup %2462  ;;  %v2304_v44 = vpack.i.bf16 %v1575_v38, %v1574_v30  ;;  %v1561_v41 = vmul.f32 %v2461_v42, %v2443_v58  ;;  %v1564_v46 = vmul.f32 %v1560_v39, %v3113_v43  ;;  %v1569_v48 = vmul.f32 %v2461_v42, %v2445_v3  ;;  %v1616_v38 = vld [vmem:[#allocation7 + $0x6] ss:$0 sm:$0xff] }
 0x5a1   : > { %v2465_v61 = vpop.eup %2464  ;;  %v1572_v45 = vmul.f32 %v1568_v59, %v3129_v60 }
 0x5a2   : > { %v2467_v52 = vpop.eup %2466  ;;  %v1464_v53 = vadd.f32 %v2465_v61, %v2463_v35  ;;  %2305 = vrot.lane.b32.xlu1 %v2304_v44, %s2642_s11  ;;  %v1565_v54 = vmul.f32 %v1561_v41, %v3119_v47  ;;  %v1573_v56 = vmul.f32 %v1569_v48, %v3132_v2 }
 0x5a3   : > { %v2469_v57 = vpop.eup %2468  ;;  %v1576_v58 = vadd.f32 %v1572_v45, %v1564_v46 }
 0x5a4   : > { %2474 = vrcp.f32 %v1464_v53  ;;  %v1465_v62 = vadd.f32 %v2469_v57, %v2467_v52  ;;  %v1577_v63 = vadd.f32 %v1573_v56, %v1565_v54  ;;  %v2643_v54 = vmov 0.0|0.0  }
 0x5a5   : > { %v2471_v3 = vpop.eup %2470  ;;  %2205 = vmatprep.subr.bf16.mxu1 %v2643_v54  ;;  %v2645_v56 = vmov 0.0  }
 0x5a6   : > { %2476 = vrcp.f32 %v1465_v62  ;;  %v2309_v4 = vpack.i.bf16 %v1577_v63, %v1576_v58  ;;  %v1470_v5 = vmul.f32 %v2471_v3, %v2449_v16  ;;  %v1478_v6 = vmul.f32 %v2471_v3, %v2451_v18  ;;  %v996_v58 = vld [vmem:[#allocation7 + $0x3] ss:$0 sm:$0xff] }
 0x5a7   : > { %v1112_v63 = vadd.f32 %v3093_v28, %v996_v58 }
 0x5a8   : > { %v2473_v7 = vpop.eup %2472  ;;  %2310 = vrot.lane.b32.xlu0 %v2309_v4, %s2642_s11  ;;  %v1474_v8 = vmul.f32 %v1470_v5, %v3101_v37  ;;  %v1482_v9 = vmul.f32 %v1478_v6, %v3123_v51  ;;  %v1104_v4 = vadd.f32 %v3089_v23, %v996_v58  ;;  %v2646_v23 = vmov 1.0  }
 0x5a9   : > { %v1471_v10 = vmul.f32 %v2473_v7, %v2455_v22  ;;  %v1479_v11 = vmul.f32 %v2473_v7, %v2457_v29  ;;  %v1115_v7 = vadd.f32 %v3095_v31, %v996_v58 }
 0x5aa   : > { %v1486_v12 = vadd.f32 %v1482_v9, %v1474_v8 }
 0x5ab   : > { %v1475_v13 = vmul.f32 %v1471_v10, %v3105_v40  ;;  %v1483_v14 = vmul.f32 %v1479_v11, %v3126_v55  ;;  %v1107_v11 = vadd.f32 %v3091_v25, %v996_v58 }
 0x5ad   : > { %v1487_v15 = vadd.f32 %v1483_v14, %v1475_v13 }
 0x5ae   : > { %v2475_v16 = vpop.eup %2474 }
 0x5af   : > { %v1472_v17 = vmul.f32 %v2475_v16, %v2463_v35  ;;  %v1480_v18 = vmul.f32 %v2475_v16, %v2465_v61 }
 0x5b0   : > { %v2477_v19 = vpop.eup %2476 }
 0x5b1   : > { %v1473_v27 = vmul.f32 %v2477_v19, %v2467_v52  ;;  %v1481_v20 = vmul.f32 %v2477_v19, %v2469_v57  ;;  %v1476_v37 = vmul.f32 %v1472_v17, %v3113_v43  ;;  %v1484_v51 = vmul.f32 %v1480_v18, %v3129_v60  ;;  %v1728_v57 = vld [vmem:[#allocation7 + $0x7] ss:$0 sm:$0xff] }
 0x5b3   : > { %v1477_v21 = vmul.f32 %v1473_v27, %v3119_v47  ;;  %v1485_v22 = vmul.f32 %v1481_v20, %v3132_v2  ;;  %v1488_v24 = vadd.f32 %v1484_v51, %v1476_v37  ;;  %v2429_v2 = vld [vmem:[%s3278_s8 + $0x18] sm:$0xff]  }
 0x5b4   : > { %2188 = vmatprep.subr.bf16.mxu0 %v2429_v2 }
 0x5b5   : > { %v1489_v40 = vadd.f32 %v1485_v22, %v1477_v21  ;;  %2189 = vmatpush3.bf16.msra.mxu0 %v2429_v2 }
 0x614   : > { %v2306_v26 = vpop.permute.xlu1 %2305 }
 0x615   : > { %v2308_v55 = vunpack.i.h.bf16 %v2306_v26  ;;  %v2307_v29 = vunpack.i.l.bf16 %v2306_v26 }
 0x617   : > { %v1594_v30 = vsel %vm1284_vm3, %v1486_v12, %v2307_v29  ;;  %v1595_v32 = vsel %vm1284_vm3, %v1487_v15, %v2308_v55 }
 0x618   : > { %v1598_v0 = vpack.c.bf16 %v1595_v32, %v1594_v30 }
 0x61a   : > { %v2311_v33 = vpop.permute.xlu0 %2310  ;;  %2178 = vmatprep.mubr.bf16.mxu1 %v1598_v0 }
 0x61b   : > { %v2313_v34 = vunpack.i.h.bf16 %v2311_v33  ;;  %v2312_v43 = vunpack.i.l.bf16 %v2311_v33 }
 0x61d   : > { %v1597_v60 = vsel %vm1284_vm3, %v1489_v40, %v2313_v34  ;;  %v1596_v47 = vsel %vm1284_vm3, %v1488_v24, %v2312_v43 }
 0x61e   : > { %v1599_v36 = vpack.c.bf16 %v1597_v60, %v1596_v47 }
 0x620   : > { %2179 = vmatmul.mubr.bf16.vlgmr.msra.gmra.mrb[16].mxu1 %v1599_v36 }
 0x621   : > { %2202 = vmatprep.mubr.msk.f32.mxu1 %vm2644_vm4, %v2645_v56 }
 0x6f3   : > { %v2180_v39 = vpop.f32.mrb[16].mxu1 }
 0x6f4   : > { %v1708_v59 = vadd.f32 %v2180_v39, %v1616_v38  ;;  %v1699_v42 = vpop.f32.mrb[17].mxu1 }
 0x6f5   : > { %v1700_v35 = vadd.f32 %v1699_v42, %v1616_v38  ;;  %v2181_v44 = vpop.f32.mrb[18].mxu1 }
 0x6f6   : > { %v1711_v41 = vadd.f32 %v2181_v44, %v1616_v38  ;;  %v1702_v46 = vpop.f32.mrb[19].mxu1  ;;  %v1716_v49 = vmax.f32 %v1708_v59, 0.0 }
 0x6f7   : > { %v1703_v48 = vadd.f32 %v1702_v46, %v1616_v38  ;;  %v1714_v61 = vmax.f32 %v1700_v35, 0.0 }
 0x6f8   : > { %v1717_v50 = vmax.f32 %v1711_v41, 0.0 }
 0x6f9   : > { %v1715_v45 = vmax.f32 %v1703_v48, 0.0 }
 0x6fa   : > { %v1719_v52 = vpack.c.bf16 %v1717_v50, %v1716_v49 }
 0x6fb   : > { %v1718_v53 = vpack.c.bf16 %v1715_v45, %v1714_v61 }
 0x6fd   : > { %2190 = vmatprep.mubr.msk.bf16.mxu0 %vm1284_vm3, %v1718_v53 }
 0x6fe   : > { %2191 = vmatmul.mubr.msk.bf16.vlgmr.msra.gmra.mrb[36].mxu0 %vm1284_vm3, %v1719_v52 }
 0x7d1   : > { %v2192_v62 = vpop.f32.mrb[36].mxu0 }
 0x7d2   : > { %v1802_v1 = vadd.f32 %v2192_v62, %v1728_v57  ;;  %v1793_v3 = vpop.f32.mrb[37].mxu0 }
 0x7d3   : > { %v1794_v5 = vadd.f32 %v1793_v3, %v1728_v57  ;;  %v2193_v6 = vpop.f32.mrb[38].mxu0 }
 0x7d4   : > { %v1810_v8 = vmul.f32 %v1802_v1, %v1112_v63  ;;  %v1805_v9 = vadd.f32 %v2193_v6, %v1728_v57  ;;  %v1796_v10 = vpop.f32.mrb[39].mxu0 }
 0x7d5   : > { %v1808_v12 = vmul.f32 %v1794_v5, %v1104_v4  ;;  %v1797_v13 = vadd.f32 %v1796_v10, %v1728_v57 }
 0x7d6   : > { %v1811_v14 = vmul.f32 %v1805_v9, %v1115_v7 }
 0x7d7   : > { %v1809_v28 = vmul.f32 %v1797_v13, %v1107_v11 }
 0x7d8   : > { %v2210_v15 = vpack.c.bf16 %v1811_v14, %v1810_v8 }
 0x7d9   : > { %v2206_v16 = vpack.c.bf16 %v1809_v28, %v1808_v12 }
 0x7db   : > { %2208 = vmatpush3.bf16.xpose.msk.msra.mxu1 %vm2207_vm6, %v2206_v16 }
 0x7dc   : > { %2209 = vmatprep.subr.bf16.mxu1 %v2643_v54 }
 0x7e3   : > { %2212 = vmatpush3.bf16.xpose.msk.msra.mxu1 %vm2207_vm6, %v2210_v15 }
 0x7ea   : > { %2203 = vmatmul.mubr.msk.f32.vlgmr.msra.gmra.mrb[20].mxu1 %vm1812_vm5, %v2646_v23 }
 0x8bd   : > { %v1894_v25 = vpop.f32.mrb[20].mxu1 }
 0x8be   : > { %1899 = vst.msk [vmem:[%s394_s24] sm:$0x1] %vm1898_vm7, %v1894_v25  ;;  %v2204_v31 = vpop.f32.mrb[21].mxu1 }
 0x8bf   : > { %2575 = shalt.err (!%p2572_p11)
}
 0x8c0   : > { %s2576_s19 = scalar_lea.hbm %s3228_s18, 16  ;;  %s2580_s25 = scalar_lea.hbm %s3280_s10, 64 }
 0x8c1   : > { %p2577_p13 = scmp.ne.s32.totalorder %s3228_s18, %s2576_s19  ;;  %p2581_p6 = scmp.lt.u32.totalorder %s3228_s18, %s3280_s10 }
 0x8c2   : > { %p2582_p9 = scmp.lt.u32.totalorder %s2580_s25, %s2576_s19  ;;  %p2584_p10 = scmp.lt.u32.totalorder %s2576_s19, %s3228_s18 }
 0x8c3   : > { %p2578_p5 = pnand %p2577_p13, %p3306_p1 }
 0x8c4   : > { %p2583_p12 = por %p2582_p9, %p2581_p6 }
 0x8c5   : > { %p2579_p0 = pneg %p2578_p5 }
 0x8c6   : > { %p2585_p2 = por %p2584_p10, %p2583_p12 }
 0x8c8   : > { %p2586_p3 = pnand %p2585_p2, %p2579_p0 }
 0x8ca   : > { %2589 = shalt.err (!%p2586_p3)
}
 0x8cb   : > { %2226 = dma.vmem_to_hbm [thread:$0]  (%p3306_p1), %s3230_s12, 16, %s3228_s18, %s1901_s21  }
 0x8cc PF: > { %s3307_s26 = sld [smem:[#allocation12_spill]]  ;;  %s3308_s15 = sld [smem:[#allocation16_spill]] }
 0x8cd   : > { %p2248_p4 = scmp.ge.s32.totalorder %s2632_s16, 2 }
 0x8d2   : > { %s1925_s24 = sand.u32 1, %s3307_s26   ;;  %p3309_p7 = scmp.ne.s32.totalorder %s3308_s15, 0 }
 0x8d3   : > { %s1926_s20 = scalar_lea.sflag [#allocation4], %s1925_s24 }
 0x8d4   : > { %p2239_p8 = pnand %p2248_p4, %p3309_p7 }
 0x8d6   : > { %2615 = dma.done.wait (!%p2239_p8), %s1926_s20, 16  }
 0x8d7   : > { %2617 = vsyncadd (!%p2239_p8), %s1926_s20, 4294967280  ;;  %s3310_s16 = sld [smem:[#allocation14_spill]]  ;;  %s3311_s22 = sld [smem:[#allocation13_spill]] }
 0x8d8   : > { %s3312_s15 = sld [smem:[#allocation15_spill]]  ;;  %s3313_s13 = smov %s2624_s14 }
 0x8dd   : > { %p22_p11 = scmp.ge.s32.totalorder %s3310_s16, 6   ;;  %s3314_s14 = smov %s3311_s22 }
 0x8df   :  { %24 = sbr.rel (!%p22_p11) target bundleno = 7 (0x7), region = 111 }
 0x8e6   :  { %1930 = vsyncpa [#allocation3], 1 }
 0x8e7   :  { %1932 = vsyncpa [#allocation3 + $0x1], 1 }
 0x8e8   :  { %1933 = vsyncpa [#allocation6], 1 }
 0x8e9   :  { %1934 = vsyncpa [#allocation4], 1 }
 0x8ea   :  { %1936 = vsyncpa [#allocation4 + $0x1], 1 }

</bundles_post_ra>
